<compile_context>
chip_gen: v7x
topology: tpu7x:2x2x1
jax: 0.10.0
libtpu: 0.0.40
codegen_flags: <defaults>
</compile_context>

<pallas_src>
import functools

import jax
import jax.numpy as jnp
from jax import lax
from jax.experimental import pallas as pl
from jax.experimental.pallas import tpu as pltpu


def _pick_batch_block(B):
    """Largest divisor of B that is <= 8 while keeping >= 2 batch blocks."""
    divisors = [d for d in range(1, min(B, 8) + 1) if B % d == 0]
    preferred = [d for d in divisors if B // d >= 2]
    return max(preferred) if preferred else max(divisors)


# ----------------------------------------------------------------------------
# Pallas kernel: one fused ConvLSTM layer, grid point = (batch block, time t).
# ----------------------------------------------------------------------------
def _convlstm_seq_kernel(x_ref, w_ref, b_ref, hseq_ref, clast_ref,
                         h_scr, c_scr, *, Bb, H, W, KH, KW, Cin, Chid, WOFF):
    """Fused ConvLSTM layer step for one block of Bb batch elements.

    x_ref    : (Bb, 1, Hp, Wp, Cin) bf16   zero-padded x_t (unmerged)
    w_ref    : (KH, KW*(Cin+Chid), 4*Chid) bf16  merged conv weights,
                 per-ky rows ordered [x taps (kx-major) | h taps (kx-major)],
                 output-channel (lane) order [i | f | o | g]
    b_ref    : (1, 4*Chid) f32             conv bias (gate order i, f, o, g)
    hseq_ref : (Bb, 1, H, W, Chid)         per-timestep hidden output
                 (bf16 for intermediate layers, f32 for the last layer)
    clast_ref: (Bb, H, W, Chid) f32        final cell state (written at t==T-1)
    h_scr    : VMEM (Bb, Hp, WOFF+W+pw, Chid) f32  padded hidden state, interior
                 stored at sublane-aligned column offset WOFF
    c_scr    : VMEM (Bb, H*W, Chid) f32    cell state, resident across t
    """
    t = pl.program_id(1)
    ph, pw = KH // 2, KW // 2
    K = KW * (Cin + Chid)
    M = H * W

    # -- new batch block: reset the recurrent state (and its zero borders).
    @pl.when(t == 0)
    def _init():
        h_scr[...] = jnp.zeros_like(h_scr)
        c_scr[...] = jnp.zeros_like(c_scr)

    # -- loop invariants hoisted out of the (unrolled) batch loop.
    bias = b_ref[...]                                            # (1, 4*Chid)
    lane = lax.broadcasted_iota(jnp.int32, (M, 4 * Chid), 1)
    is_g = lane >= 3 * Chid                                      # g-gate lanes
    is_last = t == pl.num_programs(1) - 1

    for b in range(Bb):
        # -- build the kx-merged conv LHS (channel layout = merged weights:
        #    [x taps kx-major | h taps kx-major]).  Concat is done in f32
        #    (well-supported layout path), then cast once to bf16 for the MXU.
        x_pad = x_ref[b, 0].astype(jnp.float32)          # (Hp, Wp, Cin)
        h_pad = h_scr[b]                                 # (Hp, WOFF+W+pw, Chid)
        pieces = [x_pad[:, kx:kx + W, :] for kx in range(KW)]
        pieces += [h_pad[:, WOFF - pw + kx:WOFF - pw + kx + W, :]
                   for kx in range(KW)]
        merged = jnp.concatenate(pieces, axis=-1)        # (Hp, W, K) f32
        merged = merged.astype(jnp.bfloat16)             # MXU operands in bf16

        # -- convolution: KH matmuls (one per ky tap row), f32 accumulation on
        #    the MXU; bias is added once at the end of the dot chain.
        acc = jnp.dot(merged[0:H].reshape(M, K), w_ref[0],
                      preferred_element_type=jnp.float32)
        for ky in range(1, KH):
            acc = acc + jnp.dot(merged[ky:ky + H].reshape(M, K), w_ref[ky],
                                preferred_element_type=jnp.float32)
        acc = acc + bias                                 # (M, 4*Chid) f32

        # -- gates with a single full-width sigmoid pass:
        #    i, f, o -> sigmoid(acc);  g -> tanh(acc) = 2*sigmoid(2*acc) - 1.
        s = jax.nn.sigmoid(jnp.where(is_g, 2.0 * acc, acc))
        gates = jnp.where(is_g, 2.0 * s - 1.0, s)
        i_g = gates[:, 0 * Chid:1 * Chid]
        f_g = gates[:, 1 * Chid:2 * Chid]
        o_g = gates[:, 2 * Chid:3 * Chid]
        g_g = gates[:, 3 * Chid:4 * Chid]

        c_next = f_g * c_scr[b] + i_g * g_g              # (M, Chid) f32
        h_next = o_g * jnp.tanh(c_next)

        # -- carry state in VMEM; h goes back into the sublane-aligned
        #    interior of its padded scratch buffer (border zeros stay intact).
        c_scr[b] = c_next
        h_img = h_next.reshape(H, W, Chid)               # lane dim unchanged
        h_scr[b, ph:ph + H, WOFF:WOFF + W, :] = h_img

        # -- stream the per-timestep hidden output (bf16 for inner layers).
        hseq_ref[b, 0] = h_img.astype(hseq_ref.dtype)

        # -- emit the final cell state once per batch element.
        @pl.when(is_last)
        def _emit_c(c_next=c_next, b=b):
            clast_ref[b] = c_next.reshape(H, W, Chid)


# ----------------------------------------------------------------------------
# Wrapper: one ConvLSTM layer over a full (B, T, H, W, Cin) sequence.
# ----------------------------------------------------------------------------
@functools.partial(jax.jit, static_argnames=("Chid", "KH", "KW", "out_bf16"))
def _convlstm_layer(x_seq, w, b, *, Chid, KH, KW, out_bf16):
    B, T, H, W, Cin = x_seq.shape
    assert KH % 2 == 1 and KW % 2 == 1
    ph, pw = KH // 2, KW // 2
    Hp, Wp = H + 2 * ph, W + 2 * pw
    K = KW * (Cin + Chid)
    WOFF = 8                      # sublane-aligned offset of the h interior
    assert pw <= WOFF
    Bb = _pick_batch_block(B)

    # Pad once for the whole sequence; stream it UN-merged and in bf16
    # (far fewer HBM bytes than the old f32 im2row layout).
    x_pad = jnp.pad(x_seq.astype(jnp.bfloat16),
                    ((0, 0), (0, 0), (ph, ph), (pw, pw), (0, 0)))

    # Merged weight layout: per ky, rows = [x taps (kx-major) | h taps].
    w_x = w[:, :, :Cin, :].reshape(KH, KW * Cin, 4 * Chid)
    w_h = w[:, :, Cin:, :].reshape(KH, KW * Chid, 4 * Chid)
    w_k = jnp.concatenate([w_x, w_h], axis=1).astype(jnp.bfloat16)
    b_k = b.reshape(1, 4 * Chid).astype(jnp.float32)

    h_dtype = jnp.bfloat16 if out_bf16 else jnp.float32

    kernel = functools.partial(_convlstm_seq_kernel, Bb=Bb, H=H, W=W, KH=KH,
                               KW=KW, Cin=Cin, Chid=Chid, WOFF=WOFF)

    h_seq, c_last = pl.pallas_call(
        kernel,
        out_shape=(
            jax.ShapeDtypeStruct((B, T, H, W, Chid), h_dtype),
            jax.ShapeDtypeStruct((B, H, W, Chid), jnp.float32),
        ),
        grid_spec=pltpu.PrefetchScalarGridSpec(
            num_scalar_prefetch=0,
            grid=(B // Bb, T),
            in_specs=[
                pl.BlockSpec((Bb, 1, Hp, Wp, Cin),
                             lambda bi, ti: (bi, ti, 0, 0, 0)),
                pl.BlockSpec((KH, K, 4 * Chid), lambda bi, ti: (0, 0, 0)),
                pl.BlockSpec((1, 4 * Chid), lambda bi, ti: (0, 0)),
            ],
            out_specs=[
                pl.BlockSpec((Bb, 1, H, W, Chid),
                             lambda bi, ti: (bi, ti, 0, 0, 0)),
                pl.BlockSpec((Bb, H, W, Chid), lambda bi, ti: (bi, 0, 0, 0)),
            ],
            scratch_shapes=[
                pltpu.VMEM((Bb, Hp, WOFF + W + pw, Chid), jnp.float32),  # h
                pltpu.VMEM((Bb, H * W, Chid), jnp.float32),              # c
            ],
        ),
        compiler_params=pltpu.CompilerParams(
            dimension_semantics=("parallel", "arbitrary"),
            vmem_limit_bytes=32 * 1024 * 1024,
        ),
    )(x_pad, w_k, b_k)

    return h_seq, c_last


# ----------------------------------------------------------------------------
# ConvLSTM module (parameter setup + layer loop are plain-JAX glue).
# ----------------------------------------------------------------------------
class ConvLSTMPallas:
    def __init__(self, in_channels=3, hidden_dim=64, kernel_size=3,
                 num_layers=1, batch_first=True, bias=True,
                 return_all_layers=False, key=None):
        if isinstance(kernel_size, int):
            kernel_size = (kernel_size, kernel_size)
        if not isinstance(kernel_size, list):
            kernel_size = [kernel_size] * num_layers
        if not isinstance(hidden_dim, list):
            hidden_dim = [hidden_dim] * num_layers
        assert len(kernel_size) == len(hidden_dim) == num_layers

        self.input_dim = in_channels
        self.hidden_dim = hidden_dim
        self.kernel_size = kernel_size
        self.num_layers = num_layers
        self.batch_first = batch_first
        self.bias = bias
        self.return_all_layers = return_all_layers

        if key is None:
            key = jax.random.PRNGKey(0)

        # Deterministic parameter init (PyTorch Conv2d-style uniform bound).
        self.weights = []   # HWIO: (KH, KW, Cin_tot, 4*Chid), f32
        self.biases = []    # (1, 4*Chid), f32
        for li in range(num_layers):
            cin = self.input_dim if li == 0 else self.hidden_dim[li - 1]
            ctot = cin + self.hidden_dim[li]
            kh, kw = self.kernel_size[li]
            cout = 4 * self.hidden_dim[li]
            key, wk, bk = jax.random.split(key, 3)
            bound = 1.0 / (ctot * kh * kw) ** 0.5
            w = jax.random.uniform(wk, (kh, kw, ctot, cout), jnp.float32,
                                   minval=-bound, maxval=bound)
            if bias:
                b = jax.random.uniform(bk, (1, cout), jnp.float32,
                                       minval=-bound, maxval=bound)
            else:
                b = jnp.zeros((1, cout), jnp.float32)
            self.weights.append(w)
            self.biases.append(b)

    def __call__(self, input_tensor):
        """input_tensor: (B, T, C, H, W) if batch_first else (T, B, C, H, W)."""
        # TODO(synk): the original forward's `hidden_state` argument raises
        # NotImplementedError in PyTorch, so stateful init is not implemented.
        if not self.batch_first:
            input_tensor = jnp.transpose(input_tensor, (1, 0, 2, 3, 4))
        B, T, _, H, W = input_tensor.shape

        # NCHW -> NHWC per timestep (channels on the TPU lane axis).
        cur_input = jnp.transpose(input_tensor, (0, 1, 3, 4, 2))  # (B,T,H,W,C)

        layer_output_list = []
        last_state_list = []
        for li in range(self.num_layers):
            chid = self.hidden_dim[li]
            kh, kw = self.kernel_size[li]
            # Intermediate layers stream h in bf16 (it would be re-quantized
            # to bf16 by the next layer's MXU matmul anyway); last layer f32.
            out_bf16 = li < self.num_layers - 1
            h_seq, c_last = _convlstm_layer(cur_input, self.weights[li],
                                            self.biases[li],
                                            Chid=chid, KH=kh, KW=kw,
                                            out_bf16=out_bf16)
            cur_input = h_seq
            h_seq_f32 = h_seq.astype(jnp.float32)
            h_last = h_seq_f32[:, -1]

            # Back to PyTorch layout (B, T, C, H, W) / (B, C, H, W).
            layer_output_list.append(jnp.transpose(h_seq_f32, (0, 1, 4, 2, 3)))
            last_state_list.append((jnp.transpose(h_last, (0, 3, 1, 2)),
                                    jnp.transpose(c_last, (0, 3, 1, 2))))

        if not self.return_all_layers:
            layer_output_list = layer_output_list[-1:]
            last_state_list = last_state_list[-1:]
        return layer_output_list, last_state_list


# ----------------------------------------------------------------------------
# Pure-JAX f32 reference (lax.conv) for correctness checking.
# ----------------------------------------------------------------------------
def convlstm_reference(model, input_tensor):
    if not model.batch_first:
        input_tensor = jnp.transpose(input_tensor, (1, 0, 2, 3, 4))
    B, T, _, H, W = input_tensor.shape
    cur_input = jnp.transpose(input_tensor, (0, 1, 3, 4, 2))
    layer_output_list, last_state_list = [], []
    dn = lax.conv_dimension_numbers((B, H, W, 1), (1, 1, 1, 1),
                                    ("NHWC", "HWIO", "NHWC"))
    for li in range(model.num_layers):
        chid = model.hidden_dim[li]
        w, b = model.weights[li], model.biases[li]
        h = jnp.zeros((B, H, W, chid), jnp.float32)
        c = jnp.zeros((B, H, W, chid), jnp.float32)
        outs = []
        for t in range(T):
            xh = jnp.concatenate([cur_input[:, t], h], axis=-1)
            cc = lax.conv_general_dilated(
                xh, w, window_strides=(1, 1), padding="SAME",
                dimension_numbers=dn,
                precision=lax.Precision.HIGHEST) + b[0]
            i = jax.nn.sigmoid(cc[..., 0 * chid:1 * chid])
            f = jax.nn.sigmoid(cc[..., 1 * chid:2 * chid])
            o = jax.nn.sigmoid(cc[..., 2 * chid:3 * chid])
            g = jnp.tanh(cc[..., 3 * chid:4 * chid])
            c = f * c + i * g
            h = o * jnp.tanh(c)
            outs.append(h)
        layer_out = jnp.stack(outs, axis=1)
        cur_input = layer_out
        layer_output_list.append(jnp.transpose(layer_out, (0, 1, 4, 2, 3)))
        last_state_list.append((jnp.transpose(h, (0, 3, 1, 2)),
                                jnp.transpose(c, (0, 3, 1, 2))))
    if not model.return_all_layers:
        layer_output_list = layer_output_list[-1:]
        last_state_list = last_state_list[-1:]
    return layer_output_list, last_state_list


if __name__ == "__main__":
    key = jax.random.PRNGKey(0)
    k_x, k_params, k_x2, k_params2 = jax.random.split(key, 4)

    # --------------------- primary check (module defaults) -------------------
    B, T, C, H, W = 2, 8, 4, 16, 16
    hidden = 32
    num_layers = 2

    x = jax.random.normal(k_x, (B, T, C, H, W), jnp.float32)

    model = ConvLSTMPallas(in_channels=C, hidden_dim=hidden, kernel_size=3,
                           num_layers=num_layers, batch_first=True, bias=True,
                           return_all_layers=False, key=k_params)

    layer_outputs, last_states = model(x)
    jax.block_until_ready(layer_outputs[0])
    jax.block_until_ready(last_states[0][0])
    jax.block_until_ready(last_states[0][1])

    assert layer_outputs[0].shape == (B, T, hidden, H, W)
    assert last_states[0][0].shape == (B, hidden, H, W)
    assert last_states[0][1].shape == (B, hidden, H, W)

    # Verify against the pure-JAX f32 reference.  The kernel uses bf16 MXU
    # operands with f32 accumulation (and bf16 inter-layer streaming), so the
    # tolerance is relaxed vs f32.
    ref_outputs, ref_states = convlstm_reference(model, x)
    assert jnp.allclose(layer_outputs[0], ref_outputs[0], atol=3e-2, rtol=3e-2)
    assert jnp.allclose(last_states[0][0], ref_states[0][0], atol=3e-2, rtol=3e-2)
    assert jnp.allclose(last_states[0][1], ref_states[0][1], atol=3e-2, rtol=3e-2)

    # --------------- secondary check: batch-blocked grid (Bb > 1) ------------
    B2, T2, C2, H2, W2 = 4, 4, 3, 8, 8
    hidden2 = 16
    x2 = jax.random.normal(k_x2, (B2, T2, C2, H2, W2), jnp.float32)
    model2 = ConvLSTMPallas(in_channels=C2, hidden_dim=hidden2, kernel_size=3,
                            num_layers=1, batch_first=True, bias=True,
                            return_all_layers=False, key=k_params2)
    outs2, states2 = model2(x2)
    jax.block_until_ready(outs2[0])
    ref_outs2, ref_states2 = convlstm_reference(model2, x2)
    assert outs2[0].shape == (B2, T2, hidden2, H2, W2)
    assert jnp.allclose(outs2[0], ref_outs2[0], atol=3e-2, rtol=3e-2)
    assert jnp.allclose(states2[0][0], ref_states2[0][0], atol=3e-2, rtol=3e-2)
    assert jnp.allclose(states2[0][1], ref_states2[0][1], atol=3e-2, rtol=3e-2)

    print("KERNEL_OK")
</pallas_src>

<mosaic_0001>
module attributes {stable_mosaic.version = 11 : i64} {
  func.func @_convlstm_seq_kernel(%arg0: i32, %arg1: i32, %arg2: memref<1x1x18x18x4xbf16, #tpu.memory_space<vmem>>, %arg3: memref<3x108x128xbf16, #tpu.memory_space<vmem>>, %arg4: memref<1x128xf32, #tpu.memory_space<vmem>>, %arg5: memref<1x1x16x16x32xbf16, #tpu.memory_space<vmem>>, %arg6: memref<1x16x16x32xf32, #tpu.memory_space<vmem>>, %arg7: memref<1x18x25x32xf32, #tpu.memory_space<vmem>>, %arg8: memref<1x256x32xf32, #tpu.memory_space<vmem>>) attributes {dimension_semantics = [#tpu.dimension_semantics<parallel>, #tpu.dimension_semantics<arbitrary>], iteration_bounds = array<i64: 2, 8>, scalar_prefetch = 0 : i64, scratch_operands = 2 : i64, tpu.core_type = #tpu.core_type<tc>, window_params = [{transform_indices = @transform_0, window_bounds = array<i64: 1, 1, 18, 18, 4>}, {pipeline_mode = #tpu.pipeline_mode<synchronous>, transform_indices = @transform_1, window_bounds = array<i64: 3, 108, 128>}, {pipeline_mode = #tpu.pipeline_mode<synchronous>, transform_indices = @transform_2, window_bounds = array<i64: 1, 128>}, {transform_indices = @transform_3, window_bounds = array<i64: 1, 1, 16, 16, 32>}, {transform_indices = @transform_4, window_bounds = array<i64: 1, 16, 16, 32>}]} {
    %c0_i32 = arith.constant 0 : i32
    %0 = arith.cmpi eq, %arg1, %c0_i32 : i32
    %1 = arith.extui %0 : i1 to i32
    %c0_i32_0 = arith.constant 0 : i32
    %2 = arith.cmpi ne, %1, %c0_i32_0 : i32
    scf.if %2 {
      %cst_39 = arith.constant 0.000000e+00 : f32
      %77 = vector.broadcast %cst_39 : f32 to vector<1x18x25x32xf32>
      %c0_40 = arith.constant 0 : index
      %c0_41 = arith.constant 0 : index
      %c0_42 = arith.constant 0 : index
      %c0_43 = arith.constant 0 : index
      %78 = vector.load %arg7[%c0_40, %c0_41, %c0_42, %c0_43] : memref<1x18x25x32xf32, #tpu.memory_space<vmem>>, vector<1x18x25x32xf32>
      tpu.vector_store %arg7[%c0_40, %c0_41, %c0_42, %c0_43], %77 {strides = array<i32>} : memref<1x18x25x32xf32, #tpu.memory_space<vmem>>, vector<1x18x25x32xf32>,
      %cst_44 = arith.constant 0.000000e+00 : f32
      %79 = vector.broadcast %cst_44 : f32 to vector<1x256x32xf32>
      %c0_45 = arith.constant 0 : index
      %c0_46 = arith.constant 0 : index
      %c0_47 = arith.constant 0 : index
      %80 = vector.load %arg8[%c0_45, %c0_46, %c0_47] : memref<1x256x32xf32, #tpu.memory_space<vmem>>, vector<1x256x32xf32>
      tpu.vector_store %arg8[%c0_45, %c0_46, %c0_47], %79 {strides = array<i32>} : memref<1x256x32xf32, #tpu.memory_space<vmem>>, vector<1x256x32xf32>,
    } else {
    }
    %c0 = arith.constant 0 : index
    %c0_1 = arith.constant 0 : index
    %3 = vector.load %arg4[%c0, %c0_1] : memref<1x128xf32, #tpu.memory_space<vmem>>, vector<1x128xf32>
    %4 = tpu.iota {dimensions = array<i32: 1>} : vector<256x128xi32>
    %c96_i32 = arith.constant 96 : i32
    %5 = vector.broadcast %c96_i32 : i32 to vector<256x128xi32>
    %6 = arith.cmpi sge, %4, %5 : vector<256x128xi32>
    %c7_i32 = arith.constant 7 : i32
    %7 = arith.cmpi eq, %arg1, %c7_i32 : i32
    %c0_2 = arith.constant 0 : index
    %c0_3 = arith.constant 0 : index
    %c0_4 = arith.constant 0 : index
    %c0_5 = arith.constant 0 : index
    %c0_6 = arith.constant 0 : index
    %8 = vector.load %arg2[%c0_2, %c0_3, %c0_4, %c0_5, %c0_6] : memref<1x1x18x18x4xbf16, #tpu.memory_space<vmem>>, vector<1x1x18x18x4xbf16>
    %9 = vector.shape_cast %8 : vector<1x1x18x18x4xbf16> to vector<18x18x4xbf16>
    %10 = arith.extf %9 : vector<18x18x4xbf16> to vector<18x18x4xf32>
    %c0_7 = arith.constant 0 : index
    %c0_8 = arith.constant 0 : index
    %c0_9 = arith.constant 0 : index
    %c0_10 = arith.constant 0 : index
    %11 = vector.load %arg7[%c0_7, %c0_8, %c0_9, %c0_10] : memref<1x18x25x32xf32, #tpu.memory_space<vmem>>, vector<1x18x25x32xf32>
    %12 = vector.shape_cast %11 : vector<1x18x25x32xf32> to vector<18x25x32xf32>
    %13 = vector.extract_strided_slice %10 {offsets = [0, 0, 0], sizes = [18, 16, 4], strides = [1, 1, 1]} : vector<18x18x4xf32> to vector<18x16x4xf32>
    %14 = vector.extract_strided_slice %10 {offsets = [0, 1, 0], sizes = [18, 16, 4], strides = [1, 1, 1]} : vector<18x18x4xf32> to vector<18x16x4xf32>
    %15 = vector.extract_strided_slice %10 {offsets = [0, 2, 0], sizes = [18, 16, 4], strides = [1, 1, 1]} : vector<18x18x4xf32> to vector<18x16x4xf32>
    %16 = vector.extract_strided_slice %12 {offsets = [0, 7, 0], sizes = [18, 16, 32], strides = [1, 1, 1]} : vector<18x25x32xf32> to vector<18x16x32xf32>
    %17 = vector.extract_strided_slice %12 {offsets = [0, 8, 0], sizes = [18, 16, 32], strides = [1, 1, 1]} : vector<18x25x32xf32> to vector<18x16x32xf32>
    %18 = vector.extract_strided_slice %12 {offsets = [0, 9, 0], sizes = [18, 16, 32], strides = [1, 1, 1]} : vector<18x25x32xf32> to vector<18x16x32xf32>
    %19 = tpu.concatenate %13, %14, %15, %16, %17, %18 in 2 : vector<18x16x4xf32>, vector<18x16x4xf32>, vector<18x16x4xf32>, vector<18x16x32xf32>, vector<18x16x32xf32>, vector<18x16x32xf32> -> vector<18x16x108xf32>
    %20 = arith.truncf %19 : vector<18x16x108xf32> to vector<18x16x108xbf16>
    %21 = vector.extract_strided_slice %20 {offsets = [0, 0, 0], sizes = [16, 16, 108], strides = [1, 1, 1]} : vector<18x16x108xbf16> to vector<16x16x108xbf16>
    %22 = vector.shape_cast %21 : vector<16x16x108xbf16> to vector<256x108xbf16>
    %c0_11 = arith.constant 0 : index
    %c0_12 = arith.constant 0 : index
    %c0_13 = arith.constant 0 : index
    %23 = vector.load %arg3[%c0_11, %c0_12, %c0_13] : memref<3x108x128xbf16, #tpu.memory_space<vmem>>, vector<1x108x128xbf16>
    %24 = vector.shape_cast %23 : vector<1x108x128xbf16> to vector<108x128xbf16>
    %cst = arith.constant dense<0.000000e+00> : vector<256x128xf32>
    %25 = tpu.matmul %22, %24, %cst {dimension_numbers = #tpu.dot_dimension_numbers<[1], [0], [0], [1], [0, 0, 1, 1], [], []>} : vector<256x108xbf16>, vector<108x128xbf16>, vector<256x128xf32> -> vector<256x128xf32>
    %26 = vector.extract_strided_slice %20 {offsets = [1, 0, 0], sizes = [16, 16, 108], strides = [1, 1, 1]} : vector<18x16x108xbf16> to vector<16x16x108xbf16>
    %27 = vector.shape_cast %26 : vector<16x16x108xbf16> to vector<256x108xbf16>
    %c1 = arith.constant 1 : index
    %c0_14 = arith.constant 0 : index
    %c0_15 = arith.constant 0 : index
    %28 = vector.load %arg3[%c1, %c0_14, %c0_15] : memref<3x108x128xbf16, #tpu.memory_space<vmem>>, vector<1x108x128xbf16>
    %29 = vector.shape_cast %28 : vector<1x108x128xbf16> to vector<108x128xbf16>
    %cst_16 = arith.constant dense<0.000000e+00> : vector<256x128xf32>
    %30 = tpu.matmul %27, %29, %cst_16 {dimension_numbers = #tpu.dot_dimension_numbers<[1], [0], [0], [1], [0, 0, 1, 1], [], []>} : vector<256x108xbf16>, vector<108x128xbf16>, vector<256x128xf32> -> vector<256x128xf32>
    %31 = arith.addf %25, %30 : vector<256x128xf32>
    %32 = vector.extract_strided_slice %20 {offsets = [2, 0, 0], sizes = [16, 16, 108], strides = [1, 1, 1]} : vector<18x16x108xbf16> to vector<16x16x108xbf16>
    %33 = vector.shape_cast %32 : vector<16x16x108xbf16> to vector<256x108xbf16>
    %c2 = arith.constant 2 : index
    %c0_17 = arith.constant 0 : index
    %c0_18 = arith.constant 0 : index
    %34 = vector.load %arg3[%c2, %c0_17, %c0_18] : memref<3x108x128xbf16, #tpu.memory_space<vmem>>, vector<1x108x128xbf16>
    %35 = vector.shape_cast %34 : vector<1x108x128xbf16> to vector<108x128xbf16>
    %cst_19 = arith.constant dense<0.000000e+00> : vector<256x128xf32>
    %36 = tpu.matmul %33, %35, %cst_19 {dimension_numbers = #tpu.dot_dimension_numbers<[1], [0], [0], [1], [0, 0, 1, 1], [], []>} : vector<256x108xbf16>, vector<108x128xbf16>, vector<256x128xf32> -> vector<256x128xf32>
    %37 = arith.addf %31, %36 : vector<256x128xf32>
    %38 = vector.broadcast %3 : vector<1x128xf32> to vector<256x128xf32>
    %39 = arith.addf %37, %38 : vector<256x128xf32>
    %cst_20 = arith.constant 2.000000e+00 : f32
    %40 = vector.broadcast %cst_20 : f32 to vector<256x128xf32>
    %41 = arith.mulf %40, %39 : vector<256x128xf32>
    %42 = arith.select %6, %41, %39 : vector<256x128xi1>, vector<256x128xf32>
    %43 = arith.negf %42 : vector<256x128xf32>
    %44 = math.exp %43 : vector<256x128xf32>
    %cst_21 = arith.constant 1.000000e+00 : f32
    %45 = vector.broadcast %cst_21 : f32 to vector<256x128xf32>
    %46 = arith.addf %45, %44 : vector<256x128xf32>
    %47 = arith.divf %45, %46 : vector<256x128xf32>
    %cst_22 = arith.constant 2.000000e+00 : f32
    %48 = vector.broadcast %cst_22 : f32 to vector<256x128xf32>
    %49 = arith.mulf %48, %47 : vector<256x128xf32>
    %cst_23 = arith.constant 1.000000e+00 : f32
    %50 = vector.broadcast %cst_23 : f32 to vector<256x128xf32>
    %51 = arith.subf %49, %50 : vector<256x128xf32>
    %52 = arith.select %6, %51, %47 : vector<256x128xi1>, vector<256x128xf32>
    %53 = vector.extract_strided_slice %52 {offsets = [0, 0], sizes = [256, 32], strides = [1, 1]} : vector<256x128xf32> to vector<256x32xf32>
    %54 = vector.extract_strided_slice %52 {offsets = [0, 32], sizes = [256, 32], strides = [1, 1]} : vector<256x128xf32> to vector<256x32xf32>
    %55 = vector.extract_strided_slice %52 {offsets = [0, 64], sizes = [256, 32], strides = [1, 1]} : vector<256x128xf32> to vector<256x32xf32>
    %56 = vector.extract_strided_slice %52 {offsets = [0, 96], sizes = [256, 32], strides = [1, 1]} : vector<256x128xf32> to vector<256x32xf32>
    %c0_24 = arith.constant 0 : index
    %c0_25 = arith.constant 0 : index
    %c0_26 = arith.constant 0 : index
    %57 = vector.load %arg8[%c0_24, %c0_25, %c0_26] : memref<1x256x32xf32, #tpu.memory_space<vmem>>, vector<1x256x32xf32>
    %58 = vector.shape_cast %57 : vector<1x256x32xf32> to vector<256x32xf32>
    %59 = arith.mulf %54, %58 : vector<256x32xf32>
    %60 = arith.mulf %53, %56 : vector<256x32xf32>
    %61 = arith.addf %59, %60 : vector<256x32xf32>
    %62 = math.tanh %61 : vector<256x32xf32>
    %63 = arith.mulf %55, %62 : vector<256x32xf32>
    %c0_27 = arith.constant 0 : index
    %c0_28 = arith.constant 0 : index
    %c0_29 = arith.constant 0 : index
    %64 = vector.load %arg8[%c0_27, %c0_28, %c0_29] : memref<1x256x32xf32, #tpu.memory_space<vmem>>, vector<1x256x32xf32>
    %65 = vector.shape_cast %64 : vector<1x256x32xf32> to vector<256x32xf32>
    %66 = vector.shape_cast %61 : vector<256x32xf32> to vector<1x256x32xf32>
    tpu.vector_store %arg8[%c0_27, %c0_28, %c0_29], %66 {strides = array<i32>} : memref<1x256x32xf32, #tpu.memory_space<vmem>>, vector<1x256x32xf32>,
    %67 = vector.shape_cast %63 : vector<256x32xf32> to vector<16x16x32xf32>
    %c0_30 = arith.constant 0 : index
    %c1_31 = arith.constant 1 : index
    %c8 = arith.constant 8 : index
    %c0_32 = arith.constant 0 : index
    %68 = vector.load %arg7[%c0_30, %c1_31, %c8, %c0_32] : memref<1x18x25x32xf32, #tpu.memory_space<vmem>>, vector<1x16x16x32xf32>
    %69 = vector.shape_cast %68 : vector<1x16x16x32xf32> to vector<16x16x32xf32>
    %70 = vector.shape_cast %67 : vector<16x16x32xf32> to vector<1x16x16x32xf32>
    tpu.vector_store %arg7[%c0_30, %c1_31, %c8, %c0_32], %70 {strides = array<i32>} : memref<1x18x25x32xf32, #tpu.memory_space<vmem>>, vector<1x16x16x32xf32>,
    %71 = arith.truncf %67 : vector<16x16x32xf32> to vector<16x16x32xbf16>
    %c0_33 = arith.constant 0 : index
    %c0_34 = arith.constant 0 : index
    %c0_35 = arith.constant 0 : index
    %c0_36 = arith.constant 0 : index
    %c0_37 = arith.constant 0 : index
    %72 = vector.load %arg5[%c0_33, %c0_34, %c0_35, %c0_36, %c0_37] : memref<1x1x16x16x32xbf16, #tpu.memory_space<vmem>>, vector<1x1x16x16x32xbf16>
    %73 = vector.shape_cast %72 : vector<1x1x16x16x32xbf16> to vector<16x16x32xbf16>
    %74 = vector.shape_cast %71 : vector<16x16x32xbf16> to vector<1x1x16x16x32xbf16>
    tpu.vector_store %arg5[%c0_33, %c0_34, %c0_35, %c0_36, %c0_37], %74 {strides = array<i32>} : memref<1x1x16x16x32xbf16, #tpu.memory_space<vmem>>, vector<1x1x16x16x32xbf16>,
    %75 = arith.extui %7 : i1 to i32
    %c0_i32_38 = arith.constant 0 : i32
    %76 = arith.cmpi ne, %75, %c0_i32_38 : i32
    scf.if %76 {
      %77 = vector.shape_cast %61 : vector<256x32xf32> to vector<16x16x32xf32>
      %c0_39 = arith.constant 0 : index
      %c0_40 = arith.constant 0 : index
      %c0_41 = arith.constant 0 : index
      %c0_42 = arith.constant 0 : index
      %78 = vector.load %arg6[%c0_39, %c0_40, %c0_41, %c0_42] : memref<1x16x16x32xf32, #tpu.memory_space<vmem>>, vector<1x16x16x32xf32>
      %79 = vector.shape_cast %78 : vector<1x16x16x32xf32> to vector<16x16x32xf32>
      %80 = vector.shape_cast %77 : vector<16x16x32xf32> to vector<1x16x16x32xf32>
      tpu.vector_store %arg6[%c0_39, %c0_40, %c0_41, %c0_42], %80 {strides = array<i32>} : memref<1x16x16x32xf32, #tpu.memory_space<vmem>>, vector<1x16x16x32xf32>,
    } else {
    }
    return
  }
  func.func @transform_0(%arg0: i32, %arg1: i32) -> (i32, i32, i32, i32, i32) {
    %c0_i32 = arith.constant 0 : i32
    %c0_i32_0 = arith.constant 0 : i32
    %c0_i32_1 = arith.constant 0 : i32
    %c0_i32_2 = arith.constant 0 : i32
    return %arg0, %arg1, %c0_i32, %c0_i32_0, %c0_i32_1 : i32, i32, i32, i32, i32
  }
  func.func @transform_1(%arg0: i32, %arg1: i32) -> (i32, i32, i32) {
    %c0_i32 = arith.constant 0 : i32
    %c0_i32_0 = arith.constant 0 : i32
    %c0_i32_1 = arith.constant 0 : i32
    %c0_i32_2 = arith.constant 0 : i32
    return %c0_i32, %c0_i32_0, %c0_i32_1 : i32, i32, i32
  }
  func.func @transform_2(%arg0: i32, %arg1: i32) -> (i32, i32) {
    %c0_i32 = arith.constant 0 : i32
    %c0_i32_0 = arith.constant 0 : i32
    %c0_i32_1 = arith.constant 0 : i32
    return %c0_i32, %c0_i32_0 : i32, i32
  }
  func.func @transform_3(%arg0: i32, %arg1: i32) -> (i32, i32, i32, i32, i32) {
    %c0_i32 = arith.constant 0 : i32
    %c0_i32_0 = arith.constant 0 : i32
    %c0_i32_1 = arith.constant 0 : i32
    %c0_i32_2 = arith.constant 0 : i32
    return %arg0, %arg1, %c0_i32, %c0_i32_0, %c0_i32_1 : i32, i32, i32, i32, i32
  }
  func.func @transform_4(%arg0: i32, %arg1: i32) -> (i32, i32, i32, i32) {
    %c0_i32 = arith.constant 0 : i32
    %c0_i32_0 = arith.constant 0 : i32
    %c0_i32_1 = arith.constant 0 : i32
    %c0_i32_2 = arith.constant 0 : i32
    return %arg0, %c0_i32, %c0_i32_0, %c0_i32_1 : i32, i32, i32, i32
  }
}

</mosaic_0001>

<bundles_post_ra>
// kernel: _convlstm_layer.1
= control target key start
LH: loop header
LB: loop body
LE: loop exit
PB: predicated region body
PF: predicated region fallthrough
CT: control target
= control target key end

     0   :  { %10 = vsyncpa [#allocation5], 0  ;;  %s8708_s0 = inlined_call_operand.vmem [shape: bf16[2,8,18,18,4], index: 0, kind: input, shape index: {}]   ;;  %s8709_s1 = inlined_call_operand.vmem [shape: bf16[3,108,128], index: 1, kind: input, shape index: {}]   ;;  %s8710_s2 = inlined_call_operand.vmem [shape: f32[1,128], index: 2, kind: input, shape index: {}]   ;;  %s8711_s3 = inlined_call_operand.hbm [shape: bf16[2,8,16,16,32], index: 3, kind: output, shape index: {0}]   ;;  %s8712_s4 = inlined_call_operand.hbm [shape: f32[2,16,16,32], index: 4, kind: output, shape index: {1}]  }
   0x1   :  { %12 = vsyncpa [#allocation5 + $0x1], 0 }
   0x2   :  { %13 = vsyncpa [#allocation7], 0 }
   0x3   :  { %15 = vsyncpa [#allocation7 + $0x1], 0  ;;  %s5889_s15 = smov 0   ;;  %s5891_s16 = smov 0  }
   0x4   :  { %s5893_s17 = smov 0   ;;  %s5895_s18 = smov 0  }
   0x5   :  { %s5897_s19 = smov 0   ;;  %s5899_s20 = smov 0  }
   0x6   :  { %s5901_s21 = smov 0   ;;  %s5903_s22 = smov 0  }
   0x7   :  { %s5905_s23 = smov 0   ;;  %s5907_s24 = smov 0  }
   0x8   :  { %s5909_s25 = smov 0  }
   0x9 LB: > { %8776 = sst [smem:[#allocation10_spill]] %s5818_s17  ;;  %s4339_s26 = sadd.s32 4294967295, %s5850_s25   ;;  %s5850_s25 = sphi %s5909_s25, %s21_s25   ;;  %s5846_s24 = sphi %s5907_s24, %s8902_s24   ;;  %s5842_s23 = sphi %s5905_s23, %s8901_s23   ;;  %s5838_s22 = sphi %s5903_s22, %s8900_s22   ;;  %s5834_s21 = sphi %s5901_s21, %s8899_s21   ;;  %s5830_s20 = sphi %s5899_s20, %s8898_s20   ;;  %s5826_s19 = sphi %s5897_s19, %s8906_s19   ;;  %s5822_s18 = sphi %s5895_s18, %s8905_s18   ;;  %s5818_s17 = sphi %s5893_s17, %s8896_s17   ;;  %s5814_s16 = sphi %s5891_s16, %s8904_s16   ;;  %s5810_s15 = sphi %s5889_s15, %s8903_s15  }
   0xa   : > { %8777 = sst [smem:[#allocation11_spill]] %s5830_s20  ;;  %s4340_s27 = sadd.s32 4294967294, %s5850_s25  }
   0xb   : > { %8778 = sst [smem:[#allocation12_spill]] %s5842_s23  ;;  %s30_s28 = sadd.s32 1, %s5842_s23 }
   0xc   : > { %8779 = sst [smem:[#allocation13_spill]] %s5846_s24  ;;  %s33_s29 = sadd.s32 1, %s5846_s24 }
   0xd   : > { %p31_p0 = scmp.ge.s32.totalorder %s30_s28, 8  ;;  %s112_s30 = sadd.s32 1, %s5830_s20 }
   0xe   : > { %p122_p1 = scmp.ne.s32.totalorder %s5830_s20, %s5826_s19  ;;  %p5951_p2 = scmp.eq.s32.totalorder %s4339_s26, 15 }
   0xf   : > { %s8908_s28 = smov (%p31_p0, %s30_s28), 0  ;;  %s8910_s29 = smov (!%p31_p0, %s33_s29), %s5846_s24 }
  0x10   : > { %8781 = sst [smem:[#allocation14_spill]] %s8908_s28  ;;  %s108_s6 = ssub.s32 %s5842_s23, %s8908_s28 }
  0x11   : > { %p5962_p3 = por %p5951_p2, %p122_p1  ;;  %p35_p4 = scmp.ge.s32.totalorder %s8910_s29, 2 }
  0x12   : > { %p128_p5 = scmp.ne.s32.totalorder %s5826_s19, %s5822_s18  ;;  %p5968_p6 = scmp.eq.s32.totalorder %s4340_s27, 15 }
  0x13   : > { %s138_s9 = sadd.s32 1, %s5818_s17  ;;  %s8912_s29 = smov (%p35_p4, %s8910_s29), 0 }
  0x14   : > { %8784 = sst [smem:[#allocation15_spill]] %s8912_s29  ;;  %p5977_p7 = por %p5968_p6, %p128_p5 }
  0x15   : > { %p148_p8 = scmp.ne.s32.totalorder %s5818_s17, %s5814_s16  ;;  %s107_s11 = ssub.s32 %s5846_s24, %s8912_s29 }
  0x16   : > { %p154_p9 = scmp.ne.s32.totalorder %s5814_s16, %s5810_s15  ;;  %s109_s12 = sor.u32 %s108_s6, %s107_s11 }
  0x17   : > { %p136_p10 = scmp.eq.s32.totalorder %s107_s11, 0  ;;  %p110_p11 = scmp.eq.s32.totalorder %s109_s12, 0 }
  0x18   : > { %p5989_p12 = por %p148_p8, %p5951_p2  ;;  %p6001_p13 = por %p154_p9, %p5968_p6 }
  0x19   : > { %s5994_s14 = scalar_select %p136_p10, %s5818_s17, %s138_s9  }
  0x1a   : > { %s5997_s26 = scalar_select %p110_p11, %s5830_s20, %s112_s30  }
  0x1b   : > { %8787 = sst [smem:[#allocation16_spill]] %s5994_s14  ;;  %p4343_p0 = scmp.ge.s32.totalorder %s5850_s25, 1 }
  0x1c   : > { %8788 = sst [smem:[#allocation17_spill]] %s5997_s26  ;;  %p191_p1 = scmp.lt.s32.totalorder %s5850_s25, 17 }
  0x1e   : > { %p192_p4 = pnand %p4343_p0, %p191_p1 }
  0x20   : > { %195 = sbr.rel (%p192_p4) target bundleno = 1270 (0x4f6), region = 32 }
  0x27   : > { %s216_s5 = sand.u32 1, %s5826_s19   ;;  %s8774_s30 = sand.u32 1, %s5814_s16  }
  0x28   : > { %s4344_s6 = sshll.u32 %s216_s5, 7  ;;  %s4345_s8 = sshll.u32 %s8774_s30, 8 }
  0x29   : > { %p226_p2 = scmp.lt.s32.totalorder %s5838_s22, 1  ;;  %p228_p5 = scmp.lt.s32.totalorder %s5834_s21, 7 }
  0x2a   : > { %s6022_s14 = scalar_lea.vmem [#allocation4], %s4344_s6  ;;  %s6024_s17 = scalar_lea.vmem [#allocation6], %s4345_s8 }
  0x2b   : > { %s227_s9 = scalar_select %p226_p2, %s5838_s22, 1 }
  0x2c   : > { %s229_s11 = scalar_select %p228_p5, %s5834_s21, 7 }
  0x2d   : > { %s4919_s12 = smul.u32 432, %s227_s9  ;;  %p4347_p6 = scmp.ne.s32.totalorder %s5834_s21, 0 }
  0x2e   : > { %s4918_s29 = smul.u32 54, %s229_s11  ;;  %vm240_vm0 = vcmask (!%p4347_p6), 261120   ;;  %vm244_vm1 = vcmask (!%p4347_p6), 253952   ;;  %v5852_v0 = vmov (!%p4347_p6), 0.0  }
  0x2f   : > { %239 = sbr.rel (%p4347_p6) target bundleno = 99 (0x63), region = 36  ;;  %241 = vst.msk [vmem:[#allocation2] sm:$0xff] (!%p4347_p6), %vm240_vm0, %v5852_v0  ;;  %242 = vst.msk [vmem:[#allocation2 + $0x8] sm:$0xff] (!%p4347_p6), %vm240_vm0, %v5852_v0 }
  0x30   : > { %s232_s28 = sadd.s32 %s4919_s12, %s4918_s29  ;;  %243 = vst.msk [vmem:[#allocation2 + $0x10] sm:$0xff] (!%p4347_p6), %vm240_vm0, %v5852_v0  ;;  %246 = vst.msk [vmem:[#allocation2 + $0x20] sm:$0xff] (!%p4347_p6), %vm240_vm0, %v5852_v0 }
  0x31   : > { %s4346_s24 = sshll.u32 %s232_s28, 2  ;;  %247 = vst.msk [vmem:[#allocation2 + $0x28] sm:$0xff] (!%p4347_p6), %vm240_vm0, %v5852_v0  ;;  %248 = vst.msk [vmem:[#allocation2 + $0x30] sm:$0xff] (!%p4347_p6), %vm240_vm0, %v5852_v0 }
  0x32   : > { %s6020_s20 = scalar_lea.vmem %s8708_s0, %s4346_s24  ;;  %250 = vst.msk [vmem:[#allocation2 + $0x40] sm:$0xff] (!%p4347_p6), %vm240_vm0, %v5852_v0  ;;  %251 = vst.msk [vmem:[#allocation2 + $0x48] sm:$0xff] (!%p4347_p6), %vm240_vm0, %v5852_v0 }
  0x33   : > { %252 = vst.msk [vmem:[#allocation2 + $0x50] sm:$0xff] (!%p4347_p6), %vm240_vm0, %v5852_v0  ;;  %254 = vst.msk [vmem:[#allocation2 + $0x60] sm:$0xff] (!%p4347_p6), %vm240_vm0, %v5852_v0 }
  0x34   : > { %255 = vst.msk [vmem:[#allocation2 + $0x68] sm:$0xff] (!%p4347_p6), %vm240_vm0, %v5852_v0  ;;  %256 = vst.msk [vmem:[#allocation2 + $0x70] sm:$0xff] (!%p4347_p6), %vm240_vm0, %v5852_v0 }
  0x35   : > { %258 = vst.msk [vmem:[#allocation2 + $0x80] sm:$0xff] (!%p4347_p6), %vm240_vm0, %v5852_v0  ;;  %259 = vst.msk [vmem:[#allocation2 + $0x88] sm:$0xff] (!%p4347_p6), %vm240_vm0, %v5852_v0 }
  0x36   : > { %260 = vst.msk [vmem:[#allocation2 + $0x90] sm:$0xff] %vm240_vm0, %v5852_v0  ;;  %262 = vst.msk [vmem:[#allocation2 + $0xa0] sm:$0xff] %vm240_vm0, %v5852_v0 }
  0x37   : > { %263 = vst.msk [vmem:[#allocation2 + $0xa8] sm:$0xff] %vm240_vm0, %v5852_v0  ;;  %264 = vst.msk [vmem:[#allocation2 + $0xb0] sm:$0xff] %vm240_vm0, %v5852_v0 }
  0x38   : > { %266 = vst.msk [vmem:[#allocation2 + $0xc0] sm:$0xff] %vm240_vm0, %v5852_v0  ;;  %267 = vst.msk [vmem:[#allocation2 + $0xc8] sm:$0xff] %vm240_vm0, %v5852_v0 }
  0x39   : > { %268 = vst.msk [vmem:[#allocation2 + $0xd0] sm:$0xff] %vm240_vm0, %v5852_v0  ;;  %270 = vst.msk [vmem:[#allocation2 + $0xe0] sm:$0xff] %vm240_vm0, %v5852_v0 }
  0x3a   : > { %271 = vst.msk [vmem:[#allocation2 + $0xe8] sm:$0xff] %vm240_vm0, %v5852_v0  ;;  %272 = vst.msk [vmem:[#allocation2 + $0xf0] sm:$0xff] %vm240_vm0, %v5852_v0 }
  0x3b   : > { %274 = vst.msk [vmem:[#allocation2 + $0x100] sm:$0xff] %vm240_vm0, %v5852_v0  ;;  %275 = vst.msk [vmem:[#allocation2 + $0x108] sm:$0xff] %vm240_vm0, %v5852_v0 }
  0x3c   : > { %276 = vst.msk [vmem:[#allocation2 + $0x110] sm:$0xff] %vm240_vm0, %v5852_v0  ;;  %278 = vst.msk [vmem:[#allocation2 + $0x120] sm:$0xff] %vm240_vm0, %v5852_v0 }
  0x3d   : > { %279 = vst.msk [vmem:[#allocation2 + $0x128] sm:$0xff] %vm240_vm0, %v5852_v0  ;;  %280 = vst.msk [vmem:[#allocation2 + $0x130] sm:$0xff] %vm240_vm0, %v5852_v0 }
  0x3e   : > { %282 = vst.msk [vmem:[#allocation2 + $0x140] sm:$0xff] %vm240_vm0, %v5852_v0  ;;  %283 = vst.msk [vmem:[#allocation2 + $0x148] sm:$0xff] %vm240_vm0, %v5852_v0 }
  0x3f   : > { %284 = vst.msk [vmem:[#allocation2 + $0x150] sm:$0xff] %vm240_vm0, %v5852_v0  ;;  %286 = vst.msk [vmem:[#allocation2 + $0x160] sm:$0xff] %vm240_vm0, %v5852_v0 }
  0x40   : > { %287 = vst.msk [vmem:[#allocation2 + $0x168] sm:$0xff] %vm240_vm0, %v5852_v0  ;;  %288 = vst.msk [vmem:[#allocation2 + $0x170] sm:$0xff] %vm240_vm0, %v5852_v0 }
  0x41   : > { %290 = vst.msk [vmem:[#allocation2 + $0x180] sm:$0xff] %vm240_vm0, %v5852_v0  ;;  %291 = vst.msk [vmem:[#allocation2 + $0x188] sm:$0xff] %vm240_vm0, %v5852_v0 }
  0x42   : > { %292 = vst.msk [vmem:[#allocation2 + $0x190] sm:$0xff] %vm240_vm0, %v5852_v0  ;;  %294 = vst.msk [vmem:[#allocation2 + $0x1a0] sm:$0xff] %vm240_vm0, %v5852_v0 }
  0x43   : > { %295 = vst.msk [vmem:[#allocation2 + $0x1a8] sm:$0xff] %vm240_vm0, %v5852_v0  ;;  %296 = vst.msk [vmem:[#allocation2 + $0x1b0] sm:$0xff] %vm240_vm0, %v5852_v0 }
  0x44   : > { %298 = vst.msk [vmem:[#allocation2 + $0x1c0] sm:$0xff] %vm240_vm0, %v5852_v0  ;;  %299 = vst.msk [vmem:[#allocation2 + $0x1c8] sm:$0xff] %vm240_vm0, %v5852_v0 }
  0x45   : > { %300 = vst.msk [vmem:[#allocation2 + $0x1d0] sm:$0xff] %vm240_vm0, %v5852_v0  ;;  %302 = vst.msk [vmem:[#allocation2 + $0x1e0] sm:$0xff] %vm240_vm0, %v5852_v0 }
  0x46   : > { %303 = vst.msk [vmem:[#allocation2 + $0x1e8] sm:$0xff] %vm240_vm0, %v5852_v0  ;;  %304 = vst.msk [vmem:[#allocation2 + $0x1f0] sm:$0xff] %vm240_vm0, %v5852_v0 }
  0x47   : > { %306 = vst.msk [vmem:[#allocation2 + $0x200] sm:$0xff] %vm240_vm0, %v5852_v0  ;;  %307 = vst.msk [vmem:[#allocation2 + $0x208] sm:$0xff] %vm240_vm0, %v5852_v0 }
  0x48   : > { %308 = vst.msk [vmem:[#allocation2 + $0x210] sm:$0xff] %vm240_vm0, %v5852_v0  ;;  %310 = vst.msk [vmem:[#allocation2 + $0x220] sm:$0xff] %vm240_vm0, %v5852_v0 }
  0x49   : > { %311 = vst.msk [vmem:[#allocation2 + $0x228] sm:$0xff] %vm240_vm0, %v5852_v0  ;;  %312 = vst.msk [vmem:[#allocation2 + $0x230] sm:$0xff] %vm240_vm0, %v5852_v0 }
  0x4a   : > { %314 = vst.msk [vmem:[#allocation3] sm:$0xff] %vm240_vm0, %v5852_v0  ;;  %315 = vst.msk [vmem:[#allocation3 + $0x8] sm:$0xff] %vm240_vm0, %v5852_v0 }
  0x4b   : > { %316 = vst.msk [vmem:[#allocation3 + $0x10] sm:$0xff] %vm240_vm0, %v5852_v0  ;;  %317 = vst.msk [vmem:[#allocation3 + $0x18] sm:$0xff] %vm240_vm0, %v5852_v0 }
  0x4c   : > { %318 = vst.msk [vmem:[#allocation3 + $0x20] sm:$0xff] %vm240_vm0, %v5852_v0  ;;  %319 = vst.msk [vmem:[#allocation3 + $0x28] sm:$0xff] %vm240_vm0, %v5852_v0 }
  0x4d   : > { %320 = vst.msk [vmem:[#allocation3 + $0x30] sm:$0xff] %vm240_vm0, %v5852_v0  ;;  %321 = vst.msk [vmem:[#allocation3 + $0x38] sm:$0xff] %vm240_vm0, %v5852_v0 }
  0x4e   : > { %322 = vst.msk [vmem:[#allocation3 + $0x40] sm:$0xff] %vm240_vm0, %v5852_v0  ;;  %323 = vst.msk [vmem:[#allocation3 + $0x48] sm:$0xff] %vm240_vm0, %v5852_v0 }
  0x4f   : > { %324 = vst.msk [vmem:[#allocation3 + $0x50] sm:$0xff] %vm240_vm0, %v5852_v0  ;;  %325 = vst.msk [vmem:[#allocation3 + $0x58] sm:$0xff] %vm240_vm0, %v5852_v0 }
  0x50   : > { %326 = vst.msk [vmem:[#allocation3 + $0x60] sm:$0xff] %vm240_vm0, %v5852_v0  ;;  %327 = vst.msk [vmem:[#allocation3 + $0x68] sm:$0xff] %vm240_vm0, %v5852_v0 }
  0x51   : > { %328 = vst.msk [vmem:[#allocation3 + $0x70] sm:$0xff] %vm240_vm0, %v5852_v0  ;;  %329 = vst.msk [vmem:[#allocation3 + $0x78] sm:$0xff] %vm240_vm0, %v5852_v0 }
  0x52   : > { %330 = vst.msk [vmem:[#allocation3 + $0x80] sm:$0xff] %vm240_vm0, %v5852_v0  ;;  %331 = vst.msk [vmem:[#allocation3 + $0x88] sm:$0xff] %vm240_vm0, %v5852_v0 }
  0x53   : > { %332 = vst.msk [vmem:[#allocation3 + $0x90] sm:$0xff] %vm240_vm0, %v5852_v0  ;;  %333 = vst.msk [vmem:[#allocation3 + $0x98] sm:$0xff] %vm240_vm0, %v5852_v0 }
  0x54   : > { %334 = vst.msk [vmem:[#allocation3 + $0xa0] sm:$0xff] %vm240_vm0, %v5852_v0  ;;  %335 = vst.msk [vmem:[#allocation3 + $0xa8] sm:$0xff] %vm240_vm0, %v5852_v0 }
  0x55   : > { %336 = vst.msk [vmem:[#allocation3 + $0xb0] sm:$0xff] %vm240_vm0, %v5852_v0  ;;  %337 = vst.msk [vmem:[#allocation3 + $0xb8] sm:$0xff] %vm240_vm0, %v5852_v0 }
  0x56   : > { %338 = vst.msk [vmem:[#allocation3 + $0xc0] sm:$0xff] %vm240_vm0, %v5852_v0  ;;  %339 = vst.msk [vmem:[#allocation3 + $0xc8] sm:$0xff] %vm240_vm0, %v5852_v0 }
  0x57   : > { %340 = vst.msk [vmem:[#allocation3 + $0xd0] sm:$0xff] %vm240_vm0, %v5852_v0  ;;  %341 = vst.msk [vmem:[#allocation3 + $0xd8] sm:$0xff] %vm240_vm0, %v5852_v0 }
  0x58   : > { %342 = vst.msk [vmem:[#allocation3 + $0xe0] sm:$0xff] %vm240_vm0, %v5852_v0  ;;  %343 = vst.msk [vmem:[#allocation3 + $0xe8] sm:$0xff] %vm240_vm0, %v5852_v0 }
  0x59   : > { %344 = vst.msk [vmem:[#allocation3 + $0xf0] sm:$0xff] %vm240_vm0, %v5852_v0  ;;  %345 = vst.msk [vmem:[#allocation3 + $0xf8] sm:$0xff] %vm240_vm0, %v5852_v0 }
  0x5a   : > { %245 = vst.msk [vmem:[#allocation2 + $0x18] sm:$0x1] %vm244_vm1, %v5852_v0  ;;  %249 = vst.msk [vmem:[#allocation2 + $0x38] sm:$0x1] %vm244_vm1, %v5852_v0 }
  0x5b   : > { %253 = vst.msk [vmem:[#allocation2 + $0x58] sm:$0x1] %vm244_vm1, %v5852_v0  ;;  %257 = vst.msk [vmem:[#allocation2 + $0x78] sm:$0x1] %vm244_vm1, %v5852_v0 }
  0x5c   : > { %261 = vst.msk [vmem:[#allocation2 + $0x98] sm:$0x1] %vm244_vm1, %v5852_v0  ;;  %265 = vst.msk [vmem:[#allocation2 + $0xb8] sm:$0x1] %vm244_vm1, %v5852_v0 }
  0x5d   : > { %269 = vst.msk [vmem:[#allocation2 + $0xd8] sm:$0x1] %vm244_vm1, %v5852_v0  ;;  %273 = vst.msk [vmem:[#allocation2 + $0xf8] sm:$0x1] %vm244_vm1, %v5852_v0 }
  0x5e   : > { %277 = vst.msk [vmem:[#allocation2 + $0x118] sm:$0x1] %vm244_vm1, %v5852_v0  ;;  %281 = vst.msk [vmem:[#allocation2 + $0x138] sm:$0x1] %vm244_vm1, %v5852_v0 }
  0x5f   : > { %285 = vst.msk [vmem:[#allocation2 + $0x158] sm:$0x1] %vm244_vm1, %v5852_v0  ;;  %289 = vst.msk [vmem:[#allocation2 + $0x178] sm:$0x1] %vm244_vm1, %v5852_v0 }
  0x60   : > { %293 = vst.msk [vmem:[#allocation2 + $0x198] sm:$0x1] %vm244_vm1, %v5852_v0  ;;  %297 = vst.msk [vmem:[#allocation2 + $0x1b8] sm:$0x1] %vm244_vm1, %v5852_v0 }
  0x61   : > { %301 = vst.msk [vmem:[#allocation2 + $0x1d8] sm:$0x1] %vm244_vm1, %v5852_v0  ;;  %305 = vst.msk [vmem:[#allocation2 + $0x1f8] sm:$0x1] %vm244_vm1, %v5852_v0 }
  0x62   : > { %309 = vst.msk [vmem:[#allocation2 + $0x218] sm:$0x1] %vm244_vm1, %v5852_v0  ;;  %313 = vst.msk [vmem:[#allocation2 + $0x238] sm:$0x1] %vm244_vm1, %v5852_v0 }
  0x63 PF: > { %v4621_v1 = vld [vmem:[%s6020_s20 + $0x18] sm:$0xff]   ;;  %v6237_v2 = vld [vmem:[%s6020_s20 + $0x20] sm:$0x1]  ;;  %vm585_vm2 = vcmask 1046528   ;;  %v6248_v8 = vld [vmem:[%s6020_s20 + $0x8] sm:$0x1] }
  0x64   : > { %v4586_v3 = vld [vmem:[%s6020_s20] sm:$0xff]   ;;  %v6240_v4 = vunpack.c.l.bf16 %v4621_v1  ;;  %v6242_v5 = vunpack.c.h.bf16 %v4621_v1  ;;  %v8728_v6 = vunpack.c.l.bf16 %v6237_v2  ;;  %v6252_v10 = vld [vmem:[%s6020_s20 + $0x2c] sm:$0x1]  ;;  %v8731_v12 = vunpack.c.l.bf16 %v6248_v8  ;;  %v6273_v24 = vld [vmem:[%s6020_s20 + $0x14] sm:$0x1]  ;;  %s5853_s23 = smov 4  }
  0x65   : > { %v6245_v7 = vunpack.c.l.bf16 %v4586_v3  ;;  %v360_v9 = vld [vmem:[%s6020_s20 + $0x24] sm:$0xff]   ;;  %v6254_v11 = vunpack.c.h.bf16 %v4586_v3  ;;  %v354_v15 = vld [vmem:[%s6020_s20 + $0xc] sm:$0xff]   ;;  %v8729_v22 = vunpack.c.l.bf16 %v6252_v10  ;;  %v366_v29 = vld [vmem:[%s6020_s20 + $0x3c] sm:$0xff]   ;;  %v8732_v38 = vunpack.c.l.bf16 %v6273_v24  ;;  %s5855_s6 = smov 12   ;;  %s5856_s24 = smov 44  }
  0x66   : > { %v6257_v13 = vunpack.c.l.bf16 %v360_v9  ;;  %v6259_v14 = vunpack.c.h.bf16 %v360_v9  ;;  %v596_v16 = vrot.slane %v6240_v4, 1  ;;  %v597_v17 = vrot.slane %v6242_v5, 1  ;;  %v6286_v34 = vld [vmem:[%s6020_s20 + $0x44] sm:$0x1]  ;;  %v4622_v39 = vld [vmem:[%s6020_s20 + $0x30] sm:$0xff]   ;;  %v4623_v59 = vld [vmem:[%s6020_s20 + $0x48] sm:$0xff]  }
  0x67   : > { %v599_v18 = vrot.slane %v8728_v6, 1  ;;  %v586_v19 = vrot.slane %v6245_v7, 1  ;;  %v587_v20 = vrot.slane %v6254_v11, 1  ;;  %v589_v21 = vrot.slane %v8731_v12, 1  ;;  %v6301_v44 = vld [vmem:[%s6020_s20 + $0x38] sm:$0x1] }
  0x68   : > { %v601_v23 = vrot.slane %v6257_v13, 1  ;;  %v598_v25 = vsel %vm585_vm2, %v596_v16, %v597_v17  ;;  %v602_v27 = vrot.slane %v6259_v14, 1  ;;  %v6278_v28 = vunpack.c.l.bf16 %v354_v15  ;;  %v372_v53 = vld [vmem:[%s6020_s20 + $0x54] sm:$0xff]   ;;  %v6321_v58 = vld [vmem:[%s6020_s20 + $0x5c] sm:$0x1]  ;;  %s5857_s26 = smov 76  }
  0x69   : > { %v600_v26 = vsel %vm585_vm2, %v597_v17, %v599_v18  ;;  %v588_v31 = vsel %vm585_vm2, %v586_v19, %v587_v20  ;;  %v590_v32 = vsel %vm585_vm2, %v587_v20, %v589_v21  ;;  %v604_v33 = vrot.slane %v8729_v22, 1  ;;  %v378_v20 = vld [vmem:[%s6020_s20 + $0x6c] sm:$0xff]   ;;  %s5859_s29 = smov 96   ;;  %p4542_p8 = scmp.ne.s32.totalorder %s5834_s21, 7 }
  0x6a   : > { %8790 = vst [vmem:[#allocation18_spill] sm:$0xff] %v6278_v28  ;;  %v5040_v30 = vpack.i.bf16 %v600_v26, %v598_v25  ;;  %v5030_v35 = vpack.i.bf16 %v590_v32, %v588_v31  ;;  %v603_v36 = vsel %vm585_vm2, %v601_v23, %v602_v27  ;;  %v6289_v37 = vunpack.c.h.bf16 %v354_v15  ;;  %v6336_v15 = vld [vmem:[%s6020_s20 + $0x50] sm:$0x1] }
  0x6b   : > { %v605_v40 = vsel %vm585_vm2, %v602_v27, %v604_v33  ;;  %v591_v41 = vrot.slane %v6278_v28, 1  ;;  %v6296_v42 = vunpack.c.l.bf16 %v366_v29  ;;  %v6298_v43 = vunpack.c.h.bf16 %v366_v29  ;;  %v6350_v27 = vld [vmem:[%s6020_s20 + $0x74] sm:$0x1]  ;;  %v4624_v29 = vld [vmem:[%s6020_s20 + $0x60] sm:$0xff]   ;;  %v6464_v6 = vld [vmem:[%s6020_s20 + $0xb0] sm:$0x1] }
  0x6c   : > { %5041 = vrot.lane.b32.xlu1 %v5040_v30, %s5853_s23  ;;  %5031 = vrot.lane.b32.xlu0 %v5030_v35, %s5853_s23  ;;  %v5045_v45 = vpack.i.bf16 %v605_v40, %v603_v36  ;;  %v592_v46 = vrot.slane %v6289_v37, 1  ;;  %v594_v47 = vrot.slane %v8732_v38, 1  ;;  %v8727_v48 = vunpack.c.l.bf16 %v6286_v34 }
  0x6d   : > { %8791 = vst [vmem:[#allocation19_spill] sm:$0xff] %v6296_v42  ;;  %8792 = vst [vmem:[#allocation20_spill] sm:$0xff] %v6298_v43  ;;  %v611_v49 = vrot.slane %v6296_v42, 1  ;;  %v612_v50 = vrot.slane %v6298_v43, 1  ;;  %v6310_v51 = vunpack.c.l.bf16 %v4622_v39  ;;  %v6312_v52 = vunpack.c.h.bf16 %v4622_v39 }
  0x6e   : > { %v593_v54 = vsel %vm585_vm2, %v591_v41, %v592_v46  ;;  %v595_v55 = vsel %vm585_vm2, %v592_v46, %v594_v47  ;;  %v614_v56 = vrot.slane %v8727_v48, 1  ;;  %v8725_v57 = vunpack.c.l.bf16 %v6301_v44  ;;  %v6365_v41 = vld [vmem:[%s6020_s20 + $0x68] sm:$0x1] }
  0x6f   : > { %v5035_v60 = vpack.i.bf16 %v595_v55, %v593_v54  ;;  %v613_v61 = vsel %vm585_vm2, %v611_v49, %v612_v50  ;;  %v606_v62 = vrot.slane %v6310_v51, 1  ;;  %v607_v63 = vrot.slane %v6312_v52, 1 }
  0x70   : > { %5046 = vrot.lane.b32.xlu1 %v5045_v45, %s5853_s23  ;;  %v615_v0 = vsel %vm585_vm2, %v612_v50, %v614_v56  ;;  %v609_v1 = vrot.slane %v8725_v57, 1  ;;  %v6331_v3 = vunpack.c.l.bf16 %v372_v53  ;;  %v6333_v9 = vunpack.c.h.bf16 %v372_v53  ;;  %v384_v50 = vld [vmem:[%s6020_s20 + $0x84] sm:$0xff]  }
  0x71   : > { %5036 = vrot.lane.b32.xlu0 %v5035_v60, %s5853_s23  ;;  %v5055_v16 = vpack.i.bf16 %v615_v0, %v613_v61  ;;  %v608_v17 = vsel %vm585_vm2, %v606_v62, %v607_v63  ;;  %v8724_v18 = vunpack.c.l.bf16 %v6321_v58  ;;  %v6341_v19 = vunpack.c.l.bf16 %v4623_v59  ;;  %v4625_v0 = vld [vmem:[%s6020_s20 + $0x78] sm:$0xff]   ;;  %v4627_v57 = vld [vmem:[%s6020_s20 + $0xa8] sm:$0xff]  }
  0x72   : > { %8793 = vst [vmem:[#allocation21_spill] sm:$0xff] %v6331_v3  ;;  %8794 = vst [vmem:[#allocation22_spill] sm:$0xff] %v6333_v9  ;;  %v610_v21 = vsel %vm585_vm2, %v607_v63, %v609_v1  ;;  %v621_v23 = vrot.slane %v6331_v3, 1  ;;  %v622_v25 = vrot.slane %v6333_v9, 1  ;;  %v6347_v26 = vunpack.c.h.bf16 %v4623_v59  ;;  %v6385_v63 = vld [vmem:[%s6020_s20 + $0x8c] sm:$0x1] }
  0x73   : > { %8795 = vst [vmem:[#allocation23_spill] sm:$0xff] %v6341_v19  ;;  %v5050_v30 = vpack.i.bf16 %v610_v21, %v608_v17  ;;  %v624_v31 = vrot.slane %v8724_v18, 1  ;;  %v8722_v32 = vunpack.c.l.bf16 %v6336_v15  ;;  %v616_v33 = vrot.slane %v6341_v19, 1  ;;  %v6449_v18 = vld [vmem:[%s6020_s20 + $0xbc] sm:$0x1] }
  0x74   : > { %8796 = vst [vmem:[#allocation24_spill] sm:$0xff] %v6347_v26  ;;  %5056 = vrot.lane.b32.xlu1 %v5055_v16, %s5853_s23  ;;  %v623_v35 = vsel %vm585_vm2, %v621_v23, %v622_v25  ;;  %v617_v36 = vrot.slane %v6347_v26, 1  ;;  %v6360_v39 = vunpack.c.l.bf16 %v378_v20  ;;  %v6362_v40 = vunpack.c.h.bf16 %v378_v20  ;;  %8806 = vst [vmem:[#allocation34_spill] sm:$0xff] %v6449_v18 }
  0x75   : > { %5051 = vrot.lane.b32.xlu0 %v5050_v30, %s5853_s23  ;;  %v625_v45 = vsel %vm585_vm2, %v622_v25, %v624_v31  ;;  %v619_v46 = vrot.slane %v8722_v32, 1  ;;  %v8721_v47 = vunpack.c.l.bf16 %v6350_v27  ;;  %v6372_v49 = vunpack.c.l.bf16 %v4624_v29  ;;  %v6400_v30 = vld [vmem:[%s6020_s20 + $0x80] sm:$0x1] }
  0x76   : > { %8797 = vst [vmem:[#allocation25_spill] sm:$0xff] %v6360_v39  ;;  %8798 = vst [vmem:[#allocation26_spill] sm:$0xff] %v6362_v40  ;;  %v5065_v53 = vpack.i.bf16 %v625_v45, %v623_v35  ;;  %v618_v54 = vsel %vm585_vm2, %v616_v33, %v617_v36  ;;  %v631_v55 = vrot.slane %v6360_v39, 1  ;;  %v632_v56 = vrot.slane %v6362_v40, 1  ;;  %v390_v45 = vld [vmem:[%s6020_s20 + $0x9c] sm:$0xff]  }
  0x77   : > { %8799 = vst [vmem:[#allocation27_spill] sm:$0xff] %v6372_v49  ;;  %v620_v59 = vsel %vm585_vm2, %v617_v36, %v619_v46  ;;  %v634_v60 = vrot.slane %v8721_v47, 1  ;;  %v6381_v61 = vunpack.c.h.bf16 %v4624_v29  ;;  %v8720_v62 = vunpack.c.l.bf16 %v6365_v41 }
  0x78   : > { %5066 = vrot.lane.b32.xlu1 %v5065_v53, %s5853_s23  ;;  %v5060_v1 = vpack.i.bf16 %v620_v59, %v618_v54  ;;  %v633_v16 = vsel %vm585_vm2, %v631_v55, %v632_v56  ;;  %v626_v17 = vrot.slane %v6372_v49, 1  ;;  %v6391_v20 = vunpack.c.l.bf16 %v384_v50  ;;  %v6414_v55 = vld [vmem:[%s6020_s20 + $0xa4] sm:$0x1] }
  0x79   : > { %8800 = vst [vmem:[#allocation28_spill] sm:$0xff] %v6381_v61  ;;  %v635_v21 = vsel %vm585_vm2, %v632_v56, %v634_v60  ;;  %v627_v23 = vrot.slane %v6381_v61, 1  ;;  %v629_v25 = vrot.slane %v8720_v62, 1  ;;  %v6397_v29 = vunpack.c.h.bf16 %v384_v50  ;;  %v4626_v56 = vld [vmem:[%s6020_s20 + $0x90] sm:$0xff]  }
  0x7a   : > { %8801 = vst [vmem:[#allocation29_spill] sm:$0xff] %v6391_v20  ;;  %5061 = vrot.lane.b32.xlu0 %v5060_v1, %s5853_s23  ;;  %v5075_v31 = vpack.i.bf16 %v635_v21, %v633_v16  ;;  %v8719_v33 = vunpack.c.l.bf16 %v6385_v63  ;;  %v641_v35 = vrot.slane %v6391_v20, 1  ;;  %v6405_v36 = vunpack.c.l.bf16 %v4625_v0 }
  0x7b   : > { %8802 = vst [vmem:[#allocation30_spill] sm:$0xff] %v6397_v29  ;;  %v628_v46 = vsel %vm585_vm2, %v626_v17, %v627_v23  ;;  %v630_v53 = vsel %vm585_vm2, %v627_v23, %v629_v25  ;;  %v642_v50 = vrot.slane %v6397_v29, 1  ;;  %v6411_v54 = vunpack.c.h.bf16 %v4625_v0  ;;  %v6429_v25 = vld [vmem:[%s6020_s20 + $0x98] sm:$0x1] }
  0x7c   : > { %8803 = vst [vmem:[#allocation31_spill] sm:$0xff] %v6405_v36  ;;  %5076 = vrot.lane.b32.xlu1 %v5075_v31, %s5853_s23  ;;  %v5070_v59 = vpack.i.bf16 %v630_v53, %v628_v46  ;;  %v644_v60 = vrot.slane %v8719_v33, 1  ;;  %v8723_v1 = vunpack.c.l.bf16 %v6400_v30  ;;  %v636_v16 = vrot.slane %v6405_v36, 1  ;;  %8805 = vst [vmem:[#allocation33_spill] sm:$0xff] %v6429_v25  ;;  %v396_v33 = vld [vmem:[%s6020_s20 + $0xb4] sm:$0xff]  }
  0x7d   : > { %8804 = vst [vmem:[#allocation32_spill] sm:$0xff] %v6411_v54  ;;  %v643_v17 = vsel %vm585_vm2, %v641_v35, %v642_v50  ;;  %v637_v21 = vrot.slane %v6411_v54, 1  ;;  %v6424_v0 = vunpack.c.l.bf16 %v390_v45  ;;  %v6426_v23 = vunpack.c.h.bf16 %v390_v45 }
  0x7e   : > { %5071 = vrot.lane.b32.xlu0 %v5070_v59, %s5853_s23  ;;  %v645_v31 = vsel %vm585_vm2, %v642_v50, %v644_v60  ;;  %v639_v46 = vrot.slane %v8723_v1, 1  ;;  %v8726_v53 = vunpack.c.l.bf16 %v6414_v55  ;;  %v6436_v35 = vunpack.c.l.bf16 %v4626_v56 }
  0x7f   : > { %v5085_v62 = vpack.i.bf16 %v645_v31, %v643_v17  ;;  %v638_v45 = vsel %vm585_vm2, %v636_v16, %v637_v21  ;;  %v651_v47 = vrot.slane %v6424_v0, 1  ;;  %v652_v32 = vrot.slane %v6426_v23, 1 }
  0x80   : > { %v640_v59 = vsel %vm585_vm2, %v637_v21, %v639_v46  ;;  %v654_v50 = vrot.slane %v8726_v53, 1  ;;  %v6445_v60 = vunpack.c.h.bf16 %v4626_v56  ;;  %v8730_v1 = vunpack.c.l.bf16 %v6429_v25 }
  0x81   : > { %5086 = vrot.lane.b32.xlu1 %v5085_v62, %s5853_s23  ;;  %v5080_v16 = vpack.i.bf16 %v640_v59, %v638_v45  ;;  %v653_v17 = vsel %vm585_vm2, %v651_v47, %v652_v32  ;;  %v646_v31 = vrot.slane %v6436_v35, 1  ;;  %v6455_v21 = vunpack.c.l.bf16 %v396_v33 }
  0x82   : > { %v655_v46 = vsel %vm585_vm2, %v652_v32, %v654_v50  ;;  %v647_v56 = vrot.slane %v6445_v60, 1  ;;  %v649_v53 = vrot.slane %v8730_v1, 1  ;;  %v6461_v48 = vunpack.c.h.bf16 %v396_v33  ;;  %v402_v32 = vld [vmem:[%s6020_s20 + $0xcc] sm:$0xff]   ;;  %v6473_v50 = vld [vmem:[%s6020_s20 + $0xd4] sm:$0x1] }
  0x83   : > { %8807 = vst [vmem:[#allocation35_spill] sm:$0xff] %v6455_v21  ;;  %5081 = vrot.lane.b32.xlu0 %v5080_v16, %s5853_s23  ;;  %v5095_v62 = vpack.i.bf16 %v655_v46, %v653_v17  ;;  %v8736_v47 = vunpack.c.l.bf16 %v6449_v18  ;;  %v661_v45 = vrot.slane %v6455_v21, 1  ;;  %v6469_v59 = vunpack.c.l.bf16 %v4627_v57  ;;  %v4628_v16 = vld [vmem:[%s6020_s20 + $0xc0] sm:$0xff]  }
  0x84   : > { %v648_v22 = vsel %vm585_vm2, %v646_v31, %v647_v56  ;;  %v650_v33 = vsel %vm585_vm2, %v647_v56, %v649_v53  ;;  %v662_v1 = vrot.slane %v6461_v48, 1  ;;  %v6478_v12 = vunpack.c.h.bf16 %v4627_v57  ;;  %v6493_v57 = vld [vmem:[%s6020_s20 + $0xc8] sm:$0x1]  ;;  %s8773_s20 = smov 8  }
  0x85   : > { %8808 = vst [vmem:[#allocation36_spill] sm:$0xff] %v6469_v59  ;;  %5096 = vrot.lane.b32.xlu1 %v5095_v62, %s5853_s23  ;;  %v5090_v17 = vpack.i.bf16 %v650_v33, %v648_v22  ;;  %v664_v46 = vrot.slane %v8736_v47, 1  ;;  %v8742_v38 = vunpack.c.l.bf16 %v6464_v6  ;;  %v656_v21 = vrot.slane %v6469_v59, 1  ;;  %8811 = vst [vmem:[#allocation39_spill] sm:$0xff] %v6493_v57 }
  0x86   : > { %8809 = vst [vmem:[#allocation37_spill] sm:$0xff] %v6478_v12  ;;  %v663_v25 = vsel %vm585_vm2, %v661_v45, %v662_v1  ;;  %v657_v31 = vrot.slane %v6478_v12, 1  ;;  %v6488_v53 = vunpack.c.l.bf16 %v402_v32  ;;  %v6490_v56 = vunpack.c.h.bf16 %v402_v32 }
  0x87   : > { %5091 = vrot.lane.b32.xlu0 %v5090_v17, %s5853_s23  ;;  %v665_v22 = vsel %vm585_vm2, %v662_v1, %v664_v46  ;;  %v659_v62 = vrot.slane %v8742_v38, 1  ;;  %v8745_v33 = vunpack.c.l.bf16 %v6473_v50  ;;  %v6500_v47 = vunpack.c.l.bf16 %v4628_v16 }
  0x88   : > { %8810 = vst [vmem:[#allocation38_spill] sm:$0xff] %v6490_v56  ;;  %v5105_v45 = vpack.i.bf16 %v665_v22, %v663_v25  ;;  %v658_v12 = vsel %vm585_vm2, %v656_v21, %v657_v31  ;;  %v671_v59 = vrot.slane %v6488_v53, 1  ;;  %v672_v32 = vrot.slane %v6490_v56, 1 }
  0x89   : > { %v660_v18 = vsel %vm585_vm2, %v657_v31, %v659_v62  ;;  %v674_v17 = vrot.slane %v8745_v33, 1  ;;  %v6508_v1 = vunpack.c.h.bf16 %v4628_v16  ;;  %v8746_v46 = vunpack.c.l.bf16 %v6493_v57 }
  0x8a   : > { %5106 = vrot.lane.b32.xlu1 %v5105_v45, %s5853_s23  ;;  %v5100_v38 = vpack.i.bf16 %v660_v18, %v658_v12  ;;  %v673_v25 = vsel %vm585_vm2, %v671_v59, %v672_v32  ;;  %v666_v21 = vrot.slane %v6500_v47, 1  ;;  %vm784_vm3 = vcmask 1045504  }
  0x8b   : > { %v675_v22 = vsel %vm585_vm2, %v672_v32, %v674_v17  ;;  %v667_v56 = vrot.slane %v6508_v1, 1  ;;  %v669_v31 = vrot.slane %v8746_v46, 1  ;;  %v790_v16 = vrot.slane %v6278_v28, 2 }
  0x8c   : > { %5101 = vrot.lane.b32.xlu0 %v5100_v38, %s5853_s23  ;;  %v5115_v62 = vpack.i.bf16 %v675_v22, %v673_v25  ;;  %v791_v45 = vrot.slane %v6289_v37, 2  ;;  %v8812_v12 = vunpack.c.l.bf16 %v6273_v24  ;;  %v785_v59 = vrot.slane %v6245_v7, 2 }
  0x8d   : > { %v668_v33 = vsel %vm585_vm2, %v666_v21, %v667_v56  ;;  %v670_v32 = vsel %vm585_vm2, %v667_v56, %v669_v31  ;;  %v786_v17 = vrot.slane %v6254_v11, 2  ;;  %v8813_v46 = vunpack.c.l.bf16 %v6248_v8 }
  0x8e   : > { %v793_v18 = vrot.slane %v8812_v12, 2  ;;  %5116 = vrot.lane.b32.xlu1 %v5115_v62, %s5853_s23  ;;  %v5110_v38 = vpack.i.bf16 %v670_v32, %v668_v33  ;;  %v792_v25 = vsel %vm784_vm3, %v790_v16, %v791_v45  ;;  %v800_v24 = vrot.slane %v6257_v13, 2 }
  0x8f   : > { %v788_v57 = vrot.slane %v8813_v46, 2  ;;  %v787_v28 = vsel %vm784_vm3, %v785_v59, %v786_v17  ;;  %v801_v56 = vrot.slane %v6259_v14, 2  ;;  %v8814_v46 = vunpack.c.l.bf16 %v6252_v10 }
  0x90   : > { %v794_v22 = vsel %vm784_vm3, %v791_v45, %v793_v18  ;;  %5111 = vrot.lane.b32.xlu0 %v5110_v38, %s5853_s23  ;;  %v795_v33 = vrot.slane %v6240_v4, 2  ;;  %v796_v16 = vrot.slane %v6242_v5, 2  ;;  %v8815_v45 = vunpack.c.l.bf16 %v6237_v2 }
  0x91   : > { %v5125_v12 = vpack.i.bf16 %v794_v22, %v792_v25  ;;  %v789_v21 = vsel %vm784_vm3, %v786_v17, %v788_v57  ;;  %v803_v31 = vrot.slane %v8814_v46, 2  ;;  %v802_v62 = vsel %vm784_vm3, %v800_v24, %v801_v56 }
  0x92   : > { %v5120_v8 = vpack.i.bf16 %v789_v21, %v787_v28  ;;  %v798_v18 = vrot.slane %v8815_v45, 2  ;;  %v810_v59 = vrot.slane %v6296_v42, 2  ;;  %v811_v57 = vrot.slane %v6298_v43, 2  ;;  %v527_v42 = vld [vmem:[#allocation2 + $0x220] sm:$0xff] }
  0x93   : > { %5126 = vrot.lane.b32.xlu1 %v5125_v12, %s8773_s20  ;;  %v804_v28 = vsel %vm784_vm3, %v801_v56, %v803_v31  ;;  %v797_v10 = vsel %vm784_vm3, %v795_v33, %v796_v16  ;;  %v8816_v32 = vunpack.c.l.bf16 %v6286_v34  ;;  %v805_v38 = vrot.slane %v6310_v51, 2 }
  0x94   : > { %v5135_v25 = vpack.i.bf16 %v804_v28, %v802_v62  ;;  %v799_v2 = vsel %vm784_vm3, %v796_v16, %v798_v18  ;;  %v812_v22 = vsel %vm784_vm3, %v810_v59, %v811_v57  ;;  %v806_v24 = vrot.slane %v6312_v52, 2  ;;  %5121 = vrot.lane.b32.xlu0 %v5120_v8, %s8773_s20 }
  0x95   : > { %v813_v17 = vrot.slane %v8816_v32, 2  ;;  %v5130_v21 = vpack.i.bf16 %v799_v2, %v797_v10  ;;  %v8817_v56 = vunpack.c.l.bf16 %v6301_v44  ;;  %v820_v34 = vrot.slane %v6331_v3, 2 }
  0x96   : > { %v807_v33 = vsel %vm784_vm3, %v805_v38, %v806_v24  ;;  %v821_v62 = vrot.slane %v6333_v9, 2  ;;  %v8818_v16 = vunpack.c.l.bf16 %v6321_v58  ;;  %v815_v18 = vrot.slane %v6341_v19, 2  ;;  %v522_v19 = vld [vmem:[#allocation2 + $0x1f8] sm:$0x1] }
  0x97   : > { %v814_v12 = vsel %vm784_vm3, %v811_v57, %v813_v17  ;;  %v808_v46 = vrot.slane %v8817_v56, 2  ;;  %5136 = vrot.lane.b32.xlu1 %v5135_v25, %s8773_s20  ;;  %v816_v59 = vrot.slane %v6347_v26, 2  ;;  %v8819_v44 = vunpack.c.l.bf16 %v6336_v15 }
  0x98   : > { %v5145_v31 = vpack.i.bf16 %v814_v12, %v812_v22  ;;  %v823_v45 = vrot.slane %v8818_v16, 2  ;;  %v822_v28 = vsel %vm784_vm3, %v820_v34, %v821_v62  ;;  %v830_v32 = vrot.slane %v6360_v39, 2  ;;  %5131 = vrot.lane.b32.xlu0 %v5130_v21, %s8773_s20  ;;  %v6882_v39 = vld [vmem:[#allocation2 + $0x190] sm:$0xff] }
  0x99   : > { %v809_v8 = vsel %vm784_vm3, %v806_v24, %v808_v46  ;;  %v818_v57 = vrot.slane %v8819_v44, 2  ;;  %v817_v17 = vsel %vm784_vm3, %v815_v18, %v816_v59  ;;  %v831_v38 = vrot.slane %v6362_v40, 2 }
  0x9a   : > { %v824_v10 = vsel %vm784_vm3, %v821_v62, %v823_v45  ;;  %v5140_v58 = vpack.i.bf16 %v809_v8, %v807_v33  ;;  %v8820_v2 = vunpack.c.l.bf16 %v6350_v27  ;;  %v825_v15 = vrot.slane %v6372_v49, 2 }
  0x9b   : > { %v819_v25 = vsel %vm784_vm3, %v816_v59, %v818_v57  ;;  %v826_v24 = vrot.slane %v6381_v61, 2  ;;  %5146 = vrot.lane.b32.xlu1 %v5145_v31, %s8773_s20  ;;  %v5155_v12 = vpack.i.bf16 %v824_v10, %v822_v28  ;;  %v832_v56 = vsel %vm784_vm3, %v830_v32, %v831_v38  ;;  %v514_v61 = vld [vmem:[#allocation2 + $0x1b8] sm:$0x1] }
  0x9c   : > { %v833_v22 = vrot.slane %v8820_v2, 2  ;;  %v8821_v21 = vunpack.c.l.bf16 %v6365_v41  ;;  %v840_v33 = vrot.slane %v6391_v20, 2  ;;  %v841_v62 = vrot.slane %v6397_v29, 2  ;;  %5141 = vrot.lane.b32.xlu0 %v5140_v58, %s8773_s20 }
  0x9d   : > { %v8822_v27 = vunpack.c.l.bf16 %v6385_v63  ;;  %v5150_v45 = vpack.i.bf16 %v819_v25, %v817_v17  ;;  %v835_v31 = vrot.slane %v6405_v36, 2  ;;  %v836_v8 = vrot.slane %v6411_v54, 2 }
  0x9e   : > { %v828_v46 = vrot.slane %v8821_v21, 2  ;;  %v834_v34 = vsel %vm784_vm3, %v831_v38, %v833_v22  ;;  %v827_v18 = vsel %vm784_vm3, %v825_v15, %v826_v24  ;;  %v8823_v59 = vunpack.c.l.bf16 %v6400_v30  ;;  %v6607_v38 = vld [vmem:[%s8709_s1] sm:$0xff]  }
  0x9f   : > { %v843_v16 = vrot.slane %v8822_v27, 2  ;;  %5156 = vrot.lane.b32.xlu1 %v5155_v12, %s8773_s20  ;;  %v5165_v57 = vpack.i.bf16 %v834_v34, %v832_v56  ;;  %v850_v63 = vrot.slane %v6424_v0, 2  ;;  %v851_v28 = vrot.slane %v6426_v23, 2  ;;  %4744 = vmatprep.subr.bf16.mxu0 %v6607_v38 }
  0xa0   : > { %v829_v41 = vsel %vm784_vm3, %v826_v24, %v828_v46  ;;  %v838_v44 = vrot.slane %v8823_v59, 2  ;;  %v842_v10 = vsel %vm784_vm3, %v840_v33, %v841_v62  ;;  %v8824_v58 = vunpack.c.l.bf16 %v6414_v55  ;;  %5151 = vrot.lane.b32.xlu0 %v5150_v45, %s8773_s20  ;;  %v8825_v24 = vld [vmem:[#allocation33_spill] sm:$0xff]  ;;  %4745 = vmatpush3.bf16.msra.mxu0 %v6607_v38  ;;  %v8827_v33 = vld [vmem:[#allocation35_spill] sm:$0xff] }
  0xa1   : > { %v844_v32 = vsel %vm784_vm3, %v841_v62, %v843_v16  ;;  %v5160_v30 = vpack.i.bf16 %v829_v41, %v827_v18  ;;  %v837_v25 = vsel %vm784_vm3, %v835_v31, %v836_v8  ;;  %v845_v22 = vrot.slane %v6436_v35, 2  ;;  %v5481_v46 = vld [vmem:[%s8709_s1 + $0x38] sm:$0xff]   ;;  %v8828_v16 = vld [vmem:[#allocation34_spill] sm:$0xff]  ;;  %v8830_v41 = vld [vmem:[#allocation36_spill] sm:$0xff] }
  0xa2   : > { %v853_v17 = vrot.slane %v8824_v58, 2  ;;  %v839_v2 = vsel %vm784_vm3, %v836_v8, %v838_v44  ;;  %v846_v15 = vrot.slane %v6445_v60, 2  ;;  %v8826_v12 = vunpack.c.l.bf16 %v8825_v24  ;;  %v5482_v8 = vld [vmem:[%s8709_s1 + $0x8] sm:$0xff]   ;;  %v8831_v44 = vld [vmem:[#allocation37_spill] sm:$0xff]  ;;  %4698 = vmatprep.subr.bf16.mxu1 %v5481_v46 }
  0xa3   : > { %5166 = vrot.lane.b32.xlu1 %v5165_v57, %s8773_s20  ;;  %v5175_v56 = vpack.i.bf16 %v844_v32, %v842_v10  ;;  %v852_v21 = vsel %vm784_vm3, %v850_v63, %v851_v28  ;;  %v860_v62 = vrot.slane %v8827_v33, 2  ;;  %v861_v27 = vrot.slane %v6461_v48, 2  ;;  %4699 = vmatpush3.bf16.msra.mxu1 %v5481_v46  ;;  %v6653_v46 = vld [vmem:[#allocation2 + $0x28] sm:$0xff] }
  0xa4   : > { %v848_v55 = vrot.slane %v8826_v12, 2  ;;  %v854_v34 = vsel %vm784_vm3, %v851_v28, %v853_v17  ;;  %v8829_v45 = vunpack.c.l.bf16 %v8828_v16  ;;  %5161 = vrot.lane.b32.xlu0 %v5160_v30, %s8773_s20  ;;  %v5170_v18 = vpack.i.bf16 %v839_v2, %v837_v25  ;;  %4746 = vmatprep.subr.bf16.mxu0 %v5482_v8  ;;  %v8833_v30 = vld [vmem:[#allocation38_spill] sm:$0xff]  ;;  %v5484_v12 = vld [vmem:[%s8709_s1 + $0x10] sm:$0xff]   ;;  %v8835_v16 = vld [vmem:[#allocation39_spill] sm:$0xff] }
  0xa5   : > { %v855_v59 = vrot.slane %v8830_v41, 2  ;;  %v856_v57 = vrot.slane %v8831_v44, 2  ;;  %v847_v63 = vsel %vm784_vm3, %v845_v22, %v846_v15  ;;  %v8832_v10 = vunpack.c.l.bf16 %v6464_v6  ;;  %4747 = vmatpush3.bf16.msra.mxu0 %v5482_v8  ;;  %v5483_v2 = vld [vmem:[%s8709_s1 + $0x40] sm:$0xff]  }
  0xa6   : > { %v863_v31 = vrot.slane %v8829_v45, 2  ;;  %v849_v28 = vsel %vm784_vm3, %v846_v15, %v848_v55  ;;  %v5185_v58 = vpack.i.bf16 %v854_v34, %v852_v21  ;;  %v870_v17 = vrot.slane %v6488_v53, 2  ;;  %v463_v21 = vld [vmem:[#allocation2 + $0x20] sm:$0xff]  ;;  %v6655_v34 = vld [vmem:[#allocation2 + $0x30] sm:$0xff]  ;;  %4700 = vmatprep.subr.bf16.mxu1 %v5483_v2  ;;  %4748 = vmatprep.subr.bf16.mxu0 %v5484_v12 }
  0xa7   : > { %v858_v32 = vrot.slane %v8832_v10, 2  ;;  %5176 = vrot.lane.b32.xlu1 %v5175_v56, %s8773_s20  ;;  %v871_v25 = vrot.slane %v8833_v30, 2  ;;  %v862_v22 = vsel %vm784_vm3, %v860_v62, %v861_v27  ;;  %v8834_v6 = vunpack.c.l.bf16 %v6473_v50  ;;  %v459_v8 = vld [vmem:[#allocation2] sm:$0xff]  ;;  %4701 = vmatpush3.bf16.msra.mxu1 %v5483_v2 }
  0xa8   : > { %v864_v15 = vsel %vm784_vm3, %v861_v27, %v863_v31  ;;  %5171 = vrot.lane.b32.xlu0 %v5170_v18, %s8773_s20  ;;  %v5180_v55 = vpack.i.bf16 %v849_v28, %v847_v63  ;;  %v857_v56 = vsel %vm784_vm3, %v855_v59, %v856_v57  ;;  %v865_v50 = vrot.slane %v6500_v47, 2  ;;  %v6662_v18 = vld [vmem:[#allocation2 + $0x8] sm:$0xff]  ;;  %v6666_v28 = vld [vmem:[#allocation2 + $0x10] sm:$0xff] }
  0xa9   : > { %v873_v24 = vrot.slane %v8834_v6, 2  ;;  %v859_v62 = vsel %vm784_vm3, %v856_v57, %v858_v32  ;;  %v866_v27 = vrot.slane %v6508_v1, 2  ;;  %v8836_v45 = vunpack.c.l.bf16 %v8835_v16  ;;  %4749 = vmatpush3.bf16.msra.mxu0 %v5484_v12  ;;  %v5485_v57 = vld [vmem:[%s8709_s1 + $0x48] sm:$0xff]  }
  0xaa   : > { %v5195_v59 = vpack.i.bf16 %v864_v15, %v862_v22  ;;  %v872_v63 = vsel %vm784_vm3, %v870_v17, %v871_v25  ;;  %v1043_v32 = vrot.slane %v463_v21, 7  ;;  %v1044_v6 = vrot.slane %v6653_v46, 7  ;;  %4702 = vmatprep.subr.bf16.mxu1 %v5485_v57  ;;  %v467_v21 = vld [vmem:[#allocation2 + $0x40] sm:$0xff] }
  0xab   : > { %v868_v31 = vrot.slane %v8836_v45, 2  ;;  %5186 = vrot.lane.b32.xlu1 %v5185_v58, %s8773_s20  ;;  %v874_v10 = vsel %vm784_vm3, %v871_v25, %v873_v24  ;;  %v1046_v2 = vrot.slane %v6655_v34, 7  ;;  %v5486_v58 = vld [vmem:[%s8709_s1 + $0x18] sm:$0xff]   ;;  %v5190_v17 = vpack.i.bf16 %v859_v62, %v857_v56  ;;  %4703 = vmatpush3.bf16.msra.mxu1 %v5485_v57  ;;  %v6683_v45 = vld [vmem:[#allocation2 + $0x48] sm:$0xff]  ;;  %v5487_v56 = vld [vmem:[%s8709_s1 + $0x50] sm:$0xff]  }
  0xac   : > { %5181 = vrot.lane.b32.xlu0 %v5180_v55, %s8773_s20  ;;  %vm1037_vm4 = vcmask 1040384   ;;  %v1038_v22 = vrot.slane %v459_v8, 7  ;;  %v1039_v15 = vrot.slane %v6662_v18, 7  ;;  %v867_v12 = vsel %vm784_vm3, %v865_v50, %v866_v27  ;;  %4750 = vmatprep.subr.bf16.mxu0 %v5486_v58  ;;  %v6685_v55 = vld [vmem:[#allocation2 + $0x50] sm:$0xff] }
  0xad   : > { %v869_v25 = vsel %vm784_vm3, %v866_v27, %v868_v31  ;;  %v1041_v24 = vrot.slane %v6666_v28, 7  ;;  %v5205_v16 = vpack.i.bf16 %v874_v10, %v872_v63  ;;  %4751 = vmatpush3.bf16.msra.mxu0 %v5486_v58  ;;  %v1045_v62 = vsel %vm1037_vm4, %v1043_v32, %v1044_v6  ;;  %v5488_v27 = vld [vmem:[%s8709_s1 + $0x20] sm:$0xff]   ;;  %4704 = vmatprep.subr.bf16.mxu1 %v5487_v56 }
  0xae   : > { %v1047_v50 = vsel %vm1037_vm4, %v1044_v6, %v1046_v2  ;;  %v5200_v31 = vpack.i.bf16 %v869_v25, %v867_v12  ;;  %v1040_v8 = vsel %vm1037_vm4, %v1038_v22, %v1039_v15  ;;  %v1048_v63 = vrot.slane %v467_v21, 7  ;;  %4752 = vmatprep.subr.bf16.mxu0 %v5488_v27  ;;  %v5489_v6 = vld [vmem:[%s8709_s1 + $0x58] sm:$0xff]   ;;  %v5490_v2 = vld [vmem:[%s8709_s1 + $0x28] sm:$0xff]  }
  0xaf   : > { %5196 = vrot.lane.b32.xlu1 %v5195_v59, %s8773_s20  ;;  %v1042_v59 = vsel %vm1037_vm4, %v1039_v15, %v1041_v24  ;;  %v1049_v57 = vrot.slane %v6683_v45, 7  ;;  %v1051_v10 = vrot.slane %v6685_v55, 7  ;;  %4705 = vmatpush3.bf16.msra.mxu1 %v5487_v56  ;;  %v5215_v32 = vpack.i.bf16 %v1047_v50, %v1045_v62  ;;  %v462_v25 = vld [vmem:[#allocation2 + $0x18] sm:$0x1]  ;;  %v5491_v24 = vld [vmem:[%s8709_s1 + $0x60] sm:$0xff]  }
  0xb0   : > { %5191 = vrot.lane.b32.xlu0 %v5190_v17, %s8773_s20  ;;  %v5210_v58 = vpack.i.bf16 %v1042_v59, %v1040_v8  ;;  %v466_v17 = vld [vmem:[#allocation2 + $0x38] sm:$0x1]  ;;  %4706 = vmatprep.subr.bf16.mxu1 %v5489_v6  ;;  %v5225_v12 = vpack.i.bf16 %v6666_v28, %v6662_v18  ;;  %v1367_v21 = vrot.slane %v6653_v46, 1  ;;  %v471_v62 = vld [vmem:[#allocation2 + $0x60] sm:$0xff]  ;;  %v6721_v50 = vld [vmem:[%s8709_s1 + $0x30] sm:$0x3f]  }
  0xb1   : > { %4753 = vmatpush3.bf16.msra.mxu0 %v5488_v27  ;;  %v1050_v22 = vsel %vm1037_vm4, %v1048_v63, %v1049_v57  ;;  %v1052_v15 = vsel %vm1037_vm4, %v1049_v57, %v1051_v10  ;;  %v1370_v56 = vrot.slane %v466_v17, 1  ;;  %v1363_v8 = vrot.slane %v6666_v28, 1  ;;  %v6726_v59 = vld [vmem:[#allocation2 + $0x68] sm:$0xff]  ;;  %v6728_v63 = vld [vmem:[#allocation2 + $0x70] sm:$0xff] }
  0xb2   : > { %4754 = vmatprep.subr.bf16.mxu0 %v5490_v2  ;;  %v5220_v27 = vpack.i.bf16 %v1052_v15, %v1050_v22  ;;  %v1365_v57 = vrot.slane %v462_v25, 1  ;;  %v5235_v10 = vpack.i.bf16 %v6685_v55, %v6683_v45  ;;  %v6738_v28 = vld [vmem:[%s8709_s1 + $0x68] sm:$0x3f]   ;;  %v1056_v17 = vrot.slane %v6728_v63, 7 }
  0xb3   : > { %5206 = vrot.lane.b32.xlu1 %v5205_v16, %s8773_s20  ;;  %4707 = vmatpush3.bf16.msra.mxu1 %v5489_v6  ;;  %v1368_v16 = vrot.slane %v6655_v34, 1  ;;  %v5230_v22 = vpack.i.bf16 %v6655_v34, %v6653_v46  ;;  %v1372_v25 = vrot.slane %v6683_v45, 1  ;;  %vm1560_vm5 = vcmask 31744  }
  0xb4   : > { %5201 = vrot.lane.b32.xlu0 %v5200_v31, %s8773_s20  ;;  %v1362_v31 = vrot.slane %v6662_v18, 1  ;;  %4708 = vmatprep.subr.bf16.mxu1 %v5491_v24  ;;  %v470_v18 = vld [vmem:[#allocation2 + $0x58] sm:$0x1]  ;;  %vm1597_vm6 = vcmask 64512   ;;  %vm1634_vm7 = vcmask 97280   ;;  %vm1671_vm8 = vcmask 359424  }
  0xb5   : > { %4755 = vmatpush3.bf16.msra.mxu0 %v5490_v2  ;;  %v1369_v6 = vsel %vm585_vm2, %v1367_v21, %v1368_v16  ;;  %v1371_v2 = vsel %vm585_vm2, %v1368_v16, %v1370_v56  ;;  %v1375_v21 = vrot.slane %v470_v18, 1  ;;  %v475_v16 = vld [vmem:[#allocation2 + $0x80] sm:$0xff]  ;;  %vm1708_vm9 = vcmask 621568  }
  0xb6   : > { %4915 = vmatprep.subr.msk.bf16.mxu0 %vm784_vm3, %v6721_v50  ;;  %v1364_v15 = vsel %vm585_vm2, %v1362_v31, %v1363_v8  ;;  %v5245_v56 = vpack.i.bf16 %v1371_v2, %v1369_v6  ;;  %v1058_v20 = vrot.slane %v475_v16, 7  ;;  %v1377_v6 = vrot.slane %v6726_v59, 1  ;;  %v478_v16 = vld [vmem:[#allocation2 + $0x98] sm:$0x1] }
  0xb7   : > { %5216 = vrot.lane.b32.xlu1 %v5215_v32, %s5855_s6  ;;  %4709 = vmatpush3.bf16.msra.mxu1 %v5491_v24  ;;  %v1053_v32 = vrot.slane %v471_v62, 7  ;;  %v1373_v24 = vrot.slane %v6685_v55, 1  ;;  %v476_v62 = vld [vmem:[#allocation2 + $0x88] sm:$0xff]  ;;  %vm1833_vm10 = vcmask 883712   ;;  %vm3731_vm12 = vcmask 261120  }
  0xb8   : > { %5211 = vrot.lane.b32.xlu0 %v5210_v58, %s5855_s6  ;;  %v1054_v58 = vrot.slane %v6726_v59, 7  ;;  %4914 = vmatprep.subr.msk.bf16.mxu1 %vm784_vm3, %v6738_v28  ;;  %vm4117_vm13 = vcmask 257024  }
  0xb9   : > { %v1374_v45 = vsel %vm585_vm2, %v1372_v25, %v1373_v24  ;;  %v1376_v55 = vsel %vm585_vm2, %v1373_v24, %v1375_v21  ;;  %v5265_v24 = vpack.i.bf16 %v6728_v63, %v6726_v59  ;;  %v485_v59 = vld [vmem:[#allocation2 + $0xd0] sm:$0xff] }
  0xba   : > { %v1055_v46 = vsel %vm1037_vm4, %v1053_v32, %v1054_v58  ;;  %v1057_v34 = vsel %vm1037_vm4, %v1054_v58, %v1056_v17  ;;  %v1378_v32 = vrot.slane %v6728_v63, 1  ;;  %v479_v58 = vld [vmem:[#allocation2 + $0xa0] sm:$0xff]  ;;  %v5250_v17 = vpack.i.bf16 %v1376_v55, %v1374_v45 }
  0xbb   : > { %5226 = vrot.lane.b32.xlu1 %v5225_v12, %s5856_s24  ;;  %v1366_v12 = vsel %vm585_vm2, %v1363_v8, %v1365_v57  ;;  %v474_v8 = vld [vmem:[#allocation2 + $0x78] sm:$0x1]  ;;  %v1059_v57 = vrot.slane %v476_v62, 7  ;;  %v1063_v21 = vrot.slane %v479_v58, 7  ;;  %v1382_v45 = vrot.slane %v476_v62, 1 }
  0xbc   : > { %5221 = vrot.lane.b32.xlu0 %v5220_v27, %s5855_s6  ;;  %v477_v27 = vld [vmem:[#allocation2 + $0x90] sm:$0xff]  ;;  %v5240_v31 = vpack.i.bf16 %v1366_v12, %v1364_v15  ;;  %v1380_v2 = vrot.slane %v474_v8, 1  ;;  %v1385_v55 = vrot.slane %v478_v16, 1  ;;  %v482_v58 = vld [vmem:[#allocation2 + $0xb8] sm:$0x1]  ;;  %v1071_v16 = vrot.slane %v485_v59, 7 }
  0xbd   : > { %v1061_v18 = vrot.slane %v477_v27, 7  ;;  %v481_v15 = vld [vmem:[#allocation2 + $0xb0] sm:$0xff]  ;;  %v1060_v12 = vsel %vm1037_vm4, %v1058_v20, %v1059_v57  ;;  %v1383_v20 = vrot.slane %v477_v27, 1  ;;  %v1390_v29 = vrot.slane %v482_v58, 1 }
  0xbf   : > { %5236 = vrot.lane.b32.xlu1 %v5235_v10, %s5856_s24  ;;  %v5255_v10 = vpack.i.bf16 %v1057_v34, %v1055_v46  ;;  %v1062_v25 = vsel %vm1037_vm4, %v1059_v57, %v1061_v18  ;;  %v1381_v46 = vsel %vm585_vm2, %v1378_v32, %v1380_v2  ;;  %v483_v57 = vld [vmem:[#allocation2 + $0xc0] sm:$0xff] }
  0xc0   : > { %5231 = vrot.lane.b32.xlu0 %v5230_v22, %s5856_s24  ;;  %v480_v22 = vld [vmem:[#allocation2 + $0xa8] sm:$0xff]  ;;  %v5260_v8 = vpack.i.bf16 %v1062_v25, %v1060_v12  ;;  %v1068_v2 = vrot.slane %v483_v57, 7  ;;  %v1386_v12 = vsel %vm585_vm2, %v1383_v20, %v1385_v55  ;;  %v486_v55 = vld [vmem:[#allocation2 + $0xd8] sm:$0x1] }
  0xc1   : > { %v1064_v34 = vrot.slane %v480_v22, 7 }
  0xc3   : > { %5246 = vrot.lane.b32.xlu1 %v5245_v56, %s5857_s26  ;;  %v1379_v56 = vsel %vm585_vm2, %v1377_v6, %v1378_v32  ;;  %v1065_v63 = vsel %vm1037_vm4, %v1063_v21, %v1064_v34  ;;  %v5270_v32 = vpack.i.bf16 %v477_v27, %v476_v62  ;;  %v489_v62 = vld [vmem:[#allocation2 + $0xf0] sm:$0xff] }
  0xc4   : > { %5241 = vrot.lane.b32.xlu0 %v5240_v31, %s5857_s26  ;;  %v1066_v31 = vrot.slane %v481_v15, 7  ;;  %v5275_v18 = vpack.i.bf16 %v1381_v46, %v1379_v56  ;;  %v1387_v56 = vrot.slane %v480_v22, 1  ;;  %v1388_v46 = vrot.slane %v481_v15, 1 }
  0xc6   : > { %v1067_v6 = vsel %vm1037_vm4, %v1064_v34, %v1066_v31  ;;  %v487_v34 = vld [vmem:[#allocation2 + $0xe0] sm:$0xff]  ;;  %v488_v31 = vld [vmem:[#allocation2 + $0xe8] sm:$0xff]  ;;  %v1391_v57 = vsel %vm585_vm2, %v1388_v46, %v1390_v29 }
  0xc7   : > { %5256 = vrot.lane.b32.xlu1 %v5255_v10, %s5855_s6  ;;  %v484_v10 = vld [vmem:[#allocation2 + $0xc8] sm:$0xff] }
  0xc8   : > { %5251 = vrot.lane.b32.xlu0 %v5250_v17, %s5857_s26  ;;  %v1384_v17 = vsel %vm585_vm2, %v1382_v45, %v1383_v20  ;;  %v1069_v25 = vrot.slane %v484_v10, 7  ;;  %v5295_v45 = vpack.i.bf16 %v481_v15, %v480_v22  ;;  %v1389_v20 = vsel %vm585_vm2, %v1387_v56, %v1388_v46  ;;  %v6788_v22 = vld [vmem:[#allocation2 + $0x110] sm:$0xff]  ;;  %v490_v46 = vld [vmem:[#allocation2 + $0xf8] sm:$0x1] }
  0xc9   : > { %v5280_v21 = vpack.i.bf16 %v1386_v12, %v1384_v17  ;;  %v1392_v58 = vrot.slane %v484_v10, 1  ;;  %v1393_v17 = vrot.slane %v485_v59, 1  ;;  %v1395_v12 = vrot.slane %v486_v55, 1 }
  0xca   : > { %v1070_v27 = vsel %vm1037_vm4, %v1068_v2, %v1069_v25  ;;  %v491_v2 = vld [vmem:[#allocation2 + $0x100] sm:$0xff]  ;;  %v1398_v55 = vrot.slane %v489_v62, 1 }
  0xcb   : > { %5266 = vrot.lane.b32.xlu1 %v5265_v24, %s5856_s24  ;;  %v5285_v24 = vpack.i.bf16 %v1067_v6, %v1065_v63  ;;  %v1074_v63 = vrot.slane %v488_v31, 7  ;;  %v1076_v6 = vrot.slane %v489_v62, 7  ;;  %v1078_v56 = vrot.slane %v491_v2, 7 }
  0xcc   : > { %5261 = vrot.lane.b32.xlu0 %v5260_v8, %s5855_s6  ;;  %v1072_v8 = vsel %vm1037_vm4, %v1069_v25, %v1071_v16  ;;  %v5305_v25 = vpack.i.bf16 %v1391_v57, %v1389_v20  ;;  %v6786_v16 = vld [vmem:[#allocation2 + $0x108] sm:$0xff]  ;;  %v1397_v20 = vrot.slane %v488_v31, 1  ;;  %v1400_v57 = vrot.slane %v490_v46, 1 }
  0xcd   : > { %v1077_v29 = vsel %vm1037_vm4, %v1074_v63, %v1076_v6 }
  0xcf   : > { %5276 = vrot.lane.b32.xlu1 %v5275_v18, %s5857_s26  ;;  %v1073_v18 = vrot.slane %v487_v34, 7  ;;  %v1396_v34 = vsel %vm585_vm2, %v1393_v17, %v1395_v12  ;;  %v5325_v12 = vpack.i.bf16 %v489_v62, %v488_v31 }
  0xd0   : > { %5271 = vrot.lane.b32.xlu0 %v5270_v32, %s5856_s24  ;;  %v5290_v32 = vpack.i.bf16 %v1072_v8, %v1070_v27  ;;  %v1079_v27 = vrot.slane %v6786_v16, 7  ;;  %v1081_v8 = vrot.slane %v6788_v22, 7 }
  0xd1   : > { %v1075_v15 = vsel %vm1037_vm4, %v1073_v18, %v1074_v63  ;;  %v495_v18 = vld [vmem:[#allocation2 + $0x120] sm:$0xff]  ;;  %v6801_v63 = vld [vmem:[#allocation2 + $0x130] sm:$0xff] }
  0xd2   : > { %v1083_v2 = vrot.slane %v495_v18, 7  ;;  %v1086_v46 = vrot.slane %v6801_v63, 7 }
  0xd3   : > { %5286 = vrot.lane.b32.xlu1 %v5285_v24, %s5855_s6  ;;  %v5300_v24 = vpack.i.bf16 %v485_v59, %v484_v10  ;;  %v6799_v59 = vld [vmem:[#allocation2 + $0x128] sm:$0xff] }
  0xd4   : > { %5281 = vrot.lane.b32.xlu0 %v5280_v21, %s5857_s26  ;;  %v1394_v21 = vsel %vm585_vm2, %v1392_v58, %v1393_v17  ;;  %v1082_v58 = vsel %vm1037_vm4, %v1079_v27, %v1081_v8  ;;  %v499_v8 = vld [vmem:[#allocation2 + $0x140] sm:$0xff] }
  0xd5   : > { %v5310_v10 = vpack.i.bf16 %v1396_v34, %v1394_v21  ;;  %v1402_v21 = vrot.slane %v6786_v16, 1  ;;  %v1403_v34 = vrot.slane %v6788_v22, 1 }
  0xd7   : > { %5296 = vrot.lane.b32.xlu1 %v5295_v45, %s5856_s24  ;;  %v5315_v45 = vpack.i.bf16 %v1077_v29, %v1075_v15  ;;  %v1399_v15 = vsel %vm585_vm2, %v1397_v20, %v1398_v55  ;;  %v1401_v29 = vsel %vm585_vm2, %v1398_v55, %v1400_v57  ;;  %v6822_v20 = vld [vmem:[#allocation2 + $0x150] sm:$0xff] }
  0xd8   : > { %5291 = vrot.lane.b32.xlu0 %v5290_v32, %s5855_s6  ;;  %v1080_v32 = vsel %vm1037_vm4, %v1078_v56, %v1079_v27  ;;  %v5335_v62 = vpack.i.bf16 %v1401_v29, %v1399_v15  ;;  %v1088_v15 = vrot.slane %v499_v8, 7  ;;  %v1091_v36 = vrot.slane %v6822_v20, 7 }
  0xd9   : > { %v5320_v56 = vpack.i.bf16 %v1082_v58, %v1080_v32  ;;  %v1404_v32 = vsel %vm585_vm2, %v1402_v21, %v1403_v34  ;;  %v498_v58 = vld [vmem:[#allocation2 + $0x138] sm:$0x1]  ;;  %v6845_v21 = vld [vmem:[%s8709_s1 + $0x70] sm:$0xff]  }
  0xdb   : > { %5306 = vrot.lane.b32.xlu1 %v5305_v25, %s5857_s26  ;;  %v494_v25 = vld [vmem:[#allocation2 + $0x118] sm:$0x1] }
  0xdc   : > { %5301 = vrot.lane.b32.xlu0 %v5300_v24, %s5856_s24  ;;  %v1084_v24 = vrot.slane %v6799_v59, 7  ;;  %v1405_v31 = vrot.slane %v494_v25, 1 }
  0xde   : > { %v6803_v6 = vpop.permute.xlu1 %5041  ;;  %v6808_v17 = vpop.permute.xlu0 %5031  ;;  %v1085_v57 = vsel %vm1037_vm4, %v1083_v2, %v1084_v24  ;;  %v1087_v18 = vsel %vm1037_vm4, %v1084_v24, %v1086_v46  ;;  %v1406_v25 = vsel %vm585_vm2, %v1403_v34, %v1405_v31  ;;  %v1407_v46 = vrot.slane %v6799_v59, 1  ;;  %v6848_v31 = vld [vmem:[#allocation2 + $0x168] sm:$0xff] }
  0xdf   : > { %5316 = vrot.lane.b32.xlu1 %v5315_v45, %s5855_s6  ;;  %v6820_v45 = vld [vmem:[#allocation2 + $0x148] sm:$0xff]  ;;  %v5345_v2 = vpack.i.bf16 %v1087_v18, %v1085_v57  ;;  %v5340_v34 = vpack.i.bf16 %v1406_v25, %v1404_v32  ;;  %v6856_v18 = vsel %vm784_vm3, %v6721_v50, 0  ;;  %v502_v25 = vld [vmem:[#allocation2 + $0x158] sm:$0x1]  ;;  %v1094_v50 = vrot.slane %v6848_v31, 7 }
  0xe0   : > { %5311 = vrot.lane.b32.xlu0 %v5310_v10, %s5857_s26  ;;  %v5330_v10 = vpack.i.bf16 %v6788_v22, %v6786_v16  ;;  %v1089_v29 = vrot.slane %v6820_v45, 7  ;;  %v1408_v16 = vrot.slane %v6801_v63, 1  ;;  %v1410_v22 = vrot.slane %v498_v58, 1  ;;  %8838 = vst [vmem:[#allocation35_spill] sm:$0xff] %v6856_v18  ;;  %4757 = vmatpush3.bf16.msra.mxu0 %v6856_v18 }
  0xe1   : > { %v1883_v58 = vsel %vm784_vm3, %v6738_v28, 0  ;;  %4790 = vmatprep.subr.bf16.mxu0 %v6845_v21 }
  0xe2   : > { %v6817_v27 = vpop.permute.xlu1 %5046  ;;  %v1090_v8 = vsel %vm1037_vm4, %v1088_v15, %v1089_v29  ;;  %v1092_v57 = vsel %vm1037_vm4, %v1089_v29, %v1091_v36  ;;  %v1409_v36 = vsel %vm585_vm2, %v1407_v46, %v1408_v16  ;;  %v1411_v15 = vsel %vm585_vm2, %v1408_v16, %v1410_v22  ;;  %4711 = vmatpush3.bf16.msra.mxu1 %v1883_v58  ;;  %v507_v16 = vld [vmem:[#allocation2 + $0x180] sm:$0xff]  ;;  %v6880_v58 = vld [vmem:[#allocation2 + $0x188] sm:$0xff] }
  0xe3   : > { %5326 = vrot.lane.b32.xlu1 %v5325_v12, %s5856_s24  ;;  %v6824_v55 = vpop.permute.xlu0 %5036  ;;  %4836 = vmatprep.subr.bf16.mxu1 %v6607_v38  ;;  %v1415_v46 = vrot.slane %v502_v25, 1  ;;  %v1098_v25 = vrot.slane %v507_v16, 7  ;;  %v6901_v16 = vld [vmem:[#allocation2 + $0x1a8] sm:$0xff] }
  0xe4   : > { %5321 = vrot.lane.b32.xlu0 %v5320_v56, %s5855_s6  ;;  %v503_v56 = vld [vmem:[#allocation2 + $0x160] sm:$0xff]  ;;  %v1104_v49 = vrot.slane %v6901_v16, 7 }
  0xe5   : > { %v1093_v32 = vrot.slane %v503_v56, 7  ;;  %v5365_v56 = vpack.i.bf16 %v1411_v15, %v1409_v36  ;;  %v1099_v15 = vrot.slane %v6880_v58, 7 }
  0xe6   : > { %v6832_v12 = vpop.permute.xlu1 %5056 }
  0xe7   : > { %8837 = vst [vmem:[#allocation33_spill] sm:$0xff] %v6832_v12  ;;  %5336 = vrot.lane.b32.xlu1 %v5335_v62, %s5857_s26  ;;  %v6838_v24 = vpop.permute.xlu0 %5051  ;;  %v6850_v62 = vld [vmem:[#allocation2 + $0x170] sm:$0xff] }
  0xe8   : > { %5331 = vrot.lane.b32.xlu0 %v5330_v10, %s5856_s24  ;;  %v5355_v10 = vpack.i.bf16 %v6801_v63, %v6799_v59  ;;  %v1096_v29 = vrot.slane %v6850_v62, 7  ;;  %v5350_v59 = vpack.i.bf16 %v1092_v57, %v1090_v8  ;;  %v1412_v63 = vrot.slane %v6820_v45, 1 }
  0xe9   : > { %v5360_v57 = vpack.i.bf16 %v6822_v20, %v6820_v45 }
  0xea   : > { %v6861_v54 = vpop.permute.xlu1 %5066  ;;  %v1097_v8 = vsel %vm1037_vm4, %v1094_v50, %v1096_v29  ;;  %v1418_v29 = vrot.slane %v6850_v62, 1 }
  0xeb   : > { %5346 = vrot.lane.b32.xlu1 %v5345_v2, %s5855_s6  ;;  %8839 = vst [vmem:[#allocation34_spill] sm:$0xff] %v6861_v54  ;;  %v1413_v2 = vrot.slane %v6822_v20, 1 }
  0xec   : > { %5341 = vrot.lane.b32.xlu0 %v5340_v34, %s5857_s26  ;;  %v6872_v28 = vpop.permute.xlu0 %5061  ;;  %v1095_v34 = vsel %vm1037_vm4, %v1093_v32, %v1094_v50  ;;  %v1417_v50 = vrot.slane %v6848_v31, 1 }
  0xed   : > { %8840 = vst [vmem:[#allocation36_spill] sm:$0xff] %v6872_v28  ;;  %v1414_v40 = vsel %vm585_vm2, %v1412_v63, %v1413_v2  ;;  %v1416_v36 = vsel %vm585_vm2, %v1413_v2, %v1415_v46  ;;  %v5375_v32 = vpack.i.bf16 %v1097_v8, %v1095_v34  ;;  %v511_v63 = vld [vmem:[#allocation2 + $0x1a0] sm:$0xff]  ;;  %v6903_v2 = vld [vmem:[#allocation2 + $0x1b0] sm:$0xff]  ;;  %v5385_v8 = vpack.i.bf16 %v6850_v62, %v6848_v31 }
  0xee   : > { %v6878_v22 = vpop.permute.xlu1 %5076  ;;  %v5370_v20 = vpack.i.bf16 %v1416_v36, %v1414_v40  ;;  %v1423_v31 = vrot.slane %v6882_v39, 1 }
  0xef   : > { %5356 = vrot.lane.b32.xlu1 %v5355_v10, %s5856_s24  ;;  %8841 = vst [vmem:[#allocation37_spill] sm:$0xff] %v6878_v22  ;;  %v506_v10 = vld [vmem:[#allocation2 + $0x178] sm:$0x1]  ;;  %v1101_v22 = vrot.slane %v6882_v39, 7 }
  0xf0   : > { %5351 = vrot.lane.b32.xlu0 %v5350_v59, %s5855_s6  ;;  %v6887_v38 = vpop.permute.xlu0 %5071  ;;  %v1420_v45 = vrot.slane %v506_v10, 1  ;;  %v1419_v10 = vsel %vm585_vm2, %v1417_v50, %v1418_v29 }
  0xf1   : > { %8842 = vst [vmem:[#allocation38_spill] sm:$0xff] %v6887_v38  ;;  %v1102_v34 = vsel %vm1037_vm4, %v1099_v15, %v1101_v22 }
  0xf2   : > { %v1421_v36 = vsel %vm585_vm2, %v1418_v29, %v1420_v45  ;;  %v6924_v29 = vld [vmem:[#allocation2 + $0x1c8] sm:$0xff]  ;;  %v6926_v45 = vld [vmem:[#allocation2 + $0x1d0] sm:$0xff] }
  0xf3   : > { %5366 = vrot.lane.b32.xlu1 %v5365_v56, %s5857_s26  ;;  %v6898_v59 = vpop.permute.xlu1 %5086  ;;  %v1100_v56 = vsel %vm1037_vm4, %v1098_v25, %v1099_v15  ;;  %v1422_v15 = vrot.slane %v6880_v58, 1  ;;  %v5395_v50 = vpack.i.bf16 %v1421_v36, %v1419_v10  ;;  %v1109_v36 = vrot.slane %v6924_v29, 7 }
  0xf4   : > { %8843 = vst [vmem:[#allocation39_spill] sm:$0xff] %v6898_v59  ;;  %5361 = vrot.lane.b32.xlu0 %v5360_v57, %s5856_s24  ;;  %v510_v57 = vld [vmem:[#allocation2 + $0x198] sm:$0x1]  ;;  %v1103_v59 = vrot.slane %v511_v63, 7  ;;  %v5380_v22 = vpack.i.bf16 %v1102_v34, %v1100_v56  ;;  %v5390_v34 = vpack.i.bf16 %v6882_v39, %v6880_v58  ;;  %v1111_v18 = vrot.slane %v6926_v45, 7  ;;  %v519_v58 = vld [vmem:[#allocation2 + $0x1e0] sm:$0xff] }
  0xf5   : > { %v6905_v46 = vpop.permute.xlu0 %5081  ;;  %v1425_v62 = vrot.slane %v510_v57, 1  ;;  %v1430_v39 = vrot.slane %v514_v61, 1  ;;  %v5415_v61 = vpack.i.bf16 %v6903_v2, %v6901_v16 }
  0xf6   : > { %8844 = vst [vmem:[#allocation40_spill] sm:$0xff] %v6905_v46  ;;  %v1106_v46 = vrot.slane %v6903_v2, 7  ;;  %v1105_v63 = vsel %vm1037_vm4, %v1103_v59, %v1104_v49 }
  0xf7   : > { %5376 = vrot.lane.b32.xlu1 %v5375_v32, %s5855_s6  ;;  %v6913_v40 = vpop.permute.xlu1 %5096  ;;  %v515_v32 = vld [vmem:[#allocation2 + $0x1c0] sm:$0xff]  ;;  %v1426_v10 = vsel %vm585_vm2, %v1423_v31, %v1425_v62  ;;  %v6947_v62 = vld [vmem:[#allocation2 + $0x1e8] sm:$0xff] }
  0xf8   : > { %5371 = vrot.lane.b32.xlu0 %v5370_v20, %s5857_s26  ;;  %v1107_v20 = vsel %vm1037_vm4, %v1104_v49, %v1106_v46  ;;  %v1108_v57 = vrot.slane %v515_v32, 7  ;;  %v1427_v46 = vrot.slane %v6901_v16, 1  ;;  %v6949_v32 = vld [vmem:[#allocation2 + $0x1f0] sm:$0xff] }
  0xf9   : > { %v6919_v25 = vpop.permute.xlu0 %5091  ;;  %v5405_v49 = vpack.i.bf16 %v1107_v20, %v1105_v63  ;;  %v1113_v20 = vrot.slane %v519_v58, 7  ;;  %v1116_v9 = vrot.slane %v6949_v32, 7  ;;  %v525_v58 = vld [vmem:[#allocation2 + $0x210] sm:$0xff] }
  0xfa   : > { %v1110_v38 = vsel %vm1037_vm4, %v1108_v57, %v1109_v36  ;;  %v1121_v26 = vrot.slane %v525_v58, 7 }
  0xfb   : > { %5386 = vrot.lane.b32.xlu1 %v5385_v8, %s5856_s24  ;;  %v1424_v8 = vsel %vm585_vm2, %v1422_v15, %v1423_v31 }
  0xfc   : > { %5381 = vrot.lane.b32.xlu0 %v5380_v22, %s5855_s6  ;;  %v6931_v56 = vpop.permute.xlu1 %5106  ;;  %v1428_v22 = vrot.slane %v6903_v2, 1  ;;  %v5400_v31 = vpack.i.bf16 %v1426_v10, %v1424_v8  ;;  %v1114_v10 = vrot.slane %v6947_v62, 7 }
  0xfe   : > { %v6939_v59 = vpop.permute.xlu0 %5101  ;;  %v1429_v3 = vsel %vm585_vm2, %v1427_v46, %v1428_v22  ;;  %v1431_v8 = vsel %vm585_vm2, %v1428_v22, %v1430_v39  ;;  %v523_v22 = vld [vmem:[#allocation2 + $0x200] sm:$0xff]  ;;  %v524_v39 = vld [vmem:[#allocation2 + $0x208] sm:$0xff]  ;;  %v1115_v54 = vsel %vm1037_vm4, %v1113_v20, %v1114_v10  ;;  %v1437_v20 = vrot.slane %v6947_v62, 1 }
  0xff   : > { %5396 = vrot.lane.b32.xlu1 %v5395_v50, %s5857_s26  ;;  %v1112_v50 = vsel %vm1037_vm4, %v1109_v36, %v1111_v18  ;;  %v1432_v36 = vrot.slane %v6924_v29, 1  ;;  %v5425_v46 = vpack.i.bf16 %v1431_v8, %v1429_v3  ;;  %v1118_v3 = vrot.slane %v523_v22, 7 }
 0x100   : > { %5391 = vrot.lane.b32.xlu0 %v5390_v34, %s5856_s24  ;;  %v6945_v15 = vpop.permute.xlu1 %5116  ;;  %v518_v34 = vld [vmem:[#allocation2 + $0x1d8] sm:$0x1]  ;;  %v5410_v57 = vpack.i.bf16 %v1112_v50, %v1110_v38  ;;  %v5420_v50 = vpack.i.bf16 %v6926_v45, %v6924_v29  ;;  %v1119_v8 = vrot.slane %v524_v39, 7  ;;  %v6984_v29 = vld [vmem:[#allocation2 + $0x228] sm:$0xff]  ;;  %v1123_v22 = vrot.slane %v527_v42, 7 }
 0x101   : > { %v1435_v16 = vrot.slane %v518_v34, 1 }
 0x102   : > { %v6953_v63 = vpop.permute.xlu0 %5111 }
 0x103   : > { %5406 = vrot.lane.b32.xlu1 %v5405_v49, %s5855_s6  ;;  %v1433_v49 = vrot.slane %v6926_v45, 1 }
 0x104   : > { %5401 = vrot.lane.b32.xlu0 %v5400_v31, %s5857_s26  ;;  %v1117_v31 = vsel %vm1037_vm4, %v1114_v10, %v1116_v9  ;;  %v1438_v10 = vrot.slane %v6949_v32, 1 }
 0x105   : > { %v6963_v18 = vpop.permute.xlu1 %5126  ;;  %v1434_v34 = vsel %vm585_vm2, %v1432_v36, %v1433_v49  ;;  %v5435_v9 = vpack.i.bf16 %v1117_v31, %v1115_v54  ;;  %v1124_v31 = vrot.slane %v6984_v29, 7 }
 0x106   : > { %v6967_v2 = vpop.permute.xlu0 %5121  ;;  %v1439_v43 = vsel %vm585_vm2, %v1437_v20, %v1438_v10 }
 0x107   : > { %5416 = vrot.lane.b32.xlu1 %v5415_v61, %s5856_s24  ;;  %v1436_v61 = vsel %vm585_vm2, %v1433_v49, %v1435_v16  ;;  %v6989_v49 = vld [vmem:[#allocation2 + $0x230] sm:$0xff]  ;;  %v1120_v16 = vsel %vm1037_vm4, %v1118_v3, %v1119_v8 }
 0x108   : > { %5411 = vrot.lane.b32.xlu0 %v5410_v57, %s5855_s6  ;;  %v1440_v57 = vrot.slane %v522_v19, 1  ;;  %v5430_v36 = vpack.i.bf16 %v1436_v61, %v1434_v34  ;;  %v5445_v19 = vpack.i.bf16 %v6949_v32, %v6947_v62  ;;  %v1126_v61 = vrot.slane %v6989_v49, 7 }
 0x109   : > { %v6973_v38 = vpop.permute.xlu1 %5136  ;;  %v1125_v32 = vsel %vm1037_vm4, %v1123_v22, %v1124_v31 }
 0x10a   : > { %v6979_v28 = vpop.permute.xlu0 %5131  ;;  %v1441_v34 = vsel %vm585_vm2, %v1438_v10, %v1440_v57  ;;  %v1127_v20 = vsel %vm1037_vm4, %v1124_v31, %v1126_v61  ;;  %v1447_v10 = vrot.slane %v6984_v29, 1  ;;  %v1448_v57 = vrot.slane %v6989_v49, 1 }
 0x10b   : > { %5426 = vrot.lane.b32.xlu1 %v5425_v46, %s5857_s26  ;;  %v1122_v46 = vsel %vm1037_vm4, %v1119_v8, %v1121_v26  ;;  %v530_v8 = vld [vmem:[#allocation2 + $0x238] sm:$0x1]  ;;  %v5455_v42 = vpack.i.bf16 %v1441_v34, %v1439_v43  ;;  %v5465_v43 = vpack.i.bf16 %v1127_v20, %v1125_v32 }
 0x10c   : > { %5421 = vrot.lane.b32.xlu0 %v5420_v50, %s5856_s24  ;;  %v526_v50 = vld [vmem:[#allocation2 + $0x218] sm:$0x1]  ;;  %v5440_v3 = vpack.i.bf16 %v1122_v46, %v1120_v16  ;;  %v5450_v46 = vpack.i.bf16 %v525_v58, %v524_v39  ;;  %v1449_v22 = vsel %vm585_vm2, %v1447_v10, %v1448_v57  ;;  %v5109_v10 = vunpack.i.h.bf16 %v6931_v56 }
 0x10d   : > { %v6987_v45 = vpop.permute.xlu1 %5146  ;;  %v1445_v12 = vrot.slane %v526_v50, 1 }
 0x10e   : > { %8845 = vst [vmem:[#allocation41_spill] sm:$0xff] %v6987_v45  ;;  %v6993_v54 = vpop.permute.xlu0 %5141  ;;  %v1443_v45 = vrot.slane %v525_v58, 1  ;;  %v5098_v58 = vunpack.i.l.bf16 %v6913_v40 }
 0x10f   : > { %5436 = vrot.lane.b32.xlu1 %v5435_v9, %s5855_s6  ;;  %v1442_v9 = vrot.slane %v524_v39, 1  ;;  %v5099_v39 = vunpack.i.h.bf16 %v6913_v40 }
 0x110   : > { %5431 = vrot.lane.b32.xlu0 %v5430_v36, %s5857_s26  ;;  %v1450_v36 = vrot.slane %v530_v8, 1  ;;  %v5093_v8 = vunpack.i.l.bf16 %v6919_v25  ;;  %v1587_v20 = vsel %vm1560_vm5, %v6424_v0, %v5098_v58  ;;  %v5119_v58 = vunpack.i.h.bf16 %v6945_v15 }
 0x111   : > { %v7003_v26 = vpop.permute.xlu1 %5156  ;;  %v1444_v50 = vsel %vm585_vm2, %v1442_v9, %v1443_v45  ;;  %v1588_v40 = vsel %vm1560_vm5, %v6426_v23, %v5099_v39 }
 0x112   : > { %8846 = vst [vmem:[#allocation42_spill] sm:$0xff] %v7003_v26  ;;  %v7005_v62 = vpop.permute.xlu0 %5151  ;;  %v1446_v26 = vsel %vm585_vm2, %v1443_v45, %v1445_v12  ;;  %v1451_v31 = vsel %vm585_vm2, %v1448_v57, %v1450_v36  ;;  %v5094_v45 = vunpack.i.h.bf16 %v6919_v25  ;;  %v5108_v25 = vunpack.i.l.bf16 %v6931_v56 }
 0x113   : > { %5446 = vrot.lane.b32.xlu1 %v5445_v19, %s5856_s24  ;;  %v5460_v61 = vpack.i.bf16 %v1446_v26, %v1444_v50  ;;  %v5475_v12 = vpack.i.bf16 %v1451_v31, %v1449_v22  ;;  %v1585_v0 = vsel %vm1560_vm5, %v6436_v35, %v5093_v8  ;;  %v5104_v50 = vunpack.i.h.bf16 %v6939_v59 }
 0x114   : > { %5441 = vrot.lane.b32.xlu0 %v5440_v3, %s5855_s6  ;;  %v1586_v23 = vsel %vm1560_vm5, %v6445_v60, %v5094_v45  ;;  %v5103_v56 = vunpack.i.l.bf16 %v6939_v59  ;;  %v1592_v60 = vsel %vm1560_vm5, %v6461_v48, %v5109_v10  ;;  %v1591_v35 = vsel %vm1560_vm5, %v8827_v33, %v5108_v25 }
 0x115   : > { %v7013_v16 = vpop.permute.xlu1 %5166  ;;  %v5118_v59 = vunpack.i.l.bf16 %v6945_v15  ;;  %v5114_v33 = vunpack.i.h.bf16 %v6953_v63 }
 0x116   : > { %v7017_v19 = vpop.permute.xlu0 %5161  ;;  %v1589_v48 = vsel %vm1560_vm5, %v8830_v41, %v5103_v56 }
 0x117   : > { %5456 = vrot.lane.b32.xlu1 %v5455_v42, %s5857_s26  ;;  %v5470_v42 = vpack.i.bf16 %v6989_v49, %v6984_v29 }
 0x118   : > { %5451 = vrot.lane.b32.xlu0 %v5450_v46, %s5856_s24 }
 0x119   : > { %v7023_v34 = vpop.permute.xlu1 %5176 }
 0x11a   : > { %v7027_v3 = vpop.permute.xlu0 %5171 }
 0x11b   : > { %5466 = vrot.lane.b32.xlu1 %v5465_v43, %s5855_s6  ;;  %s5858_s6 = smov 32  }
 0x11c   : > { %5461 = vrot.lane.b32.xlu0 %v5460_v61, %s5857_s26 }
 0x11d   : > { %v5187_v9 = vpop.permute.xlu1 %5186 }
 0x11e   : > { %v5189_v26 = vunpack.i.h.bf16 %v5187_v9  ;;  %v5188_v32 = vunpack.i.l.bf16 %v5187_v9  ;;  %v5182_v57 = vpop.permute.xlu0 %5181 }
 0x11f   : > { %5476 = vrot.lane.b32.xlu1 %v5475_v12, %s5857_s26  ;;  %v5184_v49 = vunpack.i.h.bf16 %v5182_v57  ;;  %v5183_v46 = vunpack.i.l.bf16 %v5182_v57  ;;  %v1596_v57 = vsel %vm1560_vm5, %v8833_v30, %v5119_v58  ;;  %v5044_v30 = vunpack.i.h.bf16 %v6803_v6  ;;  %s8775_s26 = smov 64  }
 0x120   : > { %v7043_v36 = vsel %vm1597_vm6, %v1588_v40, %v5189_v26  ;;  %v7046_v29 = vsel %vm1597_vm6, %v1587_v20, %v5188_v32  ;;  %5471 = vrot.lane.b32.xlu0 %v5470_v42, %s5856_s24  ;;  %v1590_v26 = vsel %vm1560_vm5, %v8831_v44, %v5104_v50  ;;  %v5113_v32 = vunpack.i.l.bf16 %v6953_v63 }
 0x121   : > { %v5197_v43 = vpop.permute.xlu1 %5196  ;;  %v7056_v22 = vsel %vm1597_vm6, %v1585_v0, %v5183_v46  ;;  %v7059_v31 = vsel %vm1597_vm6, %v1586_v23, %v5184_v49  ;;  %v1595_v44 = vsel %vm1560_vm5, %v6488_v53, %v5118_v59  ;;  %v1594_v0 = vsel %vm1560_vm5, %v6508_v1, %v5114_v33 }
 0x122   : > { %v5199_v61 = vunpack.i.h.bf16 %v5197_v43  ;;  %v5198_v39 = vunpack.i.l.bf16 %v5197_v43  ;;  %v5192_v12 = vpop.permute.xlu0 %5191  ;;  %v1593_v50 = vsel %vm1560_vm5, %v6500_v47, %v5113_v32  ;;  %v5038_v1 = vunpack.i.l.bf16 %v6824_v55 }
 0x123   : > { %v5194_v9 = vunpack.i.h.bf16 %v5192_v12  ;;  %v5193_v42 = vunpack.i.l.bf16 %v5192_v12  ;;  %v7112_v47 = vsel %vm1560_vm5, %v6242_v5, %v5044_v30  ;;  %v5043_v59 = vunpack.i.l.bf16 %v6803_v6  ;;  %v8847_v6 = vld [vmem:[#allocation18_spill] sm:$0xff] }
 0x124   : > { %v7068_v45 = vsel %vm1597_vm6, %v1592_v60, %v5199_v61  ;;  %v7071_v8 = vsel %vm1597_vm6, %v1591_v35, %v5198_v39  ;;  %v5034_v61 = vunpack.i.h.bf16 %v6808_v17  ;;  %v5033_v60 = vunpack.i.l.bf16 %v6808_v17 }
 0x125   : > { %v5207_v15 = vpop.permute.xlu1 %5206  ;;  %v7080_v40 = vsel %vm1597_vm6, %v1589_v48, %v5193_v42  ;;  %v7083_v20 = vsel %vm1597_vm6, %v1590_v26, %v5194_v9  ;;  %v5039_v35 = vunpack.i.h.bf16 %v6824_v55  ;;  %v5128_v12 = vunpack.i.l.bf16 %v6963_v18 }
 0x126   : > { %v5209_v10 = vunpack.i.h.bf16 %v5207_v15  ;;  %v5208_v25 = vunpack.i.l.bf16 %v5207_v15  ;;  %v5202_v41 = vpop.permute.xlu0 %5201  ;;  %v1562_v9 = vsel %vm1560_vm5, %v6254_v11, %v5034_v61  ;;  %v5129_v42 = vunpack.i.h.bf16 %v6963_v18 }
 0x127   : > { %v5204_v46 = vunpack.i.h.bf16 %v5202_v41  ;;  %v5203_v23 = vunpack.i.l.bf16 %v5202_v41  ;;  %v5124_v17 = vunpack.i.h.bf16 %v6967_v2  ;;  %v5123_v26 = vunpack.i.l.bf16 %v6967_v2 }
 0x128   : > { %v7090_v49 = vsel %vm1597_vm6, %v1596_v57, %v5209_v10  ;;  %v7093_v63 = vsel %vm1597_vm6, %v1595_v44, %v5208_v25  ;;  %v1561_v55 = vsel %vm1560_vm5, %v6245_v7, %v5033_v60  ;;  %v1564_v5 = vsel %vm1560_vm5, %v6289_v37, %v5039_v35  ;;  %v2899_v60 = vld [vmem:[#allocation3] sm:$0xff]  ;;  %v2900_v35 = vld [vmem:[#allocation3 + $0x8] sm:$0xff] }
 0x129   : > { %v5217_v56 = vpop.permute.xlu1 %5216  ;;  %v7101_v53 = vsel %vm1597_vm6, %v1593_v50, %v5203_v23  ;;  %v7104_v43 = vsel %vm1597_vm6, %v1594_v0, %v5204_v46  ;;  %v1563_v33 = vsel %vm1560_vm5, %v8847_v6, %v5038_v1  ;;  %v1601_v7 = vsel %vm1597_vm6, %v1564_v5, %v5129_v42  ;;  %2963 = vrot.lane.b32.xlu0 %v2899_v60, %s5858_s6  ;;  %v2901_v5 = vld [vmem:[#allocation3 + $0x10] sm:$0xff]  ;;  %v2902_v6 = vld [vmem:[#allocation3 + $0x18] sm:$0xff] }
 0x12a   : > { %v5212_v39 = vpop.permute.xlu0 %5211  ;;  %v5219_v32 = vunpack.i.h.bf16 %v5217_v56  ;;  %v5218_v11 = vunpack.i.l.bf16 %v5217_v56  ;;  %v1600_v2 = vsel %vm1597_vm6, %v1563_v33, %v5128_v12  ;;  %v1598_v25 = vsel %vm1597_vm6, %v1561_v55, %v5123_v26  ;;  %2965 = vrot.lane.b32.xlu1 %v2900_v35, %s5858_s6  ;;  %v2904_v35 = vld [vmem:[#allocation3 + $0x28] sm:$0xff] }
 0x12b   : > { %v5213_v15 = vunpack.i.l.bf16 %v5212_v39  ;;  %v5214_v10 = vunpack.i.h.bf16 %v5212_v39  ;;  %v1599_v37 = vsel %vm1597_vm6, %v1562_v9, %v5124_v17  ;;  %v5134_v41 = vunpack.i.h.bf16 %v6979_v28 }
 0x12c   : > { %v5133_v46 = vunpack.i.l.bf16 %v6979_v28  ;;  %v1637_v30 = vsel %vm1634_vm7, %v1600_v2, %v5218_v11  ;;  %v1638_v61 = vsel %vm1634_vm7, %v1601_v7, %v5219_v32 }
 0x12d   : > { %v5227_v58 = vpop.permute.xlu1 %5226  ;;  %v1635_v39 = vsel %vm1634_vm7, %v1598_v25, %v5213_v15  ;;  %v1636_v42 = vsel %vm1634_vm7, %v1599_v37, %v5214_v10  ;;  %v1565_v37 = vsel %vm1560_vm5, %v6240_v4, %v5043_v59  ;;  %2967 = vrot.lane.b32.xlu0 %v2901_v5, %s5858_s6  ;;  %v2903_v59 = vld [vmem:[#allocation3 + $0x20] sm:$0xff]  ;;  %v2905_v5 = vld [vmem:[#allocation3 + $0x30] sm:$0xff] }
 0x12e   : > { %v7121_v48 = vpop.permute.xlu0 %5221  ;;  %v5228_v57 = vunpack.i.l.bf16 %v5227_v58  ;;  %v5229_v50 = vunpack.i.h.bf16 %v5227_v58  ;;  %2969 = vrot.lane.b32.xlu1 %v2902_v6, %s5858_s6 }
 0x12f   : > { %v5224_v1 = vunpack.i.h.bf16 %v7121_v48  ;;  %v5223_v28 = vunpack.i.l.bf16 %v7121_v48 }
 0x130   : > { %v1672_v55 = vsel %vm1671_vm8, %v1635_v39, %v5228_v57  ;;  %v1673_v25 = vsel %vm1671_vm8, %v1636_v42, %v5229_v50  ;;  %v5049_v57 = vunpack.i.h.bf16 %v6817_v27  ;;  %v1602_v50 = vsel %vm1597_vm6, %v1565_v37, %v5133_v46 }
 0x131   : > { %v7129_v18 = vpop.permute.xlu1 %5236  ;;  %2971 = vrot.lane.b32.xlu0 %v2903_v59, %s5858_s6  ;;  %v5144_v37 = vunpack.i.h.bf16 %v6993_v54 }
 0x132   : > { %v5232_v44 = vpop.permute.xlu0 %5231  ;;  %v5239_v2 = vunpack.i.h.bf16 %v7129_v18  ;;  %v5238_v10 = vunpack.i.l.bf16 %v7129_v18  ;;  %v1603_v18 = vsel %vm1597_vm6, %v7112_v47, %v5134_v41  ;;  %v5139_v47 = vunpack.i.h.bf16 %v6973_v38  ;;  %2973 = vrot.lane.b32.xlu1 %v2904_v35, %s5858_s6 }
 0x133   : > { %v5234_v23 = vunpack.i.h.bf16 %v5232_v44  ;;  %v5233_v0 = vunpack.i.l.bf16 %v5232_v44  ;;  %v5138_v41 = vunpack.i.l.bf16 %v6973_v38  ;;  %v1568_v6 = vsel %vm1560_vm5, %v6259_v14, %v5049_v57  ;;  %v2906_v14 = vld [vmem:[#allocation3 + $0x38] sm:$0xff] }
 0x134   : > { %v5143_v57 = vunpack.i.l.bf16 %v6993_v54 }
 0x135   : > { %v5247_v56 = vpop.permute.xlu1 %5246  ;;  %v1674_v17 = vsel %vm1671_vm8, %v1637_v30, %v5233_v0  ;;  %v1675_v26 = vsel %vm1671_vm8, %v1638_v61, %v5234_v23  ;;  %v5048_v0 = vunpack.i.l.bf16 %v6817_v27  ;;  %v1639_v30 = vsel %vm1634_vm7, %v1602_v50, %v5223_v28  ;;  %v5495_v27 = vld [vmem:[%s8709_s1 + $0x78] sm:$0xff]   ;;  %2975 = vrot.lane.b32.xlu0 %v2905_v5, %s5858_s6  ;;  %v2907_v50 = vld [vmem:[#allocation3 + $0x40] sm:$0xff] }
 0x136   : > { %v5249_v12 = vunpack.i.h.bf16 %v5247_v56  ;;  %v5248_v9 = vunpack.i.l.bf16 %v5247_v56  ;;  %v5242_v58 = vpop.permute.xlu0 %5241  ;;  %v1640_v61 = vsel %vm1634_vm7, %v1603_v18, %v5224_v1  ;;  %v1676_v46 = vsel %vm1671_vm8, %v1639_v30, %v5238_v10  ;;  %v5694_v18 = vld [vmem:[%s8709_s1 + $0x8] sm:$0xff]   ;;  %2977 = vrot.lane.b32.xlu1 %v2906_v14, %s5858_s6  ;;  %v8849_v5 = vld [vmem:[#allocation41_spill] sm:$0xff] }
 0x137   : > { %v5244_v33 = vunpack.i.h.bf16 %v5242_v58  ;;  %v5243_v32 = vunpack.i.l.bf16 %v5242_v58 }
 0x138   : > { %v1711_v11 = vsel %vm1708_vm9, %v1674_v17, %v5248_v9  ;;  %v1712_v15 = vsel %vm1708_vm9, %v1675_v26, %v5249_v12  ;;  %v1677_v12 = vsel %vm1671_vm8, %v1640_v61, %v5239_v2 }
 0x139   : > { %v5257_v48 = vpop.permute.xlu1 %5256  ;;  %v1746_v7 = vpack.c.bf16 %v1712_v15, %v1711_v11  ;;  %v1709_v44 = vsel %vm1708_vm9, %v1672_v55, %v5243_v32  ;;  %v1710_v23 = vsel %vm1708_vm9, %v1673_v25, %v5244_v33  ;;  %v1567_v33 = vsel %vm1560_vm5, %v6257_v13, %v5048_v0  ;;  %v5496_v32 = vld [vmem:[%s8709_s1 + $0x80] sm:$0xff]   ;;  %2979 = vrot.lane.b32.xlu0 %v2907_v50, %s5858_s6  ;;  %v8852_v50 = vld [vmem:[#allocation36_spill] sm:$0xff] }
 0x13a   : > { %v5252_v56 = vpop.permute.xlu0 %5251  ;;  %v1745_v4 = vpack.c.bf16 %v1710_v23, %v1709_v44  ;;  %v5259_v42 = vunpack.i.h.bf16 %v5257_v48  ;;  %v5258_v1 = vunpack.i.l.bf16 %v5257_v48  ;;  %v5054_v11 = vunpack.i.h.bf16 %v6838_v24 }
 0x13b   : > { %4712 = vmatprep.mubr.msk.bf16.mxu1 %vm1833_vm10, %v1746_v7  ;;  %v5254_v39 = vunpack.i.h.bf16 %v5252_v56  ;;  %v5253_v60 = vunpack.i.l.bf16 %v5252_v56  ;;  %v5053_v15 = vunpack.i.l.bf16 %v6838_v24  ;;  %v1604_v2 = vsel %vm1597_vm6, %v1567_v33, %v5138_v41  ;;  %v5693_v24 = vld [vmem:[%s8709_s1] sm:$0xff]   ;;  %v2908_v41 = vld [vmem:[#allocation3 + $0x48] sm:$0xff] }
 0x13c   : > { %4758 = vmatprep.mubr.msk.bf16.mxu0 %vm1833_vm10, %v1745_v4  ;;  %v1641_v10 = vsel %vm1634_vm7, %v1604_v2, %v5258_v1  ;;  %v1570_v35 = vsel %vm1560_vm5, %v6312_v52, %v5054_v11  ;;  %v5148_v33 = vunpack.i.l.bf16 %v8849_v5  ;;  %2981 = vrot.lane.b32.xlu1 %v2908_v41, %s5858_s6 }
 0x13d   : > { %v5267_v9 = vpop.permute.xlu1 %5266  ;;  %v1713_v28 = vsel %vm1708_vm9, %v1676_v46, %v5253_v60  ;;  %v1714_v58 = vsel %vm1708_vm9, %v1677_v12, %v5254_v39  ;;  %4759 = vmatmul.mubr.msk.bf16.vlgmr.msra.gmra.mrb[0].mxu0 %vm1833_vm10, %v1746_v7  ;;  %v8848_v46 = vld [vmem:[#allocation33_spill] sm:$0xff]  ;;  %v1607_v1 = vsel %vm1597_vm6, %v1570_v35, %v5144_v37 }
 0x13e   : > { %v5269_v17 = vunpack.i.h.bf16 %v5267_v9  ;;  %v5268_v26 = vunpack.i.l.bf16 %v5267_v9  ;;  %v5262_v38 = vpop.permute.xlu0 %5261  ;;  %v7179_v55 = vpack.c.bf16 %v1714_v58, %v1713_v28  ;;  %4791 = vmatpush3.bf16.msra.mxu0 %v6845_v21  ;;  %v1605_v21 = vsel %vm1597_vm6, %v1568_v6, %v5139_v47  ;;  %v5696_v37 = vld [vmem:[%s8709_s1 + $0x18] sm:$0xff]  }
 0x13f   : > { %4792 = vmatprep.subr.bf16.mxu0 %v5495_v27  ;;  %v1642_v48 = vsel %vm1634_vm7, %v1605_v21, %v5259_v42  ;;  %v5264_v56 = vunpack.i.h.bf16 %v5262_v38  ;;  %v5263_v4 = vunpack.i.l.bf16 %v5262_v38  ;;  %v1569_v47 = vsel %vm1560_vm5, %v6310_v51, %v5053_v15  ;;  %v2909_v51 = vld [vmem:[#allocation3 + $0x50] sm:$0xff] }
 0x140   : > { %4713 = vmatmul.mubr.msk.bf16.vlgmr.msra.gmra.mrb[0].mxu1 %vm1833_vm10, %v7179_v55  ;;  %4762 = vmatprep.mubr.msk.bf16.mxu0 %vm1833_vm10, %v7179_v55  ;;  %v1678_v44 = vsel %vm1671_vm8, %v1641_v10, %v5268_v26  ;;  %v1679_v23 = vsel %vm1671_vm8, %v1642_v48, %v5269_v17  ;;  %v5059_v12 = vunpack.i.h.bf16 %v8848_v46  ;;  %v5058_v9 = vunpack.i.l.bf16 %v8848_v46  ;;  %v5695_v38 = vld [vmem:[%s8709_s1 + $0x10] sm:$0xff]   ;;  %v5500_v46 = vld [vmem:[%s8709_s1 + $0xa0] sm:$0x3f]  }
 0x141   : > { %v5277_v13 = vpop.permute.xlu1 %5276  ;;  %4843 = vmatpush3.bf16.msra.mxu1 %v5693_v24  ;;  %v1606_v42 = vsel %vm1597_vm6, %v1569_v47, %v5143_v57  ;;  %v1644_v58 = vsel %vm1634_vm7, %v1607_v1, %v5264_v56  ;;  %v5149_v6 = vunpack.i.h.bf16 %v8849_v5  ;;  %v5498_v10 = vld [vmem:[%s8709_s1 + $0x90] sm:$0xff]   ;;  %2983 = vrot.lane.b32.xlu0 %v2909_v51, %s5858_s6  ;;  %v5064_v56 = vunpack.i.h.bf16 %v8852_v50  ;;  %v5697_v51 = vld [vmem:[%s8709_s1 + $0x20] sm:$0xff]  }
 0x142   : > { %v5279_v7 = vunpack.i.h.bf16 %v5277_v13  ;;  %v5278_v25 = vunpack.i.l.bf16 %v5277_v13  ;;  %v5272_v0 = vpop.permute.xlu0 %5271  ;;  %4793 = vmatpush3.bf16.msra.mxu0 %v5495_v27  ;;  %4837 = vmatprep.subr.bf16.mxu1 %v5694_v18  ;;  %v5497_v27 = vld [vmem:[%s8709_s1 + $0x88] sm:$0xff]   ;;  %v1643_v52 = vsel %vm1634_vm7, %v1606_v42, %v5263_v4  ;;  %v8850_v57 = vld [vmem:[#allocation20_spill] sm:$0xff]  ;;  %v5063_v4 = vunpack.i.l.bf16 %v8852_v50  ;;  %v8856_v50 = vld [vmem:[#allocation42_spill] sm:$0xff] }
 0x143   : > { %4794 = vmatprep.subr.bf16.mxu0 %v5496_v32  ;;  %v5274_v54 = vunpack.i.h.bf16 %v5272_v0  ;;  %v5273_v61 = vunpack.i.l.bf16 %v5272_v0 }
 0x144   : > { %v1715_v59 = vsel %vm1708_vm9, %v1678_v44, %v5278_v25  ;;  %v1716_v30 = vsel %vm1708_vm9, %v1679_v23, %v5279_v7  ;;  %v1572_v44 = vsel %vm1560_vm5, %v8850_v57, %v5059_v12  ;;  %v8851_v23 = vld [vmem:[#allocation19_spill] sm:$0xff]  ;;  %v5154_v12 = vunpack.i.h.bf16 %v7005_v62 }
 0x145   : > { %v5287_v39 = vpop.permute.xlu1 %5286  ;;  %v7214_v60 = vpack.c.bf16 %v1716_v30, %v1715_v59  ;;  %4844 = vmatpush3.bf16.msra.mxu1 %v5694_v18  ;;  %v1680_v11 = vsel %vm1671_vm8, %v1643_v52, %v5273_v61  ;;  %v1681_v15 = vsel %vm1671_vm8, %v1644_v58, %v5274_v54  ;;  %v1571_v0 = vsel %vm1560_vm5, %v8851_v23, %v5058_v9  ;;  %v2910_v18 = vld [vmem:[#allocation3 + $0x58] sm:$0xff] }
 0x146   : > { %v5282_v28 = vpop.permute.xlu0 %5281  ;;  %4795 = vmatpush3.bf16.msra.mxu0 %v5496_v32  ;;  %4838 = vmatprep.subr.bf16.mxu1 %v5695_v38  ;;  %v5289_v2 = vunpack.i.h.bf16 %v5287_v39  ;;  %v5288_v13 = vunpack.i.l.bf16 %v5287_v39  ;;  %v1609_v59 = vsel %vm1597_vm6, %v1572_v44, %v5149_v6  ;;  %v1608_v30 = vsel %vm1597_vm6, %v1571_v0, %v5148_v33  ;;  %v5499_v61 = vld [vmem:[%s8709_s1 + $0x98] sm:$0xff]   ;;  %v2911_v39 = vld [vmem:[#allocation3 + $0x60] sm:$0xff]  ;;  %v8853_v33 = vld [vmem:[#allocation24_spill] sm:$0xff] }
 0x147   : > { %4716 = vmatprep.mubr.msk.bf16.mxu1 %vm1833_vm10, %v7214_v60  ;;  %4763 = vmatmul.mubr.msk.bf16.gmra.mrb[4].mxu0 %vm1833_vm10, %v7214_v60  ;;  %v5284_v17 = vunpack.i.h.bf16 %v5282_v28  ;;  %v5283_v26 = vunpack.i.l.bf16 %v5282_v28  ;;  %v5153_v9 = vunpack.i.l.bf16 %v7005_v62 }
 0x148   : > { %4796 = vmatprep.subr.bf16.mxu0 %v5497_v27  ;;  %v1646_v35 = vsel %vm1634_vm7, %v1609_v59, %v5289_v2  ;;  %2985 = vrot.lane.b32.xlu1 %v2910_v18, %s5858_s6  ;;  %v2314_v2 = vsel %vm784_vm3, %v5500_v46, 0  ;;  %v5698_v18 = vld [vmem:[%s8709_s1 + $0x28] sm:$0xff]  }
 0x149   : > { %v5297_v21 = vpop.permute.xlu1 %5296  ;;  %v1717_v32 = vsel %vm1708_vm9, %v1680_v11, %v5283_v26  ;;  %v1718_v14 = vsel %vm1708_vm9, %v1681_v15, %v5284_v17  ;;  %4845 = vmatpush3.bf16.msra.mxu1 %v5695_v38  ;;  %2987 = vrot.lane.b32.xlu0 %v2911_v39, %s5858_s6  ;;  %v1574_v11 = vsel %vm1560_vm5, %v8853_v33, %v5064_v56  ;;  %v8854_v15 = vld [vmem:[#allocation23_spill] sm:$0xff]  ;;  %v5159_v56 = vunpack.i.h.bf16 %v8856_v50 }
 0x14a   : > { %v5299_v48 = vunpack.i.h.bf16 %v5297_v21  ;;  %v5298_v7 = vunpack.i.l.bf16 %v5297_v21  ;;  %v5292_v25 = vpop.permute.xlu0 %5291  ;;  %v7248_v24 = vpack.c.bf16 %v1718_v14, %v1717_v32  ;;  %4839 = vmatprep.subr.bf16.mxu1 %v5696_v37  ;;  %4797 = vmatpush3.bf16.msra.mxu0 %v5497_v27  ;;  %v1645_v27 = vsel %vm1634_vm7, %v1608_v30, %v5288_v13  ;;  %v2912_v13 = vld [vmem:[#allocation3 + $0x68] sm:$0xff]  ;;  %v8855_v32 = vld [vmem:[#allocation34_spill] sm:$0xff] }
 0x14b   : > { %4798 = vmatprep.subr.bf16.mxu0 %v5498_v10  ;;  %v5294_v52 = vunpack.i.h.bf16 %v5292_v25  ;;  %v5293_v58 = vunpack.i.l.bf16 %v5292_v25  ;;  %v1573_v21 = vsel %vm1560_vm5, %v8854_v15, %v5063_v4  ;;  %v5069_v14 = vunpack.i.h.bf16 %v8855_v32 }
 0x14c   : > { %4717 = vmatmul.mubr.msk.bf16.gmra.mrb[4].mxu1 %vm1833_vm10, %v7248_v24  ;;  %4766 = vmatprep.mubr.msk.bf16.mxu0 %vm1833_vm10, %v7248_v24  ;;  %v1682_v42 = vsel %vm1671_vm8, %v1645_v27, %v5298_v7  ;;  %v1683_v1 = vsel %vm1671_vm8, %v1646_v35, %v5299_v48  ;;  %v1610_v48 = vsel %vm1597_vm6, %v1573_v21, %v5153_v9  ;;  %v5158_v4 = vunpack.i.l.bf16 %v8856_v50  ;;  %v8861_v50 = vld [vmem:[#allocation28_spill] sm:$0xff] }
 0x14d   : > { %v5307_v54 = vpop.permute.xlu1 %5306  ;;  %4846 = vmatpush3.bf16.msra.mxu1 %v5696_v37  ;;  %v1611_v7 = vsel %vm1597_vm6, %v1574_v11, %v5154_v12  ;;  %v2913_v37 = vld [vmem:[#allocation3 + $0x70] sm:$0xff]  ;;  %v1647_v57 = vsel %vm1634_vm7, %v1610_v48, %v5293_v58  ;;  %2989 = vrot.lane.b32.xlu1 %v2912_v13, %s5858_s6  ;;  %v8859_v58 = vld [vmem:[#allocation38_spill] sm:$0xff]  ;;  %v5164_v13 = vunpack.i.h.bf16 %v7017_v19 }
 0x14e   : > { %v5309_v47 = vunpack.i.h.bf16 %v5307_v54  ;;  %v5308_v41 = vunpack.i.l.bf16 %v5307_v54  ;;  %v5302_v28 = vpop.permute.xlu0 %5301  ;;  %4840 = vmatprep.subr.bf16.mxu1 %v5697_v51  ;;  %4799 = vmatpush3.bf16.msra.mxu0 %v5498_v10  ;;  %v5068_v10 = vunpack.i.l.bf16 %v8855_v32  ;;  %v1648_v44 = vsel %vm1634_vm7, %v1611_v7, %v5294_v52 }
 0x14f   : > { %v5304_v62 = vunpack.i.h.bf16 %v5302_v28  ;;  %v5303_v38 = vunpack.i.l.bf16 %v5302_v28  ;;  %4800 = vmatprep.subr.bf16.mxu0 %v5499_v61  ;;  %2991 = vrot.lane.b32.xlu0 %v2913_v37, %s5858_s6  ;;  %v5163_v32 = vunpack.i.l.bf16 %v7017_v19  ;;  %v8862_v19 = vld [vmem:[#allocation27_spill] sm:$0xff] }
 0x150   : > { %v1719_v17 = vsel %vm1708_vm9, %v1682_v42, %v5308_v41  ;;  %v1720_v26 = vsel %vm1708_vm9, %v1683_v1, %v5309_v47  ;;  %v2914_v42 = vld [vmem:[#allocation3 + $0x78] sm:$0xff]  ;;  %v8857_v1 = vld [vmem:[#allocation22_spill] sm:$0xff] }
 0x151   : > { %v5317_v5 = vpop.permute.xlu1 %5316  ;;  %v7284_v6 = vpack.c.bf16 %v1720_v26, %v1719_v17  ;;  %4847 = vmatpush3.bf16.msra.mxu1 %v5697_v51  ;;  %v1684_v59 = vsel %vm1671_vm8, %v1647_v57, %v5303_v38  ;;  %v1685_v30 = vsel %vm1671_vm8, %v1648_v44, %v5304_v62  ;;  %v1576_v28 = vsel %vm1560_vm5, %v8857_v1, %v5069_v14  ;;  %v8858_v51 = vld [vmem:[#allocation21_spill] sm:$0xff] }
 0x152   : > { %v5312_v25 = vpop.permute.xlu0 %5311  ;;  %4801 = vmatpush3.bf16.msra.mxu0 %v5499_v61  ;;  %4841 = vmatprep.subr.bf16.mxu1 %v5698_v18  ;;  %v5319_v39 = vunpack.i.h.bf16 %v5317_v5  ;;  %v5318_v61 = vunpack.i.l.bf16 %v5317_v5  ;;  %v1575_v52 = vsel %vm1560_vm5, %v8858_v51, %v5068_v10  ;;  %v5074_v17 = vunpack.i.h.bf16 %v8859_v58 }
 0x153   : > { %4720 = vmatprep.mubr.msk.bf16.mxu1 %vm1833_vm10, %v7284_v6  ;;  %4767 = vmatmul.mubr.msk.bf16.gmra.mrb[8].mxu0 %vm1833_vm10, %v7284_v6  ;;  %v5314_v23 = vunpack.i.h.bf16 %v5312_v25  ;;  %v5313_v0 = vunpack.i.l.bf16 %v5312_v25  ;;  %v5073_v26 = vunpack.i.l.bf16 %v8859_v58  ;;  %v1613_v62 = vsel %vm1597_vm6, %v1576_v28, %v5159_v56 }
 0x154   : > { %4917 = vmatprep.subr.msk.bf16.mxu0 %vm784_vm3, %v5500_v46  ;;  %v5699_v46 = vld [vmem:[%s8709_s1 + $0x30] sm:$0x3f]   ;;  %v1612_v38 = vsel %vm1597_vm6, %v1575_v52, %v5158_v4  ;;  %v1650_v11 = vsel %vm1634_vm7, %v1613_v62, %v5319_v39  ;;  %2993 = vrot.lane.b32.xlu1 %v2914_v42, %s5858_s6  ;;  %v1578_v56 = vsel %vm1560_vm5, %v8861_v50, %v5074_v17  ;;  %v5168_v42 = vunpack.i.l.bf16 %v7013_v16 }
 0x155   : > { %v5327_v54 = vpop.permute.xlu1 %5326  ;;  %v1721_v27 = vsel %vm1708_vm9, %v1684_v59, %v5313_v0  ;;  %v1722_v35 = vsel %vm1708_vm9, %v1685_v30, %v5314_v23  ;;  %4848 = vmatpush3.bf16.msra.mxu1 %v5698_v18  ;;  %v1649_v33 = vsel %vm1634_vm7, %v1612_v38, %v5318_v61  ;;  %v1577_v4 = vsel %vm1560_vm5, %v8862_v19, %v5073_v26  ;;  %v8863_v59 = vld [vmem:[#allocation37_spill] sm:$0xff] }
 0x156   : > { %v5329_v47 = vunpack.i.h.bf16 %v5327_v54  ;;  %v5328_v41 = vunpack.i.l.bf16 %v5327_v54  ;;  %v5322_v12 = vpop.permute.xlu0 %5321  ;;  %v7313_v9 = vpack.c.bf16 %v1722_v35, %v1721_v27  ;;  %4916 = vmatprep.subr.msk.bf16.mxu1 %vm784_vm3, %v5699_v46  ;;  %4803 = vmatpush3.bf16.msra.mxu0 %v2314_v2  ;;  %v8860_v2 = vld [vmem:[#allocation35_spill] sm:$0xff]  ;;  %v5079_v30 = vunpack.i.h.bf16 %v8863_v59 }
 0x157   : > { %v5324_v7 = vunpack.i.h.bf16 %v5322_v12  ;;  %v5323_v25 = vunpack.i.l.bf16 %v5322_v12  ;;  %v5078_v54 = vunpack.i.l.bf16 %v8863_v59  ;;  %v1614_v39 = vsel %vm1597_vm6, %v1577_v4, %v5163_v32 }
 0x158   : > { %4721 = vmatmul.mubr.msk.bf16.gmra.mrb[8].mxu1 %vm1833_vm10, %v7313_v9  ;;  %4770 = vmatprep.mubr.msk.bf16.mxu0 %vm1833_vm10, %v7313_v9  ;;  %v1686_v14 = vsel %vm1671_vm8, %v1649_v33, %v5328_v41  ;;  %v1687_v10 = vsel %vm1671_vm8, %v1650_v11, %v5329_v47  ;;  %v1615_v61 = vsel %vm1597_vm6, %v1578_v56, %v5164_v13  ;;  %v5169_v46 = vunpack.i.h.bf16 %v7013_v16  ;;  %v8865_v16 = vld [vmem:[#allocation25_spill] sm:$0xff] }
 0x159   : > { %v5337_v5 = vpop.permute.xlu1 %5336  ;;  %4849 = vmatpush3.bf16.msra.mxu1 %v8860_v2  ;;  %v1651_v35 = vsel %vm1634_vm7, %v1614_v39, %v5323_v25  ;;  %v1652_v47 = vsel %vm1634_vm7, %v1615_v61, %v5324_v7  ;;  %v8867_v61 = vld [vmem:[#allocation32_spill] sm:$0xff] }
 0x15a   : > { %v5339_v15 = vunpack.i.h.bf16 %v5337_v5  ;;  %v5338_v21 = vunpack.i.l.bf16 %v5337_v5  ;;  %v5332_v48 = vpop.permute.xlu0 %5331 }
 0x15b   : > { %v5334_v44 = vunpack.i.h.bf16 %v5332_v48  ;;  %v5333_v23 = vunpack.i.l.bf16 %v5332_v48 }
 0x15c   : > { %v1723_v37 = vsel %vm1708_vm9, %v1686_v14, %v5338_v21  ;;  %v1724_v57 = vsel %vm1708_vm9, %v1687_v10, %v5339_v15  ;;  %v1579_v15 = vsel %vm1560_vm5, %v8865_v16, %v5078_v54  ;;  %v8866_v21 = vld [vmem:[#allocation40_spill] sm:$0xff] }
 0x15d   : > { %v5347_v0 = vpop.permute.xlu1 %5346  ;;  %v7341_v18 = vpack.c.bf16 %v1724_v57, %v1723_v37  ;;  %v1688_v1 = vsel %vm1671_vm8, %v1651_v35, %v5333_v23  ;;  %v1689_v28 = vsel %vm1671_vm8, %v1652_v47, %v5334_v44  ;;  %v5084_v2 = vunpack.i.h.bf16 %v8866_v21  ;;  %v8868_v35 = vld [vmem:[#allocation31_spill] sm:$0xff] }
 0x15e   : > { %v5342_v27 = vpop.permute.xlu0 %5341  ;;  %v5349_v52 = vunpack.i.h.bf16 %v5347_v0  ;;  %v5348_v58 = vunpack.i.l.bf16 %v5347_v0  ;;  %v5083_v13 = vunpack.i.l.bf16 %v8866_v21  ;;  %v1616_v14 = vsel %vm1597_vm6, %v1579_v15, %v5168_v42  ;;  %v8869_v47 = vld [vmem:[#allocation39_spill] sm:$0xff] }
 0x15f   : > { %4724 = vmatprep.mubr.msk.bf16.mxu1 %vm1833_vm10, %v7341_v18  ;;  %4771 = vmatmul.mubr.msk.bf16.gmra.mrb[12].mxu0 %vm1833_vm10, %v7341_v18  ;;  %v5344_v41 = vunpack.i.h.bf16 %v5342_v27  ;;  %v5343_v12 = vunpack.i.l.bf16 %v5342_v27  ;;  %v5174_v57 = vunpack.i.h.bf16 %v7027_v3  ;;  %v5173_v44 = vunpack.i.l.bf16 %v7027_v3 }
 0x160   : > { %4804 = vmatprep.mubr.msk.bf16.mxu0 %vm1833_vm10, %v7179_v55  ;;  %v8864_v55 = vld [vmem:[#allocation26_spill] sm:$0xff]  ;;  %v1653_v48 = vsel %vm1634_vm7, %v1616_v14, %v5348_v58  ;;  %v1582_v27 = vsel %vm1560_vm5, %v8867_v61, %v5084_v2  ;;  %v5179_v58 = vunpack.i.h.bf16 %v7023_v34  ;;  %v8871_v14 = vld [vmem:[#allocation29_spill] sm:$0xff] }
 0x161   : > { %v5357_v51 = vpop.permute.xlu1 %5356  ;;  %v1725_v17 = vsel %vm1708_vm9, %v1688_v1, %v5343_v12  ;;  %v1726_v26 = vsel %vm1708_vm9, %v1689_v28, %v5344_v41  ;;  %v1580_v11 = vsel %vm1560_vm5, %v8864_v55, %v5079_v30  ;;  %v5089_v41 = vunpack.i.h.bf16 %v8869_v47 }
 0x162   : > { %v5359_v62 = vunpack.i.h.bf16 %v5357_v51  ;;  %v5358_v38 = vunpack.i.l.bf16 %v5357_v51  ;;  %v5352_v5 = vpop.permute.xlu0 %5351  ;;  %v7365_v33 = vpack.c.bf16 %v1726_v26, %v1725_v17  ;;  %v1617_v32 = vsel %vm1597_vm6, %v1580_v11, %v5169_v46 }
 0x163   : > { %v1654_v7 = vsel %vm1634_vm7, %v1617_v32, %v5349_v52  ;;  %v5354_v56 = vunpack.i.h.bf16 %v5352_v5  ;;  %v5353_v19 = vunpack.i.l.bf16 %v5352_v5  ;;  %v5088_v12 = vunpack.i.l.bf16 %v8869_v47 }
 0x164   : > { %4725 = vmatmul.mubr.msk.bf16.gmra.mrb[12].mxu1 %vm1833_vm10, %v7365_v33  ;;  %v1690_v23 = vsel %vm1671_vm8, %v1653_v48, %v5358_v38  ;;  %v1691_v0 = vsel %vm1671_vm8, %v1654_v7, %v5359_v62  ;;  %v1619_v42 = vsel %vm1597_vm6, %v1582_v27, %v5174_v57  ;;  %v5178_v17 = vunpack.i.l.bf16 %v7023_v34  ;;  %v8870_v34 = vld [vmem:[#allocation30_spill] sm:$0xff] }
 0x165   : > { %v5367_v10 = vpop.permute.xlu1 %5366  ;;  %v1656_v28 = vsel %vm1634_vm7, %v1619_v42, %v5354_v56  ;;  %v1584_v32 = vsel %vm1560_vm5, %v8870_v34, %v5089_v41 }
 0x166   : > { %v5369_v25 = vunpack.i.h.bf16 %v5367_v10  ;;  %v5368_v37 = vunpack.i.l.bf16 %v5367_v10  ;;  %v5362_v50 = vpop.permute.xlu0 %5361  ;;  %v1583_v10 = vsel %vm1560_vm5, %v8871_v14, %v5088_v12  ;;  %v1621_v48 = vsel %vm1597_vm6, %v1584_v32, %v5179_v58 }
 0x167   : > { %4805 = vmatmul.mubr.msk.bf16.vlgmr.msra.gmra.mrb[0].mxu0 %vm1833_vm10, %v7214_v60  ;;  %v5364_v30 = vunpack.i.h.bf16 %v5362_v50  ;;  %v5363_v54 = vunpack.i.l.bf16 %v5362_v50  ;;  %v1581_v60 = vsel %vm1560_vm5, %v8868_v35, %v5083_v13  ;;  %v1620_v7 = vsel %vm1597_vm6, %v1583_v10, %v5178_v17 }
 0x168   : > { %v1727_v4 = vsel %vm1708_vm9, %v1690_v23, %v5368_v37  ;;  %v1728_v59 = vsel %vm1708_vm9, %v1691_v0, %v5369_v25  ;;  %4808 = vmatprep.mubr.msk.bf16.mxu0 %vm1833_vm10, %v7248_v24  ;;  %v1618_v46 = vsel %vm1597_vm6, %v1581_v60, %v5173_v44 }
 0x169   : > { %v5377_v3 = vpop.permute.xlu1 %5376  ;;  %v7389_v39 = vpack.c.bf16 %v1728_v59, %v1727_v4  ;;  %v1655_v1 = vsel %vm1634_vm7, %v1618_v46, %v5353_v19  ;;  %v1693_v62 = vsel %vm1671_vm8, %v1656_v28, %v5364_v30 }
 0x16a   : > { %v5372_v24 = vpop.permute.xlu0 %5371  ;;  %v1692_v26 = vsel %vm1671_vm8, %v1655_v1, %v5363_v54  ;;  %v5379_v5 = vunpack.i.h.bf16 %v5377_v3  ;;  %v5378_v55 = vunpack.i.l.bf16 %v5377_v3 }
 0x16b   : > { %4728 = vmatprep.mubr.msk.bf16.mxu1 %vm1833_vm10, %v7389_v39  ;;  %v5374_v51 = vunpack.i.h.bf16 %v5372_v24  ;;  %v5373_v52 = vunpack.i.l.bf16 %v5372_v24 }
 0x16c   : > { %v1657_v37 = vsel %vm1634_vm7, %v1620_v7, %v5378_v55 }
 0x16d   : > { %v5387_v38 = vpop.permute.xlu1 %5386  ;;  %v1729_v11 = vsel %vm1708_vm9, %v1692_v26, %v5373_v52  ;;  %v1730_v16 = vsel %vm1708_vm9, %v1693_v62, %v5374_v51 }
 0x16e   : > { %v5389_v15 = vunpack.i.h.bf16 %v5387_v38  ;;  %v5388_v21 = vunpack.i.l.bf16 %v5387_v38  ;;  %v5382_v2 = vpop.permute.xlu0 %5381  ;;  %v7409_v13 = vpack.c.bf16 %v1730_v16, %v1729_v11 }
 0x16f   : > { %4809 = vmatmul.mubr.msk.bf16.gmra.mrb[4].mxu0 %vm1833_vm10, %v7284_v6  ;;  %v1658_v6 = vsel %vm1634_vm7, %v1621_v48, %v5379_v5  ;;  %v5383_v56 = vunpack.i.l.bf16 %v5382_v2 }
 0x170   : > { %4812 = vmatprep.mubr.msk.bf16.mxu0 %vm1833_vm10, %v7313_v9  ;;  %4729 = vmatmul.mubr.msk.bf16.gmra.mrb[16].mxu1 %vm1833_vm10, %v7409_v13  ;;  %v1694_v23 = vsel %vm1671_vm8, %v1657_v37, %v5388_v21  ;;  %v1695_v0 = vsel %vm1671_vm8, %v1658_v6, %v5389_v15  ;;  %v5384_v9 = vunpack.i.h.bf16 %v5382_v2 }
 0x171   : > { %v5397_v25 = vpop.permute.xlu1 %5396  ;;  %v1659_v27 = vsel %vm1634_vm7, %v7056_v22, %v5383_v56 }
 0x172   : > { %v5399_v57 = vunpack.i.h.bf16 %v5397_v25  ;;  %v5398_v44 = vunpack.i.l.bf16 %v5397_v25  ;;  %v5392_v50 = vpop.permute.xlu0 %5391  ;;  %v1660_v35 = vsel %vm1634_vm7, %v7059_v31, %v5384_v9 }
 0x173   : > { %v5394_v59 = vunpack.i.h.bf16 %v5392_v50  ;;  %v5393_v30 = vunpack.i.l.bf16 %v5392_v50 }
 0x174   : > { %v1731_v19 = vsel %vm1708_vm9, %v1694_v23, %v5398_v44  ;;  %v1732_v4 = vsel %vm1708_vm9, %v1695_v0, %v5399_v57 }
 0x175   : > { %v5407_v54 = vpop.permute.xlu1 %5406  ;;  %v7429_v3 = vpack.c.bf16 %v1732_v4, %v1731_v19  ;;  %v1696_v41 = vsel %vm1671_vm8, %v1659_v27, %v5393_v30  ;;  %v1697_v12 = vsel %vm1671_vm8, %v1660_v35, %v5394_v59 }
 0x176   : > { %v5402_v61 = vpop.permute.xlu0 %5401  ;;  %v5409_v42 = vunpack.i.h.bf16 %v5407_v54  ;;  %v5408_v24 = vunpack.i.l.bf16 %v5407_v54 }
 0x177   : > { %4732 = vmatprep.mubr.msk.bf16.mxu1 %vm1833_vm10, %v7429_v3  ;;  %4813 = vmatmul.mubr.msk.bf16.gmra.mrb[8].mxu0 %vm1833_vm10, %v7341_v18  ;;  %v5404_v60 = vunpack.i.h.bf16 %v5402_v61  ;;  %v5403_v47 = vunpack.i.l.bf16 %v5402_v61 }
 0x178   : > { %4816 = vmatprep.mubr.msk.bf16.mxu0 %vm1833_vm10, %v7365_v33  ;;  %v1661_v58 = vsel %vm1634_vm7, %v7046_v29, %v5408_v24  ;;  %v1662_v17 = vsel %vm1634_vm7, %v7043_v36, %v5409_v42 }
 0x179   : > { %v5417_v46 = vpop.permute.xlu1 %5416  ;;  %v1733_v18 = vsel %vm1708_vm9, %v1696_v41, %v5403_v47  ;;  %v1734_v1 = vsel %vm1708_vm9, %v1697_v12, %v5404_v60 }
 0x17a   : > { %v5419_v22 = vunpack.i.h.bf16 %v5417_v46  ;;  %v5418_v28 = vunpack.i.l.bf16 %v5417_v46  ;;  %v5412_v51 = vpop.permute.xlu0 %5411  ;;  %v7445_v31 = vpack.c.bf16 %v1734_v1, %v1733_v18 }
 0x17b   : > { %v5414_v11 = vunpack.i.h.bf16 %v5412_v51  ;;  %v5413_v16 = vunpack.i.l.bf16 %v5412_v51 }
 0x17c   : > { %4733 = vmatmul.mubr.msk.bf16.gmra.mrb[20].mxu1 %vm1833_vm10, %v7445_v31  ;;  %v1698_v38 = vsel %vm1671_vm8, %v1661_v58, %v5418_v28  ;;  %v1699_v5 = vsel %vm1671_vm8, %v1662_v17, %v5419_v22 }
 0x17d   : > { %v5427_v52 = vpop.permute.xlu1 %5426  ;;  %v1663_v14 = vsel %vm1634_vm7, %v7080_v40, %v5413_v16  ;;  %v1664_v10 = vsel %vm1634_vm7, %v7083_v20, %v5414_v11 }
 0x17e   : > { %v5429_v26 = vunpack.i.h.bf16 %v5427_v52  ;;  %v5428_v62 = vunpack.i.l.bf16 %v5427_v52  ;;  %v5422_v55 = vpop.permute.xlu0 %5421 }
 0x17f   : > { %4817 = vmatmul.mubr.msk.bf16.gmra.mrb[12].mxu0 %vm1833_vm10, %v7389_v39  ;;  %v5424_v36 = vunpack.i.h.bf16 %v5422_v55  ;;  %v5423_v29 = vunpack.i.l.bf16 %v5422_v55 }
 0x180   : > { %v1735_v15 = vsel %vm1708_vm9, %v1698_v38, %v5428_v62  ;;  %v1736_v21 = vsel %vm1708_vm9, %v1699_v5, %v5429_v26  ;;  %4820 = vmatprep.mubr.msk.bf16.mxu0 %vm1833_vm10, %v7409_v13 }
 0x181   : > { %v5437_v2 = vpop.permute.xlu1 %5436  ;;  %v7461_v34 = vpack.c.bf16 %v1736_v21, %v1735_v15  ;;  %v1700_v25 = vsel %vm1671_vm8, %v1663_v14, %v5423_v29  ;;  %v1701_v37 = vsel %vm1671_vm8, %v1664_v10, %v5424_v36  ;;  %v2918_v14 = vld [vmem:[#allocation3 + $0x98] sm:$0xff]  ;;  %v2919_v10 = vld [vmem:[#allocation3 + $0xa0] sm:$0xff] }
 0x182   : > { %v5432_v32 = vpop.permute.xlu0 %5431  ;;  %v5439_v57 = vunpack.i.h.bf16 %v5437_v2  ;;  %v5438_v44 = vunpack.i.l.bf16 %v5437_v2 }
 0x183   : > { %4736 = vmatprep.mubr.msk.bf16.mxu1 %vm1833_vm10, %v7461_v34  ;;  %v5434_v48 = vunpack.i.h.bf16 %v5432_v32  ;;  %v5433_v7 = vunpack.i.l.bf16 %v5432_v32  ;;  %v2917_v32 = vld [vmem:[#allocation3 + $0x90] sm:$0xff] }
 0x184   : > { %v1665_v19 = vsel %vm1634_vm7, %v7071_v8, %v5438_v44  ;;  %v1666_v4 = vsel %vm1634_vm7, %v7068_v45, %v5439_v57  ;;  %v2930_v57 = vld [vmem:[#allocation3 + $0xf8] sm:$0xff] }
 0x185   : > { %v5447_v6 = vpop.permute.xlu1 %5446  ;;  %v1737_v23 = vsel %vm1708_vm9, %v1700_v25, %v5433_v7  ;;  %v1738_v0 = vsel %vm1708_vm9, %v1701_v37, %v5434_v48  ;;  %v2922_v48 = vld [vmem:[#allocation3 + $0xb8] sm:$0xff]  ;;  %v2925_v7 = vld [vmem:[#allocation3 + $0xd0] sm:$0xff]  ;;  %v2928_v37 = vld [vmem:[#allocation3 + $0xe8] sm:$0xff] }
 0x186   : > { %v5449_v50 = vunpack.i.h.bf16 %v5447_v6  ;;  %v5448_v9 = vunpack.i.l.bf16 %v5447_v6  ;;  %v5442_v56 = vpop.permute.xlu0 %5441  ;;  %v7473_v40 = vpack.c.bf16 %v1738_v0, %v1737_v23  ;;  %v2926_v25 = vld [vmem:[#allocation3 + $0xd8] sm:$0xff]  ;;  %v2929_v6 = vld [vmem:[#allocation3 + $0xf0] sm:$0xff] }
 0x187   : > { %4821 = vmatmul.mubr.msk.bf16.gmra.mrb[16].mxu0 %vm1833_vm10, %v7429_v3  ;;  %v5444_v35 = vunpack.i.h.bf16 %v5442_v56  ;;  %v5443_v60 = vunpack.i.l.bf16 %v5442_v56 }
 0x188   : > { %4824 = vmatprep.mubr.msk.bf16.mxu0 %vm1833_vm10, %v7445_v31  ;;  %4737 = vmatmul.mubr.msk.bf16.gmra.mrb[24].mxu1 %vm1833_vm10, %v7473_v40  ;;  %v1702_v54 = vsel %vm1671_vm8, %v1665_v19, %v5448_v9  ;;  %v1703_v61 = vsel %vm1671_vm8, %v1666_v4, %v5449_v50 }
 0x189   : > { %v5457_v20 = vpop.permute.xlu1 %5456  ;;  %v1667_v45 = vsel %vm1634_vm7, %v7101_v53, %v5443_v60  ;;  %v1668_v18 = vsel %vm1634_vm7, %v7104_v43, %v5444_v35  ;;  %v7567_v60 = vld [vmem:[%s8710_s2] ss:$0 sm:$0xff] }
 0x18a   : > { %v5459_v59 = vunpack.i.h.bf16 %v5457_v20  ;;  %v5458_v30 = vunpack.i.l.bf16 %v5457_v20  ;;  %v5452_v27 = vpop.permute.xlu0 %5451 }
 0x18b   : > { %v5454_v12 = vunpack.i.h.bf16 %v5452_v27  ;;  %v5453_v46 = vunpack.i.l.bf16 %v5452_v27 }
 0x18c   : > { %v1739_v47 = vsel %vm1708_vm9, %v1702_v54, %v5458_v30  ;;  %v1740_v41 = vsel %vm1708_vm9, %v1703_v61, %v5459_v59  ;;  %v347_v54 = vlaneseq }
 0x18d   : > { %v5467_v42 = vpop.permute.xlu1 %5466  ;;  %v7489_v8 = vpack.c.bf16 %v1740_v41, %v1739_v47  ;;  %v1704_v28 = vsel %vm1671_vm8, %v1667_v45, %v5453_v46  ;;  %v1705_v51 = vsel %vm1671_vm8, %v1668_v18, %v5454_v12 }
 0x18e   : > { %v5462_v24 = vpop.permute.xlu0 %5461  ;;  %v5469_v52 = vunpack.i.h.bf16 %v5467_v42  ;;  %v5468_v58 = vunpack.i.l.bf16 %v5467_v42  ;;  %v7569_v47 = vand.u32 127, %v347_v54 }
 0x18f   : > { %4740 = vmatprep.mubr.msk.bf16.mxu1 %vm1833_vm10, %v7489_v8  ;;  %4825 = vmatmul.mubr.msk.bf16.gmra.mrb[20].mxu0 %vm1833_vm10, %v7461_v34  ;;  %v5464_v1 = vunpack.i.h.bf16 %v5462_v24  ;;  %v5463_v22 = vunpack.i.l.bf16 %v5462_v24 }
 0x190   : > { %4828 = vmatprep.mubr.msk.bf16.mxu0 %vm1833_vm10, %v7473_v40  ;;  %v1669_v16 = vsel %vm1634_vm7, %v7093_v63, %v5468_v58  ;;  %v1670_v15 = vsel %vm1634_vm7, %v7090_v49, %v5469_v52  ;;  %v2915_v63 = vld [vmem:[#allocation3 + $0x80] sm:$0xff]  ;;  %vm349_vm11 = vcmp.ge.s32.totalorder %v7569_v47, 96 }
 0x191   : > { %v5477_v17 = vpop.permute.xlu1 %5476  ;;  %v1741_v26 = vsel %vm1708_vm9, %v1704_v28, %v5463_v22  ;;  %v1742_v62 = vsel %vm1708_vm9, %v1705_v51, %v5464_v1  ;;  %2995 = vrot.lane.b32.xlu0 %v2915_v63, %s5858_s6 }
 0x192   : > { %v5472_v53 = vpop.permute.xlu0 %5471  ;;  %v5479_v38 = vunpack.i.h.bf16 %v5477_v17  ;;  %v5478_v5 = vunpack.i.l.bf16 %v5477_v17  ;;  %v1761_v43 = vpack.c.bf16 %v1742_v62, %v1741_v26 }
 0x193   : > { %v5474_v55 = vunpack.i.h.bf16 %v5472_v53  ;;  %v5473_v11 = vunpack.i.l.bf16 %v5472_v53 }
 0x194   : > { %4741 = vmatmul.mubr.msk.bf16.gmra.mrb[28].mxu1 %vm1833_vm10, %v1761_v43 }
 0x195   : > { %v1707_v21 = vsel %vm1671_vm8, %v1670_v15, %v5474_v55  ;;  %v1706_v36 = vsel %vm1671_vm8, %v1669_v16, %v5473_v11  ;;  %4774 = vmatprep.mubr.msk.bf16.mxu1 %vm1833_vm10, %v7365_v33  ;;  %v2916_v33 = vld [vmem:[#allocation3 + $0x88] sm:$0xff]  ;;  %2999 = vrot.lane.b32.xlu0 %v2917_v32, %s5858_s6 }
 0x196   : > { %v1743_v29 = vsel %vm1708_vm9, %v1706_v36, %v5478_v5  ;;  %v1744_v2 = vsel %vm1708_vm9, %v1707_v21, %v5479_v38  ;;  %2997 = vrot.lane.b32.xlu1 %v2916_v33, %s5858_s6 }
 0x197   : > { %4829 = vmatmul.mubr.msk.bf16.gmra.mrb[24].mxu0 %vm1833_vm10, %v7489_v8  ;;  %v1762_v49 = vpack.c.bf16 %v1744_v2, %v1743_v29 }
 0x198   : > { %4832 = vmatprep.mubr.msk.bf16.mxu0 %vm1833_vm10, %v1761_v43 }
 0x199   : > { %3003 = vrot.lane.b32.xlu0 %v2919_v10, %s5858_s6 }
 0x19a   : > { %3001 = vrot.lane.b32.xlu1 %v2918_v14, %s5858_s6 }
 0x19c   : > { %4775 = vmatmul.mubr.msk.bf16.vlgmr.msra.gmra.mrb[16].mxu1 %vm1833_vm10, %v7389_v39  ;;  %v2920_v39 = vld [vmem:[#allocation3 + $0xa8] sm:$0xff] }
 0x19d   : > { %4778 = vmatprep.mubr.msk.bf16.mxu1 %vm1833_vm10, %v7409_v13  ;;  %v2921_v13 = vld [vmem:[#allocation3 + $0xb0] sm:$0xff] }
 0x19e   : > { %3005 = vrot.lane.b32.xlu1 %v2920_v39, %s5858_s6  ;;  %3007 = vrot.lane.b32.xlu0 %v2921_v13, %s5858_s6 }
 0x19f   : > { %4833 = vmatmul.mubr.msk.bf16.gmra.mrb[28].mxu0 %vm1833_vm10, %v1762_v49 }
 0x1a2   : > { %3009 = vrot.lane.b32.xlu1 %v2922_v48, %s5858_s6 }
 0x1a4   : > { %4779 = vmatmul.mubr.msk.bf16.gmra.mrb[20].mxu1 %vm1833_vm10, %v7429_v3  ;;  %v2923_v3 = vld [vmem:[#allocation3 + $0xc0] sm:$0xff] }
 0x1a5   : > { %4782 = vmatprep.mubr.msk.bf16.mxu1 %vm1833_vm10, %v7445_v31  ;;  %v2924_v31 = vld [vmem:[#allocation3 + $0xc8] sm:$0xff]  ;;  %3011 = vrot.lane.b32.xlu0 %v2923_v3, %s5858_s6 }
 0x1a6   : > { %3013 = vrot.lane.b32.xlu1 %v2924_v31, %s5858_s6 }
 0x1a9   : > { %3015 = vrot.lane.b32.xlu0 %v2925_v7, %s5858_s6 }
 0x1aa   : > { %3017 = vrot.lane.b32.xlu1 %v2926_v25, %s5858_s6 }
 0x1ac   : > { %4783 = vmatmul.mubr.msk.bf16.gmra.mrb[24].mxu1 %vm1833_vm10, %v7461_v34  ;;  %v2927_v34 = vld [vmem:[#allocation3 + $0xe0] sm:$0xff] }
 0x1ad   : > { %4786 = vmatprep.mubr.msk.bf16.mxu1 %vm1833_vm10, %v7473_v40  ;;  %3019 = vrot.lane.b32.xlu0 %v2927_v34, %s5858_s6 }
 0x1ae   : > { %3021 = vrot.lane.b32.xlu1 %v2928_v37, %s5858_s6 }
 0x1b1   : > { %3023 = vrot.lane.b32.xlu0 %v2929_v6, %s5858_s6 }
 0x1b2   : > { %3025 = vrot.lane.b32.xlu1 %v2930_v57, %s5858_s6 }
 0x1b4   : > { %4787 = vmatmul.mubr.msk.bf16.gmra.mrb[28].mxu1 %vm1833_vm10, %v7489_v8 }
 0x213   : > { %v4714_v44 = vpop.f32.mrb[0].mxu1 }
 0x214   : > { %v1919_v23 = vpop.f32.mrb[1].mxu1 }
 0x215   : > { %v4715_v0 = vpop.f32.mrb[2].mxu1 }
 0x216   : > { %v1922_v50 = vpop.f32.mrb[3].mxu1 }
 0x21f   : > { %v4718_v9 = vpop.f32.mrb[4].mxu1 }
 0x220   : > { %v1935_v56 = vpop.f32.mrb[5].mxu1 }
 0x221   : > { %v4719_v40 = vpop.f32.mrb[6].mxu1 }
 0x222   : > { %v1938_v20 = vpop.f32.mrb[7].mxu1 }
 0x22b   : > { %v7550_v19 = vpop.f32.mrb[8].mxu1 }
 0x22c   : > { %v7552_v4 = vpop.f32.mrb[9].mxu1 }
 0x22d   : > { %v7554_v59 = vpop.f32.mrb[10].mxu1 }
 0x22e   : > { %v7556_v30 = vpop.f32.mrb[11].mxu1 }
 0x237   : > { %v7558_v61 = vpop.f32.mrb[12].mxu1 }
 0x238   : > { %v7560_v27 = vpop.f32.mrb[13].mxu1 }
 0x239   : > { %v7562_v35 = vpop.f32.mrb[14].mxu1 }
 0x23a   : > { %v4806_v41 = vpop.f32.mrb[0].mxu0  ;;  %v7571_v12 = vpop.f32.mrb[15].mxu1 }
 0x23b   : > { %v4850_v46 = vadd.f32 %v4806_v41, %v4714_v44  ;;  %v2350_v42 = vpop.f32.mrb[1].mxu0 }
 0x23c   : > { %v4851_v8 = vadd.f32 %v2350_v42, %v1919_v23  ;;  %v4807_v24 = vpop.f32.mrb[2].mxu0 }
 0x23d   : > { %v2517_v45 = vadd.f32 %v4850_v46, %v7567_v60  ;;  %v4852_v18 = vadd.f32 %v4807_v24, %v4715_v0  ;;  %v2353_v1 = vpop.f32.mrb[3].mxu0 }
 0x23e   : > { %v2515_v22 = vadd.f32 %v4851_v8, %v7567_v60  ;;  %v4853_v28 = vadd.f32 %v2353_v1, %v1922_v50 }
 0x23f   : > { %v2549_v51 = vmul.f32 2.0, %v2517_v45  ;;  %v2518_v52 = vadd.f32 %v4852_v18, %v7567_v60 }
 0x240   : > { %v2547_v58 = vmul.f32 2.0, %v2515_v22  ;;  %v2516_v17 = vadd.f32 %v4853_v28, %v7567_v60 }
 0x241   : > { %v2581_v26 = vsel %vm349_vm11, %v2549_v51, %v2517_v45  ;;  %v2550_v62 = vmul.f32 2.0, %v2518_v52 }
 0x242   : > { %v4448_v53 = vmul.f32 -1.442695, %v2581_v26  ;;  %v2579_v38 = vsel %vm349_vm11, %v2547_v58, %v2515_v22  ;;  %v2548_v5 = vmul.f32 2.0, %v2516_v17  ;;  %v4810_v43 = vpop.f32.mrb[4].mxu0 }
 0x243   : > { %v4446_v55 = vmul.f32 -1.442695, %v2579_v38  ;;  %v2582_v11 = vsel %vm349_vm11, %v2550_v62, %v2518_v52  ;;  %v4854_v16 = vadd.f32 %v4810_v43, %v4718_v9  ;;  %v2366_v15 = vpop.f32.mrb[5].mxu0 }
 0x244   : > { %5501 = vpow2.f32 %v4448_v53  ;;  %v4449_v21 = vmul.f32 -1.442695, %v2582_v11  ;;  %v2580_v36 = vsel %vm349_vm11, %v2548_v5, %v2516_v17  ;;  %v4855_v29 = vadd.f32 %v2366_v15, %v1935_v56  ;;  %v4811_v2 = vpop.f32.mrb[6].mxu0 }
 0x245   : > { %5503 = vpow2.f32 %v4446_v55  ;;  %v4447_v63 = vmul.f32 -1.442695, %v2580_v36  ;;  %v2521_v49 = vadd.f32 %v4854_v16, %v7567_v60  ;;  %v4856_v33 = vadd.f32 %v4811_v2, %v4719_v40  ;;  %v2369_v32 = vpop.f32.mrb[7].mxu0 }
 0x246   : > { %5505 = vpow2.f32 %v4449_v21  ;;  %v2519_v14 = vadd.f32 %v4855_v29, %v7567_v60  ;;  %v4857_v10 = vadd.f32 %v2369_v32, %v1938_v20 }
 0x247   : > { %5507 = vpow2.f32 %v4447_v63  ;;  %v2553_v39 = vmul.f32 2.0, %v2521_v49  ;;  %v2522_v13 = vadd.f32 %v4856_v33, %v7567_v60 }
 0x248   : > { %v2551_v48 = vmul.f32 2.0, %v2519_v14  ;;  %v2520_v3 = vadd.f32 %v4857_v10, %v7567_v60 }
 0x249   : > { %v2585_v31 = vsel %vm349_vm11, %v2553_v39, %v2521_v49  ;;  %v2554_v7 = vmul.f32 2.0, %v2522_v13 }
 0x24a   : > { %v4452_v25 = vmul.f32 -1.442695, %v2585_v31  ;;  %v2583_v34 = vsel %vm349_vm11, %v2551_v48, %v2519_v14  ;;  %v2552_v37 = vmul.f32 2.0, %v2520_v3  ;;  %v4814_v6 = vpop.f32.mrb[8].mxu0 }
 0x24b   : > { %v4450_v57 = vmul.f32 -1.442695, %v2583_v34  ;;  %v2586_v44 = vsel %vm349_vm11, %v2554_v7, %v2522_v13  ;;  %v4858_v23 = vadd.f32 %v4814_v6, %v7550_v19  ;;  %v2382_v0 = vpop.f32.mrb[9].mxu0 }
 0x24c   : > { %5509 = vpow2.f32 %v4452_v25  ;;  %v4453_v50 = vmul.f32 -1.442695, %v2586_v44  ;;  %v2584_v9 = vsel %vm349_vm11, %v2552_v37, %v2520_v3  ;;  %v4859_v56 = vadd.f32 %v2382_v0, %v7552_v4  ;;  %v4815_v40 = vpop.f32.mrb[10].mxu0 }
 0x24d   : > { %5511 = vpow2.f32 %v4450_v57  ;;  %v4451_v20 = vmul.f32 -1.442695, %v2584_v9  ;;  %v2525_v54 = vadd.f32 %v4858_v23, %v7567_v60  ;;  %v4860_v41 = vadd.f32 %v4815_v40, %v7554_v59  ;;  %v2385_v46 = vpop.f32.mrb[11].mxu0 }
 0x24e   : > { %v5502_v42 = vpop.eup %5501  ;;  %5513 = vpow2.f32 %v4453_v50  ;;  %v2523_v19 = vadd.f32 %v4859_v56, %v7567_v60  ;;  %v4861_v8 = vadd.f32 %v2385_v46, %v7556_v30 }
 0x24f   : > { %v5504_v24 = vpop.eup %5503  ;;  %v2709_v45 = vadd.f32 1.0, %v5502_v42  ;;  %5515 = vpow2.f32 %v4451_v20  ;;  %v2557_v18 = vmul.f32 2.0, %v2525_v54  ;;  %v2526_v4 = vadd.f32 %v4860_v41, %v7567_v60 }
 0x250   : > { %v5506_v1 = vpop.eup %5505  ;;  %v2707_v22 = vadd.f32 1.0, %v5504_v24  ;;  %v2555_v28 = vmul.f32 2.0, %v2523_v19  ;;  %v2524_v51 = vadd.f32 %v4861_v8, %v7567_v60 }
 0x251   : > { %v5508_v52 = vpop.eup %5507  ;;  %5517 = vrcp.f32 %v2709_v45  ;;  %v2710_v59 = vadd.f32 1.0, %v5506_v1  ;;  %v2589_v58 = vsel %vm349_vm11, %v2557_v18, %v2525_v54  ;;  %v2558_v17 = vmul.f32 2.0, %v2526_v4 }
 0x252   : > { %5519 = vrcp.f32 %v2707_v22  ;;  %v2708_v30 = vadd.f32 1.0, %v5508_v52  ;;  %v4456_v26 = vmul.f32 -1.442695, %v2589_v58  ;;  %v2587_v62 = vsel %vm349_vm11, %v2555_v28, %v2523_v19  ;;  %v4818_v53 = vpop.f32.mrb[12].mxu0 }
 0x253   : > { %5521 = vrcp.f32 %v2710_v59  ;;  %v4454_v38 = vmul.f32 -1.442695, %v2587_v62  ;;  %v2590_v5 = vsel %vm349_vm11, %v2558_v17, %v2526_v4  ;;  %v2556_v43 = vmul.f32 2.0, %v2524_v51  ;;  %v2398_v55 = vpop.f32.mrb[13].mxu0 }
 0x254   : > { %5523 = vrcp.f32 %v2708_v30  ;;  %v4457_v11 = vmul.f32 -1.442695, %v2590_v5  ;;  %v4862_v16 = vadd.f32 %v4818_v53, %v7558_v61  ;;  %v4863_v15 = vadd.f32 %v2398_v55, %v7560_v27  ;;  %v4819_v21 = vpop.f32.mrb[14].mxu0 }
 0x255   : > { %5525 = vpow2.f32 %v4456_v26  ;;  %v2588_v36 = vsel %vm349_vm11, %v2556_v43, %v2524_v51  ;;  %v4864_v29 = vadd.f32 %v4819_v21, %v7562_v35  ;;  %v2401_v2 = vpop.f32.mrb[15].mxu0 }
 0x256   : > { %v5510_v63 = vpop.eup %5509  ;;  %5527 = vpow2.f32 %v4454_v38  ;;  %v4455_v49 = vmul.f32 -1.442695, %v2588_v36  ;;  %v2529_v33 = vadd.f32 %v4862_v16, %v7567_v60  ;;  %v2527_v32 = vadd.f32 %v4863_v15, %v7567_v60 }
 0x257   : > { %v5512_v14 = vpop.eup %5511  ;;  %v2713_v10 = vadd.f32 1.0, %v5510_v63  ;;  %5529 = vpow2.f32 %v4457_v11  ;;  %v2530_v61 = vadd.f32 %v4864_v29, %v7567_v60  ;;  %v4865_v27 = vadd.f32 %v2401_v2, %v7571_v12 }
 0x258   : > { %v5514_v39 = vpop.eup %5513  ;;  %v2711_v13 = vadd.f32 1.0, %v5512_v14  ;;  %5531 = vpow2.f32 %v4455_v49  ;;  %v2561_v48 = vmul.f32 2.0, %v2529_v33  ;;  %v2559_v35 = vmul.f32 2.0, %v2527_v32 }
 0x259   : > { %v5516_v3 = vpop.eup %5515  ;;  %5533 = vrcp.f32 %v2713_v10  ;;  %v2714_v31 = vadd.f32 1.0, %v5514_v39  ;;  %v2562_v7 = vmul.f32 2.0, %v2530_v61  ;;  %v2528_v25 = vadd.f32 %v4865_v27, %v7567_v60 }
 0x25a   : > { %5535 = vrcp.f32 %v2711_v13  ;;  %v2712_v34 = vadd.f32 1.0, %v5516_v3  ;;  %v2593_v37 = vsel %vm349_vm11, %v2561_v48, %v2529_v33  ;;  %v2591_v6 = vsel %vm349_vm11, %v2559_v35, %v2527_v32  ;;  %v7626_v12 = vpop.f32.mrb[16].mxu0 }
 0x25b   : > { %v5518_v57 = vpop.eup %5517  ;;  %5537 = vrcp.f32 %v2714_v31  ;;  %v4460_v44 = vmul.f32 -1.442695, %v2593_v37  ;;  %v4458_v23 = vmul.f32 -1.442695, %v2591_v6  ;;  %v2594_v0 = vsel %vm349_vm11, %v2562_v7, %v2530_v61  ;;  %v7630_v50 = vpop.f32.mrb[17].mxu0 }
 0x25c   : > { %v5520_v9 = vpop.eup %5519  ;;  %5539 = vrcp.f32 %v2712_v34  ;;  %v4461_v56 = vmul.f32 -1.442695, %v2594_v0  ;;  %v2560_v40 = vmul.f32 2.0, %v2528_v25  ;;  %v7632_v20 = vpop.f32.mrb[18].mxu0  ;;  %v2805_v54 = vmul.f32 2.0, %v5518_v57 }
 0x25d   : > { %v5522_v41 = vpop.eup %5521  ;;  %5541 = vpow2.f32 %v4460_v44  ;;  %v2803_v46 = vmul.f32 2.0, %v5520_v9  ;;  %v7634_v42 = vpop.f32.mrb[19].mxu0 }
 0x25e   : > { %v5524_v19 = vpop.eup %5523  ;;  %5543 = vpow2.f32 %v4458_v23  ;;  %v2592_v8 = vsel %vm349_vm11, %v2560_v40, %v2528_v25  ;;  %v4480_v24 = vadd.f32 -1.0, %v2805_v54  ;;  %v2806_v45 = vmul.f32 2.0, %v5522_v41 }
 0x25f   : > { %v5526_v18 = vpop.eup %5525  ;;  %5545 = vpow2.f32 %v4461_v56  ;;  %v4459_v4 = vmul.f32 -1.442695, %v2592_v8  ;;  %v2804_v1 = vmul.f32 2.0, %v5524_v19  ;;  %v4478_v51 = vadd.f32 -1.0, %v2803_v46 }
 0x260   : > { %v5528_v22 = vpop.eup %5527  ;;  %v2717_v28 = vadd.f32 1.0, %v5526_v18  ;;  %v7640_v52 = vsel %vm349_vm11, %v4480_v24, %v5518_v57  ;;  %v4481_v59 = vadd.f32 -1.0, %v2806_v45 }
 0x261   : > { %v5530_v58 = vpop.eup %5529  ;;  %v2715_v17 = vadd.f32 1.0, %v5528_v22  ;;  %5547 = vpow2.f32 %v4459_v4  ;;  %3127 = vrot.lane.b32.xlu0 %v7640_v52, %s5858_s6  ;;  %v4479_v5 = vadd.f32 -1.0, %v2804_v1  ;;  %v7654_v16 = vsel %vm349_vm11, %v4478_v51, %v5520_v9 }
 0x262   : > { %v5532_v30 = vpop.eup %5531  ;;  %5549 = vrcp.f32 %v2717_v28  ;;  %v2718_v26 = vadd.f32 1.0, %v5530_v58  ;;  %v7644_v62 = vpop.f32.mrb[20].mxu0  ;;  %v7648_v43 = vsel %vm349_vm11, %v4481_v59, %v5522_v41 }
 0x263   : > { %v5534_v53 = vpop.eup %5533  ;;  %5551 = vrcp.f32 %v2715_v17  ;;  %v2716_v38 = vadd.f32 1.0, %v5532_v30  ;;  %v7650_v55 = vpop.f32.mrb[21].mxu0  ;;  %3129 = vrot.lane.b32.xlu1 %v7648_v43, %s5858_s6  ;;  %v7666_v14 = vsel %vm349_vm11, %v4479_v5, %v5524_v19 }
 0x264   : > { %v5536_v11 = vpop.eup %5535  ;;  %5553 = vrcp.f32 %v2718_v26  ;;  %v7658_v15 = vpop.f32.mrb[22].mxu0  ;;  %v2809_v21 = vmul.f32 2.0, %v5534_v53 }
 0x265   : > { %v5538_v36 = vpop.eup %5537  ;;  %5555 = vrcp.f32 %v2716_v38  ;;  %v2807_v29 = vmul.f32 2.0, %v5536_v11  ;;  %v7660_v2 = vpop.f32.mrb[23].mxu0  ;;  %3123 = vrot.lane.b32.xlu0 %v7654_v16, %s5858_s6 }
 0x266   : > { %v5540_v63 = vpop.eup %5539  ;;  %v4484_v49 = vadd.f32 -1.0, %v2809_v21  ;;  %v2810_v33 = vmul.f32 2.0, %v5538_v36 }
 0x267   : > { %v5542_v32 = vpop.eup %5541  ;;  %v2808_v10 = vmul.f32 2.0, %v5540_v63  ;;  %v4482_v39 = vadd.f32 -1.0, %v2807_v29  ;;  %3125 = vrot.lane.b32.xlu1 %v7666_v14, %s5858_s6 }
 0x268   : > { %v5544_v61 = vpop.eup %5543  ;;  %v2721_v27 = vadd.f32 1.0, %v5542_v32  ;;  %v7672_v13 = vsel %vm349_vm11, %v4484_v49, %v5534_v53  ;;  %v4485_v48 = vadd.f32 -1.0, %v2810_v33 }
 0x269   : > { %v5546_v35 = vpop.eup %5545  ;;  %v2719_v3 = vadd.f32 1.0, %v5544_v61  ;;  %3135 = vrot.lane.b32.xlu0 %v7672_v13, %s5858_s6  ;;  %v4483_v37 = vadd.f32 -1.0, %v2808_v10  ;;  %v7686_v23 = vsel %vm349_vm11, %v4482_v39, %v5536_v11 }
 0x26a   : > { %5557 = vrcp.f32 %v2721_v27  ;;  %v2722_v31 = vadd.f32 1.0, %v5546_v35  ;;  %v7678_v7 = vsel %vm349_vm11, %v4485_v48, %v5538_v36  ;;  %v7680_v25 = vpop.f32.mrb[24].mxu0  ;;  %v7736_v27 = vpop.permute.xlu0 %2963 }
 0x26b   : > { %v5548_v34 = vpop.eup %5547  ;;  %5559 = vrcp.f32 %v2719_v3  ;;  %v7682_v6 = vpop.f32.mrb[25].mxu0  ;;  %3137 = vrot.lane.b32.xlu1 %v7678_v7, %s5858_s6  ;;  %v7698_v19 = vsel %vm349_vm11, %v4483_v37, %v5540_v63 }
 0x26c   : > { %v5550_v57 = vpop.eup %5549  ;;  %v2720_v44 = vadd.f32 1.0, %v5548_v34  ;;  %v7690_v0 = vpop.f32.mrb[26].mxu0  ;;  %5561 = vrcp.f32 %v2722_v31 }
 0x26d   : > { %v5552_v9 = vpop.eup %5551  ;;  %v7692_v56 = vpop.f32.mrb[27].mxu0  ;;  %3131 = vrot.lane.b32.xlu0 %v7686_v23, %s5858_s6  ;;  %v2813_v40 = vmul.f32 2.0, %v5550_v57 }
 0x26e   : > { %v5554_v54 = vpop.eup %5553  ;;  %5563 = vrcp.f32 %v2720_v44  ;;  %v2811_v41 = vmul.f32 2.0, %v5552_v9 }
 0x26f   : > { %v5556_v46 = vpop.eup %5555  ;;  %v4488_v8 = vadd.f32 -1.0, %v2813_v40  ;;  %v2814_v24 = vmul.f32 2.0, %v5554_v54  ;;  %v4776_v18 = vpop.f32.mrb[16].mxu1  ;;  %3133 = vrot.lane.b32.xlu1 %v7698_v19, %s5858_s6 }
 0x270   : > { %v2812_v45 = vmul.f32 2.0, %v5556_v46  ;;  %v4486_v4 = vadd.f32 -1.0, %v2811_v41  ;;  %v4866_v1 = vadd.f32 %v7626_v12, %v4776_v18  ;;  %v2191_v22 = vpop.f32.mrb[17].mxu1 }
 0x271   : > { %v7705_v28 = vsel %vm349_vm11, %v4488_v8, %v5550_v57  ;;  %v4489_v51 = vadd.f32 -1.0, %v2814_v24  ;;  %v4867_v59 = vadd.f32 %v7630_v50, %v2191_v22  ;;  %v4777_v58 = vpop.f32.mrb[18].mxu1  ;;  %v7751_v8 = vpop.permute.xlu1 %2965 }
 0x272   : > { %3143 = vrot.lane.b32.xlu0 %v7705_v28, %s5858_s6  ;;  %v7710_v17 = vpop.f32.mrb[28].mxu0  ;;  %v4487_v30 = vadd.f32 -1.0, %v2812_v45  ;;  %v2533_v26 = vadd.f32 %v4866_v1, %v7567_v60  ;;  %v4868_v53 = vadd.f32 %v7632_v20, %v4777_v58  ;;  %v2194_v12 = vpop.f32.mrb[19].mxu1  ;;  %v7728_v20 = vsel %vm349_vm11, %v4486_v4, %v5552_v9 }
 0x273   : > { %v7716_v38 = vsel %vm349_vm11, %v4489_v51, %v5554_v54  ;;  %v7718_v5 = vpop.f32.mrb[29].mxu0  ;;  %v2531_v50 = vadd.f32 %v4867_v59, %v7567_v60  ;;  %v4869_v21 = vadd.f32 %v7634_v42, %v2194_v12 }
 0x274   : > { %v5558_v11 = vpop.eup %5557  ;;  %3145 = vrot.lane.b32.xlu1 %v7716_v38, %s5858_s6  ;;  %v7724_v36 = vpop.f32.mrb[30].mxu0  ;;  %v2565_v63 = vmul.f32 2.0, %v2533_v26  ;;  %v2534_v49 = vadd.f32 %v4868_v53, %v7567_v60  ;;  %v7740_v39 = vsel %vm349_vm11, %v4487_v30, %v5556_v46 }
 0x275   : > { %v5560_v29 = vpop.eup %5559  ;;  %v7731_v33 = vpop.f32.mrb[31].mxu0  ;;  %v2817_v32 = vmul.f32 2.0, %v5558_v11  ;;  %v2563_v10 = vmul.f32 2.0, %v2531_v50  ;;  %v2532_v61 = vadd.f32 %v4869_v21, %v7567_v60 }
 0x276   : > { %3139 = vrot.lane.b32.xlu0 %v7728_v20, %s5858_s6  ;;  %v5562_v42 = vpop.eup %5561  ;;  %v2597_v48 = vsel %vm349_vm11, %v2565_v63, %v2533_v26  ;;  %v2566_v35 = vmul.f32 2.0, %v2534_v49  ;;  %v2815_v3 = vmul.f32 2.0, %v5560_v29  ;;  %v7761_v26 = vpop.permute.xlu0 %2967 }
 0x277   : > { %v4464_v34 = vmul.f32 -1.442695, %v2597_v48  ;;  %v2595_v37 = vsel %vm349_vm11, %v2563_v10, %v2531_v50  ;;  %v2564_v57 = vmul.f32 2.0, %v2532_v61  ;;  %v4780_v44 = vpop.f32.mrb[20].mxu1  ;;  %v4492_v9 = vadd.f32 -1.0, %v2817_v32  ;;  %v7769_v32 = vpop.permute.xlu1 %2969 }
 0x278   : > { %v5564_v31 = vpop.eup %5563  ;;  %3141 = vrot.lane.b32.xlu1 %v7740_v39, %s5858_s6  ;;  %v4462_v40 = vmul.f32 -1.442695, %v2595_v37  ;;  %v2598_v54 = vsel %vm349_vm11, %v2566_v35, %v2534_v49  ;;  %v4870_v41 = vadd.f32 %v7644_v62, %v4780_v44  ;;  %v2207_v46 = vpop.f32.mrb[21].mxu1  ;;  %v4490_v22 = vadd.f32 -1.0, %v2815_v3 }
 0x279   : > { %5565 = vpow2.f32 %v4464_v34  ;;  %v4465_v24 = vmul.f32 -1.442695, %v2598_v54  ;;  %v2596_v45 = vsel %vm349_vm11, %v2564_v57, %v2532_v61  ;;  %v2816_v18 = vmul.f32 2.0, %v5564_v31  ;;  %v4781_v4 = vpop.f32.mrb[22].mxu1 }
 0x27a   : > { %5567 = vpow2.f32 %v4462_v40  ;;  %v4463_v1 = vmul.f32 -1.442695, %v2596_v45  ;;  %v2210_v51 = vpop.f32.mrb[23].mxu1  ;;  %v2818_v59 = vmul.f32 2.0, %v5562_v42  ;;  %v2537_v58 = vadd.f32 %v4870_v41, %v7567_v60  ;;  %v7794_v40 = vpop.permute.xlu0 %2971 }
 0x27b   : > { %5569 = vpow2.f32 %v4465_v24  ;;  %v4871_v62 = vadd.f32 %v7650_v55, %v2207_v46  ;;  %v7759_v30 = vsel %vm349_vm11, %v4492_v9, %v5558_v11  ;;  %v4872_v53 = vadd.f32 %v7658_v15, %v4781_v4 }
 0x27c   : > { %5571 = vpow2.f32 %v4463_v1  ;;  %3151 = vrot.lane.b32.xlu0 %v7759_v30, %s5858_s6  ;;  %v4491_v12 = vadd.f32 -1.0, %v2816_v18  ;;  %v2569_v50 = vmul.f32 2.0, %v2537_v58  ;;  %v4873_v63 = vadd.f32 %v7660_v2, %v2210_v51 }
 0x27d   : > { %v2535_v21 = vadd.f32 %v4871_v62, %v7567_v60  ;;  %v2538_v55 = vadd.f32 %v4872_v53, %v7567_v60  ;;  %v4493_v49 = vadd.f32 -1.0, %v2818_v59  ;;  %v7773_v11 = vsel %vm349_vm11, %v4490_v22, %v5560_v29 }
 0x27e   : > { %v2601_v15 = vsel %vm349_vm11, %v2569_v50, %v2537_v58  ;;  %v2536_v61 = vadd.f32 %v4873_v63, %v7567_v60  ;;  %v7787_v37 = vsel %vm349_vm11, %v4491_v12, %v5564_v31  ;;  %v7803_v58 = vpop.permute.xlu1 %2973 }
 0x27f   : > { %v2567_v10 = vmul.f32 2.0, %v2535_v21  ;;  %v4784_v48 = vpop.f32.mrb[24].mxu1  ;;  %v4468_v35 = vmul.f32 -1.442695, %v2601_v15  ;;  %v2570_v3 = vmul.f32 2.0, %v2538_v55  ;;  %v7780_v2 = vsel %vm349_vm11, %v4493_v49, %v5562_v42 }
 0x280   : > { %3147 = vrot.lane.b32.xlu0 %v7773_v11, %s5858_s6  ;;  %v4874_v34 = vadd.f32 %v7680_v25, %v4784_v48  ;;  %v2223_v29 = vpop.f32.mrb[25].mxu1  ;;  %v2568_v44 = vmul.f32 2.0, %v2536_v61  ;;  %3153 = vrot.lane.b32.xlu1 %v7780_v2, %s5858_s6 }
 0x281   : > { %v2599_v57 = vsel %vm349_vm11, %v2567_v10, %v2535_v21  ;;  %v4875_v42 = vadd.f32 %v7682_v6, %v2223_v29  ;;  %v4785_v9 = vpop.f32.mrb[26].mxu1  ;;  %5573 = vpow2.f32 %v4468_v35  ;;  %v2602_v25 = vsel %vm349_vm11, %v2570_v3, %v2538_v55 }
 0x282   : > { %v4466_v54 = vmul.f32 -1.442695, %v2599_v57  ;;  %v2541_v31 = vadd.f32 %v4874_v34, %v7567_v60  ;;  %v2226_v41 = vpop.f32.mrb[27].mxu1  ;;  %v4469_v24 = vmul.f32 -1.442695, %v2602_v25  ;;  %v2600_v45 = vsel %vm349_vm11, %v2568_v44, %v2536_v61  ;;  %v7813_v61 = vpop.permute.xlu0 %2975 }
 0x283   : > { %v5566_v46 = vpop.eup %5565  ;;  %v2539_v18 = vadd.f32 %v4875_v42, %v7567_v60  ;;  %v4876_v6 = vadd.f32 %v7690_v0, %v4785_v9  ;;  %v4467_v22 = vmul.f32 -1.442695, %v2600_v45  ;;  %v4877_v63 = vadd.f32 %v7692_v56, %v2226_v41  ;;  %v7821_v25 = vpop.permute.xlu1 %2977 }
 0x284   : > { %v5568_v4 = vpop.eup %5567  ;;  %v2725_v1 = vadd.f32 1.0, %v5566_v46  ;;  %5575 = vpow2.f32 %v4466_v54  ;;  %v2573_v51 = vmul.f32 2.0, %v2541_v31  ;;  %3149 = vrot.lane.b32.xlu1 %v7787_v37, %s5858_s6 }
 0x285   : > { %v5570_v59 = vpop.eup %5569  ;;  %v2723_v62 = vadd.f32 1.0, %v5568_v4  ;;  %5577 = vpow2.f32 %v4469_v24  ;;  %v2571_v53 = vmul.f32 2.0, %v2539_v18  ;;  %v2542_v12 = vadd.f32 %v4876_v6, %v7567_v60 }
 0x286   : > { %v5572_v50 = vpop.eup %5571  ;;  %5579 = vrcp.f32 %v2725_v1  ;;  %v2726_v21 = vadd.f32 1.0, %v5570_v59  ;;  %v2605_v0 = vsel %vm349_vm11, %v2573_v51, %v2541_v31  ;;  %v2540_v3 = vadd.f32 %v4877_v63, %v7567_v60  ;;  %v7829_v1 = vpop.permute.xlu0 %2979 }
 0x287   : > { %5581 = vrcp.f32 %v2723_v62  ;;  %v2724_v55 = vadd.f32 1.0, %v5572_v50  ;;  %v4472_v49 = vmul.f32 -1.442695, %v2605_v0  ;;  %v2603_v15 = vsel %vm349_vm11, %v2571_v53, %v2539_v18  ;;  %v4788_v10 = vpop.f32.mrb[28].mxu1 }
 0x288   : > { %5583 = vrcp.f32 %v2726_v21  ;;  %v4470_v48 = vmul.f32 -1.442695, %v2603_v15  ;;  %v2574_v35 = vmul.f32 2.0, %v2542_v12  ;;  %v2239_v34 = vpop.f32.mrb[29].mxu1  ;;  %v4878_v29 = vadd.f32 %v7710_v17, %v4788_v10 }
 0x289   : > { %5585 = vrcp.f32 %v2724_v55  ;;  %v4879_v56 = vadd.f32 %v7718_v5, %v2239_v34  ;;  %v4789_v57 = vpop.f32.mrb[30].mxu1  ;;  %v2572_v42 = vmul.f32 2.0, %v2540_v3  ;;  %v7836_v55 = vpop.permute.xlu1 %2981 }
 0x28a   : > { %5587 = vpow2.f32 %v4467_v22  ;;  %v2606_v44 = vsel %vm349_vm11, %v2574_v35, %v2542_v12  ;;  %v4880_v9 = vadd.f32 %v7724_v36, %v4789_v57  ;;  %v2242_v54 = vpop.f32.mrb[31].mxu1  ;;  %v2545_v41 = vadd.f32 %v4878_v29, %v7567_v60 }
 0x28b   : > { %5589 = vpow2.f32 %v4472_v49  ;;  %v4473_v31 = vmul.f32 -1.442695, %v2606_v44  ;;  %v2543_v46 = vadd.f32 %v4879_v56, %v7567_v60  ;;  %v5574_v17 = vpop.eup %5573  ;;  %v2604_v5 = vsel %vm349_vm11, %v2572_v42, %v2540_v3  ;;  %v7842_v44 = vpop.permute.xlu0 %2983 }
 0x28c   : > { %5591 = vpow2.f32 %v4470_v48  ;;  %v2546_v24 = vadd.f32 %v4880_v9, %v7567_v60  ;;  %v4881_v45 = vadd.f32 %v7731_v33, %v2242_v54  ;;  %v2729_v18 = vadd.f32 1.0, %v5574_v17 }
 0x28d   : > { %5593 = vpow2.f32 %v4473_v31  ;;  %v4471_v36 = vmul.f32 -1.442695, %v2604_v5  ;;  %v2577_v6 = vmul.f32 2.0, %v2545_v41  ;;  %v2575_v22 = vmul.f32 2.0, %v2543_v46 }
 0x28e   : > { %v5576_v4 = vpop.eup %5575  ;;  %v2578_v51 = vmul.f32 2.0, %v2546_v24  ;;  %v2544_v59 = vadd.f32 %v4881_v45, %v7567_v60  ;;  %5595 = vrcp.f32 %v2729_v18  ;;  %v7844_v45 = vpop.permute.xlu1 %2985 }
 0x28f   : > { %v5578_v62 = vpop.eup %5577  ;;  %v2727_v53 = vadd.f32 1.0, %v5576_v4  ;;  %v2609_v12 = vsel %vm349_vm11, %v2577_v6, %v2545_v41  ;;  %5597 = vpow2.f32 %v4471_v36  ;;  %v2607_v0 = vsel %vm349_vm11, %v2575_v22, %v2543_v46 }
 0x290   : > { %v5580_v50 = vpop.eup %5579  ;;  %v2730_v21 = vadd.f32 1.0, %v5578_v62  ;;  %v4476_v33 = vmul.f32 -1.442695, %v2609_v12  ;;  %v4474_v49 = vmul.f32 -1.442695, %v2607_v0  ;;  %v2610_v60 = vsel %vm349_vm11, %v2578_v51, %v2546_v24 }
 0x291   : > { %v5582_v63 = vpop.eup %5581  ;;  %5599 = vrcp.f32 %v2727_v53  ;;  %v2576_v15 = vmul.f32 2.0, %v2544_v59  ;;  %v4477_v48 = vmul.f32 -1.442695, %v2610_v60  ;;  %v2821_v35 = vmul.f32 2.0, %v5580_v50  ;;  %v7856_v53 = vpop.permute.xlu0 %2987 }
 0x292   : > { %v5584_v10 = vpop.eup %5583  ;;  %5601 = vrcp.f32 %v2730_v21  ;;  %v2819_v29 = vmul.f32 2.0, %v5582_v63 }
 0x293   : > { %v5586_v3 = vpop.eup %5585  ;;  %5603 = vpow2.f32 %v4476_v33  ;;  %v2608_v34 = vsel %vm349_vm11, %v2576_v15, %v2544_v59  ;;  %v2822_v56 = vmul.f32 2.0, %v5584_v10  ;;  %v4496_v41 = vadd.f32 -1.0, %v2821_v35 }
 0x294   : > { %v5588_v57 = vpop.eup %5587  ;;  %5605 = vpow2.f32 %v4474_v49  ;;  %v4475_v42 = vmul.f32 -1.442695, %v2608_v34  ;;  %v2820_v9 = vmul.f32 2.0, %v5586_v3  ;;  %v4494_v36 = vadd.f32 -1.0, %v2819_v29 }
 0x295   : > { %v5590_v54 = vpop.eup %5589  ;;  %v2728_v31 = vadd.f32 1.0, %v5588_v57  ;;  %5607 = vpow2.f32 %v4477_v48  ;;  %v4497_v46 = vadd.f32 -1.0, %v2822_v56  ;;  %v7848_v6 = vsel %vm349_vm11, %v4496_v41, %v5580_v50 }
 0x296   : > { %v5592_v17 = vpop.eup %5591  ;;  %v2733_v5 = vadd.f32 1.0, %v5590_v54  ;;  %5609 = vpow2.f32 %v4475_v42  ;;  %3159 = vrot.lane.b32.xlu0 %v7848_v6, %s5858_s6  ;;  %v4495_v51 = vadd.f32 -1.0, %v2820_v9  ;;  %v7862_v33 = vsel %vm349_vm11, %v4494_v36, %v5582_v63 }
 0x297   : > { %v5594_v24 = vpop.eup %5593  ;;  %5611 = vrcp.f32 %v2728_v31  ;;  %v2731_v18 = vadd.f32 1.0, %v5592_v17  ;;  %v7854_v59 = vsel %vm349_vm11, %v4497_v46, %v5584_v10  ;;  %v7866_v10 = vpop.permute.xlu1 %2989 }
 0x298   : > { %5613 = vrcp.f32 %v2733_v5  ;;  %v2734_v4 = vadd.f32 1.0, %v5594_v24  ;;  %v5596_v22 = vpop.eup %5595  ;;  %3161 = vrot.lane.b32.xlu1 %v7854_v59, %s5858_s6  ;;  %v7870_v48 = vsel %vm349_vm11, %v4495_v51, %v5586_v3  ;;  %v7878_v31 = vpop.permute.xlu0 %2991 }
 0x299   : > { %5615 = vrcp.f32 %v2731_v18  ;;  %v5598_v62 = vpop.eup %5597  ;;  %v2825_v12 = vmul.f32 2.0, %v5596_v22 }
 0x29a   : > { %5617 = vrcp.f32 %v2734_v4  ;;  %v2732_v21 = vadd.f32 1.0, %v5598_v62  ;;  %3155 = vrot.lane.b32.xlu0 %v7862_v33, %s5858_s6 }
 0x29b   : > { %v5600_v50 = vpop.eup %5599  ;;  %v4500_v60 = vadd.f32 -1.0, %v2825_v12  ;;  %v7888_v36 = vpop.permute.xlu1 %2993 }
 0x29c   : > { %v5602_v0 = vpop.eup %5601  ;;  %v2823_v49 = vmul.f32 2.0, %v5600_v50  ;;  %5619 = vrcp.f32 %v2732_v21  ;;  %3157 = vrot.lane.b32.xlu1 %v7870_v48, %s5858_s6  ;;  %v7894_v62 = vpop.permute.xlu0 %2995 }
 0x29d   : > { %v5604_v15 = vpop.eup %5603  ;;  %v2826_v35 = vmul.f32 2.0, %v5602_v0  ;;  %v7876_v63 = vsel %vm349_vm11, %v4500_v60, %v5596_v22 }
 0x29e   : > { %v5606_v34 = vpop.eup %5605  ;;  %v2737_v29 = vadd.f32 1.0, %v5604_v15  ;;  %v4498_v42 = vadd.f32 -1.0, %v2823_v49  ;;  %3167 = vrot.lane.b32.xlu0 %v7876_v63, %s5858_s6 }
 0x29f   : > { %v5608_v56 = vpop.eup %5607  ;;  %v2735_v57 = vadd.f32 1.0, %v5606_v34  ;;  %v4501_v9 = vadd.f32 -1.0, %v2826_v35  ;;  %v7902_v35 = vpop.permute.xlu1 %2997 }
 0x2a0   : > { %v5610_v54 = vpop.eup %5609  ;;  %5621 = vrcp.f32 %v2737_v29  ;;  %v2738_v3 = vadd.f32 1.0, %v5608_v56  ;;  %v7892_v4 = vsel %vm349_vm11, %v4498_v42, %v5600_v50 }
 0x2a1   : > { %v5612_v41 = vpop.eup %5611  ;;  %5623 = vrcp.f32 %v2735_v57  ;;  %v2736_v46 = vadd.f32 1.0, %v5610_v54  ;;  %v7884_v17 = vsel %vm349_vm11, %v4501_v9, %v5602_v0  ;;  %v7916_v9 = vpop.permute.xlu0 %2999 }
 0x2a2   : > { %v5614_v5 = vpop.eup %5613  ;;  %5625 = vrcp.f32 %v2738_v3  ;;  %v2824_v24 = vmul.f32 2.0, %v5612_v41  ;;  %3169 = vrot.lane.b32.xlu1 %v7884_v17, %s5858_s6  ;;  %3163 = vrot.lane.b32.xlu0 %v7892_v4, %s5858_s6 }
 0x2a3   : > { %v5616_v18 = vpop.eup %5615  ;;  %5627 = vrcp.f32 %v2736_v46  ;;  %v2829_v22 = vmul.f32 2.0, %v5614_v5 }
 0x2a4   : > { %v5618_v51 = vpop.eup %5617  ;;  %v4499_v12 = vadd.f32 -1.0, %v2824_v24  ;;  %v2827_v21 = vmul.f32 2.0, %v5616_v18 }
 0x2a5   : > { %v4504_v0 = vadd.f32 -1.0, %v2829_v22  ;;  %v2830_v49 = vmul.f32 2.0, %v5618_v51 }
 0x2a6   : > { %v7900_v60 = vsel %vm349_vm11, %v4499_v12, %v5612_v41  ;;  %v5620_v15 = vpop.eup %5619  ;;  %v4502_v50 = vadd.f32 -1.0, %v2827_v21 }
 0x2a7   : > { %3165 = vrot.lane.b32.xlu1 %v7900_v60, %s5858_s6  ;;  %v7908_v34 = vsel %vm349_vm11, %v4504_v0, %v5614_v5  ;;  %v4505_v29 = vadd.f32 -1.0, %v2830_v49  ;;  %v2828_v56 = vmul.f32 2.0, %v5620_v15 }
 0x2a8   : > { %3175 = vrot.lane.b32.xlu0 %v7908_v34, %s5858_s6  ;;  %v7920_v41 = vsel %vm349_vm11, %v4502_v50, %v5616_v18 }
 0x2a9   : > { %v7914_v57 = vsel %vm349_vm11, %v4505_v29, %v5618_v51  ;;  %v4503_v54 = vadd.f32 -1.0, %v2828_v56  ;;  %v7926_v51 = vpop.permute.xlu1 %3001  ;;  %v7938_v56 = vpop.permute.xlu0 %3003 }
 0x2aa   : > { %v5622_v42 = vpop.eup %5621  ;;  %8872 = vst [vmem:[#allocation18_spill] sm:$0xff] %v7938_v56 }
 0x2ab   : > { %v5624_v3 = vpop.eup %5623  ;;  %3177 = vrot.lane.b32.xlu1 %v7914_v57, %s5858_s6  ;;  %v2833_v46 = vmul.f32 2.0, %v5622_v42  ;;  %v7930_v0 = vsel %vm349_vm11, %v4503_v54, %v5620_v15 }
 0x2ac   : > { %v5626_v5 = vpop.eup %5625  ;;  %v2831_v24 = vmul.f32 2.0, %v5624_v3  ;;  %3171 = vrot.lane.b32.xlu0 %v7920_v41, %s5858_s6 }
 0x2ad   : > { %v5628_v22 = vpop.eup %5627  ;;  %v4508_v12 = vadd.f32 -1.0, %v2833_v46  ;;  %v2834_v21 = vmul.f32 2.0, %v5626_v5  ;;  %v7946_v54 = vpop.permute.xlu1 %3005 }
 0x2ae   : > { %v2832_v18 = vmul.f32 2.0, %v5628_v22  ;;  %v4506_v49 = vadd.f32 -1.0, %v2831_v24  ;;  %8873 = vst [vmem:[#allocation33_spill] sm:$0xff] %v7946_v54 }
 0x2af   : > { %3173 = vrot.lane.b32.xlu1 %v7930_v0, %s5858_s6  ;;  %v7936_v50 = vsel %vm349_vm11, %v4508_v12, %v5622_v42  ;;  %v4509_v29 = vadd.f32 -1.0, %v2834_v21  ;;  %v7956_v42 = vpop.permute.xlu0 %3007 }
 0x2b0   : > { %3183 = vrot.lane.b32.xlu0 %v7936_v50, %s5858_s6  ;;  %v4507_v15 = vadd.f32 -1.0, %v2832_v18  ;;  %v7950_v24 = vsel %vm349_vm11, %v4506_v49, %v5624_v3 }
 0x2b1   : > { %v7944_v46 = vsel %vm349_vm11, %v4509_v29, %v5626_v5  ;;  %v7964_v5 = vpop.permute.xlu1 %3009 }
 0x2b2   : > { %v7960_v12 = vsel %vm349_vm11, %v4507_v15, %v5628_v22  ;;  %8874 = vst [vmem:[#allocation41_spill] sm:$0xff] %v7964_v5 }
 0x2b3   : > { %3185 = vrot.lane.b32.xlu1 %v7944_v46, %s5858_s6  ;;  %v7966_v21 = vpop.permute.xlu0 %3011 }
 0x2b4   : > { %3179 = vrot.lane.b32.xlu0 %v7950_v24, %s5858_s6  ;;  %8875 = vst [vmem:[#allocation20_spill] sm:$0xff] %v7966_v21 }
 0x2b5   : > { %v7968_v3 = vpop.permute.xlu1 %3013 }
 0x2b6   : > { %8876 = vst [vmem:[#allocation19_spill] sm:$0xff] %v7968_v3 }
 0x2b7   : > { %3181 = vrot.lane.b32.xlu1 %v7960_v12, %s5858_s6  ;;  %v7970_v18 = vpop.permute.xlu0 %3015 }
 0x2b8   : > { %8877 = vst [vmem:[#allocation36_spill] sm:$0xff] %v7970_v18 }
 0x2b9   : > { %v7972_v49 = vpop.permute.xlu1 %3017 }
 0x2bb   : > { %v7974_v29 = vpop.permute.xlu0 %3019 }
 0x2bc   : > { %8878 = vst [vmem:[#allocation24_spill] sm:$0xff] %v7974_v29 }
 0x2bd   : > { %v7976_v54 = vpop.permute.xlu1 %3021 }
 0x2be   : > { %8879 = vst [vmem:[#allocation23_spill] sm:$0xff] %v7976_v54 }
 0x2bf   : > { %v7978_v47 = vpop.permute.xlu0 %3023 }
 0x2c0   : > { %8880 = vst [vmem:[#allocation34_spill] sm:$0xff] %v7978_v47 }
 0x2c1   : > { %v7980_v22 = vpop.permute.xlu1 %3025 }
 0x2c2   : > { %8881 = vst [vmem:[#allocation42_spill] sm:$0xff] %v7980_v22 }
 0x2d3   : > { %v3128_v15 = vpop.permute.xlu0 %3127 }
 0x2d4   : > { %v3221_v56 = vmul.f32 %v3128_v15, %v7640_v52 }
 0x2d5   : > { %v3130_v5 = vpop.permute.xlu1 %3129 }
 0x2d6   : > { %3287 = vrot.lane.b32.xlu0 %v3221_v56, %s5858_s6  ;;  %v3222_v3 = vmul.f32 %v3130_v5, %v7648_v43 }
 0x2d7   : > { %v3124_v21 = vpop.permute.xlu0 %3123 }
 0x2d8   : > { %v3219_v18 = vmul.f32 %v3124_v21, %v7654_v16  ;;  %3289 = vrot.lane.b32.xlu1 %v3222_v3, %s5858_s6 }
 0x2d9   : > { %v3126_v29 = vpop.permute.xlu1 %3125 }
 0x2da   : > { %3283 = vrot.lane.b32.xlu0 %v3219_v18, %s5858_s6  ;;  %v3220_v54 = vmul.f32 %v3126_v29, %v7666_v14 }
 0x2db   : > { %v3136_v47 = vpop.permute.xlu0 %3135 }
 0x2dc   : > { %v3225_v22 = vmul.f32 %v3136_v47, %v7672_v13  ;;  %3285 = vrot.lane.b32.xlu1 %v3220_v54, %s5858_s6 }
 0x2dd   : > { %v3138_v15 = vpop.permute.xlu1 %3137 }
 0x2de   : > { %3295 = vrot.lane.b32.xlu0 %v3225_v22, %s5858_s6  ;;  %v3226_v56 = vmul.f32 %v3138_v15, %v7678_v7 }
 0x2df   : > { %v3132_v5 = vpop.permute.xlu0 %3131 }
 0x2e0   : > { %v3223_v21 = vmul.f32 %v3132_v5, %v7686_v23  ;;  %3297 = vrot.lane.b32.xlu1 %v3226_v56, %s5858_s6 }
 0x2e1   : > { %v3134_v3 = vpop.permute.xlu1 %3133 }
 0x2e2   : > { %3291 = vrot.lane.b32.xlu0 %v3223_v21, %s5858_s6  ;;  %v3224_v18 = vmul.f32 %v3134_v3, %v7698_v19 }
 0x2e4   : > { %v3144_v29 = vpop.permute.xlu0 %3143  ;;  %3293 = vrot.lane.b32.xlu1 %v3224_v18, %s5858_s6 }
 0x2e5   : > { %v3229_v47 = vmul.f32 %v3144_v29, %v7705_v28 }
 0x2e6   : > { %v3146_v54 = vpop.permute.xlu1 %3145 }
 0x2e7   : > { %v3230_v22 = vmul.f32 %v3146_v54, %v7716_v38  ;;  %3303 = vrot.lane.b32.xlu0 %v3229_v47, %s5858_s6 }
 0x2e8   : > { %v3140_v15 = vpop.permute.xlu0 %3139 }
 0x2e9   : > { %v3227_v5 = vmul.f32 %v3140_v15, %v7728_v20  ;;  %3305 = vrot.lane.b32.xlu1 %v3230_v22, %s5858_s6 }
 0x2ea   : > { %v3142_v56 = vpop.permute.xlu1 %3141 }
 0x2eb   : > { %v3228_v21 = vmul.f32 %v3142_v56, %v7740_v39  ;;  %3299 = vrot.lane.b32.xlu0 %v3227_v5, %s5858_s6 }
 0x2ed   : > { %3301 = vrot.lane.b32.xlu1 %v3228_v21, %s5858_s6 }
 0x2ee   : > { %v3152_v3 = vpop.permute.xlu0 %3151 }
 0x2ef   : > { %v3233_v18 = vmul.f32 %v3152_v3, %v7759_v30 }
 0x2f1   : > { %3311 = vrot.lane.b32.xlu0 %v3233_v18, %s5858_s6 }
 0x2f2   : > { %v3148_v29 = vpop.permute.xlu0 %3147  ;;  %v3154_v54 = vpop.permute.xlu1 %3153 }
 0x2f3   : > { %v3231_v47 = vmul.f32 %v3148_v29, %v7773_v11  ;;  %v3234_v15 = vmul.f32 %v3154_v54, %v7780_v2 }
 0x2f5   : > { %3307 = vrot.lane.b32.xlu0 %v3231_v47, %s5858_s6  ;;  %3313 = vrot.lane.b32.xlu1 %v3234_v15, %s5858_s6 }
 0x2f6   : > { %v3150_v22 = vpop.permute.xlu1 %3149 }
 0x2f7   : > { %v3232_v5 = vmul.f32 %v3150_v22, %v7787_v37 }
 0x2f9   : > { %3309 = vrot.lane.b32.xlu1 %v3232_v5, %s5858_s6 }
 0x308   : > { %v3160_v56 = vpop.permute.xlu0 %3159 }
 0x309   : > { %v3237_v21 = vmul.f32 %v3160_v56, %v7848_v6 }
 0x30a   : > { %v3162_v3 = vpop.permute.xlu1 %3161 }
 0x30b   : > { %v3238_v18 = vmul.f32 %v3162_v3, %v7854_v59  ;;  %3319 = vrot.lane.b32.xlu0 %v3237_v21, %s5858_s6 }
 0x30c   : > { %v3156_v29 = vpop.permute.xlu0 %3155 }
 0x30d   : > { %v3235_v54 = vmul.f32 %v3156_v29, %v7862_v33  ;;  %3321 = vrot.lane.b32.xlu1 %v3238_v18, %s5858_s6 }
 0x30e   : > { %v3158_v47 = vpop.permute.xlu1 %3157 }
 0x30f   : > { %v3236_v15 = vmul.f32 %v3158_v47, %v7870_v48  ;;  %3315 = vrot.lane.b32.xlu0 %v3235_v54, %s5858_s6 }
 0x310   : > { %v3168_v22 = vpop.permute.xlu0 %3167 }
 0x311   : > { %v3241_v5 = vmul.f32 %v3168_v22, %v7876_v63  ;;  %3317 = vrot.lane.b32.xlu1 %v3236_v15, %s5858_s6 }
 0x313   : > { %3327 = vrot.lane.b32.xlu0 %v3241_v5, %s5858_s6 }
 0x314   : > { %v3170_v56 = vpop.permute.xlu1 %3169  ;;  %v3164_v21 = vpop.permute.xlu0 %3163 }
 0x315   : > { %v3242_v3 = vmul.f32 %v3170_v56, %v7884_v17  ;;  %v3239_v29 = vmul.f32 %v3164_v21, %v7892_v4 }
 0x317   : > { %3329 = vrot.lane.b32.xlu1 %v3242_v3, %s5858_s6  ;;  %3323 = vrot.lane.b32.xlu0 %v3239_v29, %s5858_s6 }
 0x319   : > { %v3166_v18 = vpop.permute.xlu1 %3165 }
 0x31a   : > { %v3240_v54 = vmul.f32 %v3166_v18, %v7900_v60  ;;  %v3176_v47 = vpop.permute.xlu0 %3175 }
 0x31b   : > { %v3245_v22 = vmul.f32 %v3176_v47, %v7908_v34 }
 0x31c   : > { %3325 = vrot.lane.b32.xlu1 %v3240_v54, %s5858_s6 }
 0x31d   : > { %v3178_v15 = vpop.permute.xlu1 %3177  ;;  %3335 = vrot.lane.b32.xlu0 %v3245_v22, %s5858_s6 }
 0x31e   : > { %v3246_v5 = vmul.f32 %v3178_v15, %v7914_v57  ;;  %v3172_v56 = vpop.permute.xlu0 %3171 }
 0x31f   : > { %v3243_v21 = vmul.f32 %v3172_v56, %v7920_v41 }
 0x320   : > { %3337 = vrot.lane.b32.xlu1 %v3246_v5, %s5858_s6 }
 0x321   : > { %v3174_v3 = vpop.permute.xlu1 %3173  ;;  %3331 = vrot.lane.b32.xlu0 %v3243_v21, %s5858_s6 }
 0x322   : > { %v3244_v29 = vmul.f32 %v3174_v3, %v7930_v0  ;;  %v3184_v18 = vpop.permute.xlu0 %3183  ;;  %v3061_v3 = vmul.f32 %v7761_v26, %v7640_v52  ;;  %v3065_v26 = vmul.f32 %v7813_v61, %v7672_v13 }
 0x323   : > { %v3249_v47 = vmul.f32 %v3184_v18, %v7936_v50 }
 0x324   : > { %3333 = vrot.lane.b32.xlu1 %v3244_v29, %s5858_s6 }
 0x325   : > { %v3186_v54 = vpop.permute.xlu1 %3185  ;;  %3343 = vrot.lane.b32.xlu0 %v3249_v47, %s5858_s6  ;;  %v3062_v47 = vmul.f32 %v7769_v32, %v7648_v43 }
 0x326   : > { %v3250_v22 = vmul.f32 %v3186_v54, %v7944_v46  ;;  %v3180_v15 = vpop.permute.xlu0 %3179  ;;  %v3059_v54 = vmul.f32 %v7736_v27, %v7654_v16 }
 0x327   : > { %v3247_v56 = vmul.f32 %v3180_v15, %v7950_v24 }
 0x328   : > { %3345 = vrot.lane.b32.xlu1 %v3250_v22, %s5858_s6 }
 0x329   : > { %v3182_v5 = vpop.permute.xlu1 %3181  ;;  %3339 = vrot.lane.b32.xlu0 %v3247_v56, %s5858_s6 }
 0x32a   : > { %v3248_v21 = vmul.f32 %v3182_v5, %v7960_v12 }
 0x32c   : > { %3341 = vrot.lane.b32.xlu1 %v3248_v21, %s5858_s6  ;;  %v3060_v21 = vmul.f32 %v7751_v8, %v7666_v14  ;;  %v3063_v8 = vmul.f32 %v7794_v40, %v7686_v23 }
 0x348   : > { %v3288_v29 = vpop.permute.xlu0 %3287 }
 0x349   : > { %v3381_v18 = vadd.f32 %v3288_v29, %v3061_v3 }
 0x34a   : > { %v3290_v15 = vpop.permute.xlu1 %3289 }
 0x34b   : > { %3639 = vrot.lane.b32.xlu0 %v3381_v18, %s5859_s29  ;;  %v3382_v22 = vadd.f32 %v3290_v15, %v3062_v47  ;;  %5629 = vtanh.f32 %v3381_v18  ;;  %v3066_v47 = vmul.f32 %v7821_v25, %v7678_v7  ;;  %v3064_v18 = vmul.f32 %v7803_v58, %v7698_v19 }
 0x34c   : > { %v3284_v56 = vpop.permute.xlu0 %3283  ;;  %v3069_v58 = vmul.f32 %v7842_v44, %v7705_v28 }
 0x34d   : > { %v3379_v5 = vadd.f32 %v3284_v56, %v3059_v54  ;;  %3641 = vrot.lane.b32.xlu1 %v3382_v22, %s5859_s29  ;;  %5631 = vtanh.f32 %v3382_v22 }
 0x34e   : > { %v3286_v3 = vpop.permute.xlu1 %3285 }
 0x34f   : > { %3635 = vrot.lane.b32.xlu0 %v3379_v5, %s5859_s29  ;;  %v3380_v27 = vadd.f32 %v3286_v3, %v3060_v21  ;;  %5633 = vtanh.f32 %v3379_v5 }
 0x350   : > { %v3296_v32 = vpop.permute.xlu0 %3295 }
 0x351   : > { %v3385_v29 = vadd.f32 %v3296_v32, %v3065_v26  ;;  %3637 = vrot.lane.b32.xlu1 %v3380_v27, %s5859_s29  ;;  %5635 = vtanh.f32 %v3380_v27 }
 0x352   : > { %v3298_v54 = vpop.permute.xlu1 %3297 }
 0x353   : > { %3647 = vrot.lane.b32.xlu0 %v3385_v29, %s5859_s29  ;;  %v3386_v61 = vadd.f32 %v3298_v54, %v3066_v47  ;;  %5637 = vtanh.f32 %v3385_v29  ;;  %v3070_v47 = vmul.f32 %v7844_v45, %v7716_v38  ;;  %v3067_v54 = vmul.f32 %v7829_v1, %v7728_v20 }
 0x354   : > { %v3292_v15 = vpop.permute.xlu0 %3291  ;;  %v3068_v29 = vmul.f32 %v7836_v55, %v7740_v39 }
 0x355   : > { %v3383_v56 = vadd.f32 %v3292_v15, %v3063_v8  ;;  %3649 = vrot.lane.b32.xlu1 %v3386_v61, %s5859_s29  ;;  %v5630_v26 = vpop.eup %5629  ;;  %5639 = vtanh.f32 %v3386_v61 }
 0x356   : > { %v3294_v25 = vpop.permute.xlu1 %3293 }
 0x357   : > { %3643 = vrot.lane.b32.xlu0 %v3383_v56, %s5859_s29  ;;  %v3384_v21 = vadd.f32 %v3294_v25, %v3064_v18  ;;  %v5632_v22 = vpop.eup %5631  ;;  %5641 = vtanh.f32 %v3383_v56 }
 0x359   : > { %3645 = vrot.lane.b32.xlu1 %v3384_v21, %s5859_s29  ;;  %v3304_v40 = vpop.permute.xlu0 %3303  ;;  %v5634_v5 = vpop.eup %5633  ;;  %5643 = vtanh.f32 %v3384_v21 }
 0x35a   : > { %v3389_v32 = vadd.f32 %v3304_v40, %v3069_v58  ;;  %v3071_v58 = vmul.f32 %v7856_v53, %v7773_v11 }
 0x35b   : > { %3479 = vrot.lane.b32.xlu0 %v5630_v26, %s5858_s6  ;;  %v3306_v3 = vpop.permute.xlu1 %3305  ;;  %v5636_v27 = vpop.eup %5635  ;;  %v3073_v26 = vmul.f32 %v7878_v31, %v7759_v30 }
 0x35c   : > { %v3390_v44 = vadd.f32 %v3306_v3, %v3070_v47  ;;  %5645 = vtanh.f32 %v3389_v32 }
 0x35d   : > { %3481 = vrot.lane.b32.xlu1 %v5632_v22, %s5858_s6  ;;  %v3300_v8 = vpop.permute.xlu0 %3299  ;;  %v5638_v25 = vpop.eup %5637  ;;  %v3074_v22 = vmul.f32 %v7888_v36, %v7780_v2 }
 0x35e   : > { %v3387_v15 = vadd.f32 %v3300_v8, %v3067_v54  ;;  %5647 = vtanh.f32 %v3390_v44  ;;  %v3077_v54 = vmul.f32 %v7916_v9, %v7848_v6 }
 0x35f   : > { %3475 = vrot.lane.b32.xlu0 %v5634_v5, %s5858_s6  ;;  %v3302_v18 = vpop.permute.xlu1 %3301  ;;  %v5640_v61 = vpop.eup %5639 }
 0x360   : > { %v3388_v45 = vadd.f32 %v3302_v18, %v3068_v29  ;;  %5649 = vtanh.f32 %v3387_v15  ;;  %v3078_v18 = vmul.f32 %v7926_v51, %v7854_v59 }
 0x361   : > { %3477 = vrot.lane.b32.xlu1 %v5636_v27, %s5858_s6  ;;  %v5642_v56 = vpop.eup %5641 }
 0x362   : > { %5651 = vtanh.f32 %v3388_v45 }
 0x363   : > { %3655 = vrot.lane.b32.xlu0 %v3389_v32, %s5859_s29  ;;  %v3312_v1 = vpop.permute.xlu0 %3311  ;;  %v5644_v21 = vpop.eup %5643  ;;  %v3072_v32 = vmul.f32 %v7866_v10, %v7787_v37 }
 0x364   : > { %v3393_v40 = vadd.f32 %v3312_v1, %v3073_v26 }
 0x365   : > { %3657 = vrot.lane.b32.xlu1 %v3390_v44, %s5859_s29 }
 0x366   : > { %v5646_v47 = vpop.eup %5645  ;;  %5653 = vtanh.f32 %v3393_v40 }
 0x367   : > { %3651 = vrot.lane.b32.xlu0 %v3387_v15, %s5859_s29  ;;  %v3314_v55 = vpop.permute.xlu1 %3313  ;;  %v3308_v5 = vpop.permute.xlu0 %3307 }
 0x368   : > { %v3394_v31 = vadd.f32 %v3314_v55, %v3074_v22  ;;  %v3391_v3 = vadd.f32 %v3308_v5, %v3071_v58  ;;  %v5648_v53 = vpop.eup %5647  ;;  %v8882_v58 = vld [vmem:[#allocation41_spill] sm:$0xff] }
 0x369   : > { %3653 = vrot.lane.b32.xlu1 %v3388_v45, %s5859_s29  ;;  %v3075_v45 = vmul.f32 %v7894_v62, %v7862_v33 }
 0x36a   : > { %v5650_v8 = vpop.eup %5649  ;;  %5655 = vtanh.f32 %v3394_v31 }
 0x36b   : > { %3487 = vrot.lane.b32.xlu0 %v5638_v25, %s5858_s6  ;;  %v3310_v27 = vpop.permute.xlu1 %3309  ;;  %5657 = vtanh.f32 %v3391_v3 }
 0x36c   : > { %v3392_v36 = vadd.f32 %v3310_v27, %v3072_v32  ;;  %v5652_v44 = vpop.eup %5651  ;;  %v8883_v27 = vld [vmem:[#allocation18_spill] sm:$0xff] }
 0x36d   : > { %3489 = vrot.lane.b32.xlu1 %v5640_v61, %s5858_s6  ;;  %v3076_v61 = vmul.f32 %v7902_v35, %v7870_v48  ;;  %v3081_v35 = vmul.f32 %v7956_v42, %v7876_v63  ;;  %v3079_v32 = vmul.f32 %v8883_v27, %v7892_v4 }
 0x36e   : > { %5659 = vtanh.f32 %v3392_v36 }
 0x36f   : > { %3483 = vrot.lane.b32.xlu0 %v5642_v56, %s5858_s6 }
 0x370   : > { %v5654_v26 = vpop.eup %5653 }
 0x371   : > { %3485 = vrot.lane.b32.xlu1 %v5644_v21, %s5858_s6 }
 0x373   : > { %3663 = vrot.lane.b32.xlu0 %v3393_v40, %s5859_s29 }
 0x374   : > { %v5656_v55 = vpop.eup %5655 }
 0x375   : > { %3665 = vrot.lane.b32.xlu1 %v3394_v31, %s5859_s29  ;;  %v5658_v21 = vpop.eup %5657  ;;  %v3082_v31 = vmul.f32 %v8882_v58, %v7884_v17 }
 0x377   : > { %3659 = vrot.lane.b32.xlu0 %v3391_v3, %s5859_s29 }
 0x378   : > { %v5660_v22 = vpop.eup %5659 }
 0x379   : > { %3661 = vrot.lane.b32.xlu1 %v3392_v36, %s5859_s29 }
 0x37b   : > { %3495 = vrot.lane.b32.xlu0 %v5646_v47, %s5858_s6 }
 0x37d   : > { %3497 = vrot.lane.b32.xlu1 %v5648_v53, %s5858_s6  ;;  %v3320_v10 = vpop.permute.xlu0 %3319  ;;  %v8884_v53 = vld [vmem:[#allocation33_spill] sm:$0xff] }
 0x37e   : > { %v3397_v15 = vadd.f32 %v3320_v10, %v3077_v54 }
 0x37f   : > { %3491 = vrot.lane.b32.xlu0 %v5650_v8, %s5858_s6  ;;  %v3322_v29 = vpop.permute.xlu1 %3321  ;;  %v3080_v8 = vmul.f32 %v8884_v53, %v7900_v60 }
 0x380   : > { %v3398_v9 = vadd.f32 %v3322_v29, %v3078_v18  ;;  %5661 = vtanh.f32 %v3397_v15  ;;  %v8885_v29 = vld [vmem:[#allocation36_spill] sm:$0xff] }
 0x381   : > { %3493 = vrot.lane.b32.xlu1 %v5652_v44, %s5858_s6  ;;  %v3316_v25 = vpop.permute.xlu0 %3315 }
 0x382   : > { %v3395_v1 = vadd.f32 %v3316_v25, %v3075_v45  ;;  %5663 = vtanh.f32 %v3398_v9  ;;  %v3085_v45 = vmul.f32 %v8885_v29, %v7908_v34  ;;  %v8891_v29 = vld [vmem:[#allocation23_spill] sm:$0xff] }
 0x383   : > { %3671 = vrot.lane.b32.xlu0 %v3397_v15, %s5859_s29  ;;  %v3318_v56 = vpop.permute.xlu1 %3317 }
 0x384   : > { %v3396_v51 = vadd.f32 %v3318_v56, %v3076_v61  ;;  %5665 = vtanh.f32 %v3395_v1  ;;  %v3086_v61 = vmul.f32 %v7972_v49, %v7914_v57 }
 0x385   : > { %3673 = vrot.lane.b32.xlu1 %v3398_v9, %s5859_s29  ;;  %v3328_v62 = vpop.permute.xlu0 %3327 }
 0x386   : > { %v3401_v5 = vadd.f32 %v3328_v62, %v3081_v35  ;;  %5667 = vtanh.f32 %v3396_v51  ;;  %v8887_v35 = vld [vmem:[#allocation19_spill] sm:$0xff] }
 0x387   : > { %3667 = vrot.lane.b32.xlu0 %v3395_v1, %s5859_s29 }
 0x388   : > { %5669 = vtanh.f32 %v3401_v5 }
 0x389   : > { %3669 = vrot.lane.b32.xlu1 %v3396_v51, %s5859_s29  ;;  %v3330_v40 = vpop.permute.xlu1 %3329  ;;  %v3324_v3 = vpop.permute.xlu0 %3323  ;;  %v8886_v51 = vld [vmem:[#allocation20_spill] sm:$0xff] }
 0x38a   : > { %v3402_v42 = vadd.f32 %v3330_v40, %v3082_v31  ;;  %v3399_v36 = vadd.f32 %v3324_v3, %v3079_v32  ;;  %v5662_v10 = vpop.eup %5661  ;;  %v3084_v40 = vmul.f32 %v8887_v35, %v7930_v0  ;;  %v8888_v3 = vld [vmem:[#allocation34_spill] sm:$0xff] }
 0x38b   : > { %3503 = vrot.lane.b32.xlu0 %v5654_v26, %s5858_s6  ;;  %v3083_v26 = vmul.f32 %v8886_v51, %v7920_v41  ;;  %v3089_v27 = vmul.f32 %v8888_v3, %v7936_v50 }
 0x38c   : > { %v5664_v15 = vpop.eup %5663  ;;  %5671 = vtanh.f32 %v3402_v42 }
 0x38d   : > { %3505 = vrot.lane.b32.xlu1 %v5656_v55, %s5858_s6  ;;  %5673 = vtanh.f32 %v3399_v36 }
 0x38e   : > { %v3326_v47 = vpop.permute.xlu1 %3325  ;;  %v5666_v18 = vpop.eup %5665 }
 0x38f   : > { %3499 = vrot.lane.b32.xlu0 %v5658_v21, %s5858_s6  ;;  %v3400_v54 = vadd.f32 %v3326_v47, %v3080_v8  ;;  %v3336_v44 = vpop.permute.xlu0 %3335  ;;  %v8889_v47 = vld [vmem:[#allocation42_spill] sm:$0xff] }
 0x390   : > { %v5668_v25 = vpop.eup %5667  ;;  %v3405_v1 = vadd.f32 %v3336_v44, %v3085_v45  ;;  %v3090_v53 = vmul.f32 %v8889_v47, %v7944_v46  ;;  %v3088_v45 = vmul.f32 %v8891_v29, %v7960_v12 }
 0x391   : > { %3501 = vrot.lane.b32.xlu1 %v5660_v22, %s5858_s6  ;;  %5675 = vtanh.f32 %v3400_v54 }
 0x392   : > { %v3338_v9 = vpop.permute.xlu1 %3337  ;;  %v5670_v22 = vpop.eup %5669  ;;  %5677 = vtanh.f32 %v3405_v1 }
 0x393   : > { %3679 = vrot.lane.b32.xlu0 %v3401_v5, %s5859_s29  ;;  %v3332_v56 = vpop.permute.xlu0 %3331  ;;  %v3406_v62 = vadd.f32 %v3338_v9, %v3086_v61 }
 0x394   : > { %v3403_v55 = vadd.f32 %v3332_v56, %v3083_v26 }
 0x395   : > { %3681 = vrot.lane.b32.xlu1 %v3402_v42, %s5859_s29  ;;  %5679 = vtanh.f32 %v3406_v62 }
 0x396   : > { %v3334_v21 = vpop.permute.xlu1 %3333  ;;  %v5672_v58 = vpop.eup %5671  ;;  %5681 = vtanh.f32 %v3403_v55 }
 0x397   : > { %3675 = vrot.lane.b32.xlu0 %v3399_v36, %s5859_s29  ;;  %v3404_v49 = vadd.f32 %v3334_v21, %v3084_v40  ;;  %v3344_v5 = vpop.permute.xlu0 %3343  ;;  %v5674_v31 = vpop.eup %5673 }
 0x398   : > { %v3409_v36 = vadd.f32 %v3344_v5, %v3089_v27 }
 0x399   : > { %3677 = vrot.lane.b32.xlu1 %v3400_v54, %s5859_s29  ;;  %v8890_v54 = vld [vmem:[#allocation24_spill] sm:$0xff]  ;;  %5683 = vtanh.f32 %v3404_v49 }
 0x39a   : > { %v3346_v32 = vpop.permute.xlu1 %3345  ;;  %5685 = vtanh.f32 %v3409_v36 }
 0x39b   : > { %3511 = vrot.lane.b32.xlu0 %v5662_v10, %s5858_s6  ;;  %v5676_v42 = vpop.eup %5675  ;;  %v3340_v8 = vpop.permute.xlu0 %3339  ;;  %v3087_v10 = vmul.f32 %v8890_v54, %v7950_v24  ;;  %v3410_v44 = vadd.f32 %v3346_v32, %v3090_v53 }
 0x39d   : > { %3513 = vrot.lane.b32.xlu1 %v5664_v15, %s5858_s6  ;;  %v3407_v15 = vadd.f32 %v3340_v8, %v3087_v10  ;;  %5687 = vtanh.f32 %v3410_v44 }
 0x39f   : > { %3507 = vrot.lane.b32.xlu0 %v5666_v18, %s5858_s6  ;;  %v3342_v18 = vpop.permute.xlu1 %3341  ;;  %5689 = vtanh.f32 %v3407_v15 }
 0x3a0   : > { %v3408_v9 = vadd.f32 %v3342_v18, %v3088_v45 }
 0x3a1   : > { %3509 = vrot.lane.b32.xlu1 %v5668_v25, %s5858_s6  ;;  %v5678_v25 = vpop.eup %5677 }
 0x3a2   : > { %5691 = vtanh.f32 %v3408_v9 }
 0x3a3   : > { %3687 = vrot.lane.b32.xlu0 %v3405_v1, %s5859_s29  ;;  %v5680_v1 = vpop.eup %5679 }
 0x3a4   : > { %v5682_v56 = vpop.eup %5681 }
 0x3a5   : > { %3689 = vrot.lane.b32.xlu1 %v3406_v62, %s5859_s29  ;;  %v5684_v26 = vpop.eup %5683 }
 0x3a7   : > { %3683 = vrot.lane.b32.xlu0 %v3403_v55, %s5859_s29  ;;  %v5686_v55 = vpop.eup %5685 }
 0x3a8   : > { %v5688_v35 = vpop.eup %5687 }
 0x3a9   : > { %3685 = vrot.lane.b32.xlu1 %v3404_v49, %s5859_s29  ;;  %v5690_v49 = vpop.eup %5689 }
 0x3ab   : > { %3519 = vrot.lane.b32.xlu0 %v5670_v22, %s5858_s6 }
 0x3ac   : > { %v5692_v5 = vpop.eup %5691 }
 0x3ad   : > { %3521 = vrot.lane.b32.xlu1 %v5672_v58, %s5858_s6 }
 0x3af   : > { %3515 = vrot.lane.b32.xlu0 %v5674_v31, %s5858_s6 }
 0x3b1   : > { %3517 = vrot.lane.b32.xlu1 %v5676_v42, %s5858_s6 }
 0x3b3   : > { %3695 = vrot.lane.b32.xlu0 %v3409_v36, %s5859_s29 }
 0x3b5   : > { %3697 = vrot.lane.b32.xlu1 %v3410_v44, %s5859_s29 }
 0x3b7   : > { %3691 = vrot.lane.b32.xlu0 %v3407_v15, %s5859_s29 }
 0x3b9   : > { %3693 = vrot.lane.b32.xlu1 %v3408_v9, %s5859_s29 }
 0x3bb   : > { %3527 = vrot.lane.b32.xlu0 %v5678_v25, %s5858_s6 }
 0x3bd   : > { %v8167_v61 = vpop.permute.xlu0 %3639  ;;  %3529 = vrot.lane.b32.xlu1 %v5680_v1, %s5858_s6 }
 0x3be   : > { %3734 = vst.msk [vmem:[#allocation3 + $0x10] sm:$0xff] %vm3731_vm12, %v8167_v61  ;;  %4155 = vst.msk [vmem:[%s6024_s17 + $0x10] sm:$0xff] (!%p4542_p8), %vm3731_vm12, %v8167_v61 }
 0x3bf   : > { %3523 = vrot.lane.b32.xlu0 %v5682_v56, %s5858_s6  ;;  %v8173_v51 = vpop.permute.xlu1 %3641 }
 0x3c0   : > { %3735 = vst.msk [vmem:[#allocation3 + $0x18] sm:$0xff] %vm3731_vm12, %v8173_v51  ;;  %4156 = vst.msk [vmem:[%s6024_s17 + $0x18] sm:$0xff] (!%p4542_p8), %vm3731_vm12, %v8173_v51 }
 0x3c1   : > { %v8177_v62 = vpop.permute.xlu0 %3635  ;;  %3525 = vrot.lane.b32.xlu1 %v5684_v26, %s5858_s6 }
 0x3c2   : > { %3732 = vst.msk [vmem:[#allocation3] sm:$0xff] %vm3731_vm12, %v8177_v62  ;;  %4153 = vst.msk [vmem:[%s6024_s17] sm:$0xff] (!%p4542_p8), %vm3731_vm12, %v8177_v62 }
 0x3c3   : > { %3535 = vrot.lane.b32.xlu0 %v5686_v55, %s5858_s6  ;;  %v8183_v21 = vpop.permute.xlu1 %3637 }
 0x3c4   : > { %3733 = vst.msk [vmem:[#allocation3 + $0x8] sm:$0xff] %vm3731_vm12, %v8183_v21  ;;  %4154 = vst.msk [vmem:[%s6024_s17 + $0x8] sm:$0xff] (!%p4542_p8), %vm3731_vm12, %v8183_v21 }
 0x3c5   : > { %v8187_v40 = vpop.permute.xlu0 %3647  ;;  %3537 = vrot.lane.b32.xlu1 %v5688_v35, %s5858_s6 }
 0x3c6   : > { %3738 = vst.msk [vmem:[#allocation3 + $0x30] sm:$0xff] %vm3731_vm12, %v8187_v40  ;;  %4159 = vst.msk [vmem:[%s6024_s17 + $0x30] sm:$0xff] (!%p4542_p8), %vm3731_vm12, %v8187_v40 }
 0x3c7   : > { %3531 = vrot.lane.b32.xlu0 %v5690_v49, %s5858_s6  ;;  %v8193_v22 = vpop.permute.xlu1 %3649 }
 0x3c8   : > { %3739 = vst.msk [vmem:[#allocation3 + $0x38] sm:$0xff] %vm3731_vm12, %v8193_v22  ;;  %4160 = vst.msk [vmem:[%s6024_s17 + $0x38] sm:$0xff] (!%p4542_p8), %vm3731_vm12, %v8193_v22 }
 0x3c9   : > { %v8197_v58 = vpop.permute.xlu0 %3643  ;;  %3533 = vrot.lane.b32.xlu1 %v5692_v5, %s5858_s6 }
 0x3ca   : > { %3736 = vst.msk [vmem:[#allocation3 + $0x20] sm:$0xff] %vm3731_vm12, %v8197_v58  ;;  %4157 = vst.msk [vmem:[%s6024_s17 + $0x20] sm:$0xff] (!%p4542_p8), %vm3731_vm12, %v8197_v58 }
 0x3cb   : > { %v8202_v31 = vpop.permute.xlu1 %3645 }
 0x3cc   : > { %3737 = vst.msk [vmem:[#allocation3 + $0x28] sm:$0xff] %vm3731_vm12, %v8202_v31  ;;  %4158 = vst.msk [vmem:[%s6024_s17 + $0x28] sm:$0xff] (!%p4542_p8), %vm3731_vm12, %v8202_v31 }
 0x3cd   : > { %v3480_v3 = vpop.permute.xlu0 %3479 }
 0x3ce   : > { %v3573_v27 = vmul.f32 %v3480_v3, %v7640_v52 }
 0x3cf   : > { %v3482_v32 = vpop.permute.xlu1 %3481 }
 0x3d0   : > { %3800 = vrot.lane.b32.xlu0 %v3573_v27, %s8775_s26  ;;  %v3574_v42 = vmul.f32 %v3482_v32, %v7648_v43  ;;  %v4554_v10 = vpack.c.bf16 %v3573_v27, %v3573_v27 }
 0x3d1   : > { %v3476_v36 = vpop.permute.xlu0 %3475 }
 0x3d2   : > { %v3571_v47 = vmul.f32 %v3476_v36, %v7654_v16  ;;  %3802 = vrot.lane.b32.xlu1 %v3574_v42, %s8775_s26  ;;  %v4555_v43 = vpack.c.bf16 %v3574_v42, %v3574_v42 }
 0x3d3   : > { %v3478_v53 = vpop.permute.xlu1 %3477 }
 0x3d4   : > { %3796 = vrot.lane.b32.xlu0 %v3571_v47, %s8775_s26  ;;  %v3572_v8 = vmul.f32 %v3478_v53, %v7666_v14  ;;  %v4552_v44 = vpack.c.bf16 %v3571_v47, %v3571_v47 }
 0x3d5   : > { %v8213_v54 = vpop.permute.xlu0 %3655 }
 0x3d6   : > { %3742 = vst.msk [vmem:[#allocation3 + $0x50] sm:$0xff] %vm3731_vm12, %v8213_v54  ;;  %3798 = vrot.lane.b32.xlu1 %v3572_v8, %s8775_s26  ;;  %v4553_v15 = vpack.c.bf16 %v3572_v8, %v3572_v8  ;;  %4163 = vst.msk [vmem:[%s6024_s17 + $0x50] sm:$0xff] (!%p4542_p8), %vm3731_vm12, %v8213_v54 }
 0x3d7   : > { %v8218_v52 = vpop.permute.xlu1 %3657 }
 0x3d8   : > { %4025 = vrot.lane.b32.xlu0 %v4554_v10, %s8775_s26  ;;  %3743 = vst.msk [vmem:[#allocation3 + $0x58] sm:$0xff] %vm3731_vm12, %v8218_v52  ;;  %4164 = vst.msk [vmem:[%s6024_s17 + $0x58] sm:$0xff] (!%p4542_p8), %vm3731_vm12, %v8218_v52 }
 0x3d9   : > { %v8223_v16 = vpop.permute.xlu0 %3651 }
 0x3da   : > { %3740 = vst.msk [vmem:[#allocation3 + $0x40] sm:$0xff] %vm3731_vm12, %v8223_v16  ;;  %4027 = vrot.lane.b32.xlu1 %v4555_v43, %s8775_s26  ;;  %4161 = vst.msk [vmem:[%s6024_s17 + $0x40] sm:$0xff] (!%p4542_p8), %vm3731_vm12, %v8223_v16 }
 0x3db   : > { %v8228_v14 = vpop.permute.xlu1 %3653 }
 0x3dc   : > { %4021 = vrot.lane.b32.xlu0 %v4552_v44, %s8775_s26  ;;  %3741 = vst.msk [vmem:[#allocation3 + $0x48] sm:$0xff] %vm3731_vm12, %v8228_v14  ;;  %4162 = vst.msk [vmem:[%s6024_s17 + $0x48] sm:$0xff] (!%p4542_p8), %vm3731_vm12, %v8228_v14 }
 0x3dd   : > { %v3488_v18 = vpop.permute.xlu0 %3487 }
 0x3de   : > { %v3577_v29 = vmul.f32 %v3488_v18, %v7672_v13  ;;  %4023 = vrot.lane.b32.xlu1 %v4553_v15, %s8775_s26 }
 0x3df   : > { %v3490_v45 = vpop.permute.xlu1 %3489 }
 0x3e0   : > { %3808 = vrot.lane.b32.xlu0 %v3577_v29, %s8775_s26  ;;  %v3578_v9 = vmul.f32 %v3490_v45, %v7678_v7  ;;  %v4558_v13 = vpack.c.bf16 %v3577_v29, %v3577_v29 }
 0x3e1   : > { %v3484_v25 = vpop.permute.xlu0 %3483 }
 0x3e2   : > { %v3575_v1 = vmul.f32 %v3484_v25, %v7686_v23  ;;  %3810 = vrot.lane.b32.xlu1 %v3578_v9, %s8775_s26  ;;  %v4559_v7 = vpack.c.bf16 %v3578_v9, %v3578_v9 }
 0x3e3   : > { %v3486_v56 = vpop.permute.xlu1 %3485 }
 0x3e4   : > { %3804 = vrot.lane.b32.xlu0 %v3575_v1, %s8775_s26  ;;  %v3576_v26 = vmul.f32 %v3486_v56, %v7698_v19  ;;  %v4556_v49 = vpack.c.bf16 %v3575_v1, %v3575_v1 }
 0x3e5   : > { %v8241_v55 = vpop.permute.xlu0 %3663 }
 0x3e6   : > { %3746 = vst.msk [vmem:[#allocation3 + $0x70] sm:$0xff] %vm3731_vm12, %v8241_v55  ;;  %3806 = vrot.lane.b32.xlu1 %v3576_v26, %s8775_s26  ;;  %v4557_v5 = vpack.c.bf16 %v3576_v26, %v3576_v26  ;;  %4167 = vst.msk [vmem:[%s6024_s17 + $0x70] sm:$0xff] (!%p4542_p8), %vm3731_vm12, %v8241_v55 }
 0x3e7   : > { %v8246_v35 = vpop.permute.xlu1 %3665 }
 0x3e8   : > { %4033 = vrot.lane.b32.xlu0 %v4558_v13, %s8775_s26  ;;  %3747 = vst.msk [vmem:[#allocation3 + $0x78] sm:$0xff] %vm3731_vm12, %v8246_v35  ;;  %4168 = vst.msk [vmem:[%s6024_s17 + $0x78] sm:$0xff] (!%p4542_p8), %vm3731_vm12, %v8246_v35 }
 0x3e9   : > { %v8251_v23 = vpop.permute.xlu0 %3659 }
 0x3ea   : > { %3744 = vst.msk [vmem:[#allocation3 + $0x60] sm:$0xff] %vm3731_vm12, %v8251_v23  ;;  %4035 = vrot.lane.b32.xlu1 %v4559_v7, %s8775_s26  ;;  %4165 = vst.msk [vmem:[%s6024_s17 + $0x60] sm:$0xff] (!%p4542_p8), %vm3731_vm12, %v8251_v23 }
 0x3eb   : > { %v8256_v19 = vpop.permute.xlu1 %3661 }
 0x3ec   : > { %4029 = vrot.lane.b32.xlu0 %v4556_v49, %s8775_s26  ;;  %3745 = vst.msk [vmem:[#allocation3 + $0x68] sm:$0xff] %vm3731_vm12, %v8256_v19  ;;  %4166 = vst.msk [vmem:[%s6024_s17 + $0x68] sm:$0xff] (!%p4542_p8), %vm3731_vm12, %v8256_v19 }
 0x3ed   : > { %v3496_v3 = vpop.permute.xlu0 %3495 }
 0x3ee   : > { %v3581_v27 = vmul.f32 %v3496_v3, %v7705_v28  ;;  %4031 = vrot.lane.b32.xlu1 %v4557_v5, %s8775_s26 }
 0x3ef   : > { %v3498_v32 = vpop.permute.xlu1 %3497 }
 0x3f0   : > { %3816 = vrot.lane.b32.xlu0 %v3581_v27, %s8775_s26  ;;  %v3582_v42 = vmul.f32 %v3498_v32, %v7716_v38  ;;  %v4562_v28 = vpack.c.bf16 %v3581_v27, %v3581_v27 }
 0x3f1   : > { %v3492_v36 = vpop.permute.xlu0 %3491 }
 0x3f2   : > { %v3579_v47 = vmul.f32 %v3492_v36, %v7728_v20  ;;  %3818 = vrot.lane.b32.xlu1 %v3582_v42, %s8775_s26  ;;  %v4563_v38 = vpack.c.bf16 %v3582_v42, %v3582_v42 }
 0x3f3   : > { %v3494_v53 = vpop.permute.xlu1 %3493 }
 0x3f4   : > { %3812 = vrot.lane.b32.xlu0 %v3579_v47, %s8775_s26  ;;  %v3580_v8 = vmul.f32 %v3494_v53, %v7740_v39  ;;  %v4560_v44 = vpack.c.bf16 %v3579_v47, %v3579_v47 }
 0x3f5   : > { %v8269_v10 = vpop.permute.xlu0 %3671 }
 0x3f6   : > { %3750 = vst.msk [vmem:[#allocation3 + $0x90] sm:$0xff] %vm3731_vm12, %v8269_v10  ;;  %3814 = vrot.lane.b32.xlu1 %v3580_v8, %s8775_s26  ;;  %v4561_v15 = vpack.c.bf16 %v3580_v8, %v3580_v8  ;;  %4171 = vst.msk [vmem:[%s6024_s17 + $0x90] sm:$0xff] (!%p4542_p8), %vm3731_vm12, %v8269_v10 }
 0x3f7   : > { %v8274_v43 = vpop.permute.xlu1 %3673 }
 0x3f8   : > { %4041 = vrot.lane.b32.xlu0 %v4562_v28, %s8775_s26  ;;  %3751 = vst.msk [vmem:[#allocation3 + $0x98] sm:$0xff] %vm3731_vm12, %v8274_v43  ;;  %4172 = vst.msk [vmem:[%s6024_s17 + $0x98] sm:$0xff] (!%p4542_p8), %vm3731_vm12, %v8274_v43 }
 0x3f9   : > { %v8279_v20 = vpop.permute.xlu0 %3667 }
 0x3fa   : > { %3748 = vst.msk [vmem:[#allocation3 + $0x80] sm:$0xff] %vm3731_vm12, %v8279_v20  ;;  %4043 = vrot.lane.b32.xlu1 %v4563_v38, %s8775_s26  ;;  %4169 = vst.msk [vmem:[%s6024_s17 + $0x80] sm:$0xff] (!%p4542_p8), %vm3731_vm12, %v8279_v20 }
 0x3fb   : > { %v8284_v39 = vpop.permute.xlu1 %3669 }
 0x3fc   : > { %4037 = vrot.lane.b32.xlu0 %v4560_v44, %s8775_s26  ;;  %3749 = vst.msk [vmem:[#allocation3 + $0x88] sm:$0xff] %vm3731_vm12, %v8284_v39  ;;  %4170 = vst.msk [vmem:[%s6024_s17 + $0x88] sm:$0xff] (!%p4542_p8), %vm3731_vm12, %v8284_v39 }
 0x3fd   : > { %v3504_v18 = vpop.permute.xlu0 %3503 }
 0x3fe   : > { %v3585_v29 = vmul.f32 %v3504_v18, %v7759_v30  ;;  %4039 = vrot.lane.b32.xlu1 %v4561_v15, %s8775_s26 }
 0x3ff   : > { %v3506_v45 = vpop.permute.xlu1 %3505 }
 0x400   : > { %3824 = vrot.lane.b32.xlu0 %v3585_v29, %s8775_s26  ;;  %v3586_v9 = vmul.f32 %v3506_v45, %v7780_v2  ;;  %v4566_v30 = vpack.c.bf16 %v3585_v29, %v3585_v29 }
 0x401   : > { %v3500_v25 = vpop.permute.xlu0 %3499 }
 0x402   : > { %v3583_v1 = vmul.f32 %v3500_v25, %v7773_v11  ;;  %3826 = vrot.lane.b32.xlu1 %v3586_v9, %s8775_s26  ;;  %v4567_v11 = vpack.c.bf16 %v3586_v9, %v3586_v9 }
 0x403   : > { %v3502_v56 = vpop.permute.xlu1 %3501 }
 0x404   : > { %3820 = vrot.lane.b32.xlu0 %v3583_v1, %s8775_s26  ;;  %v3584_v26 = vmul.f32 %v3502_v56, %v7787_v37  ;;  %v4564_v49 = vpack.c.bf16 %v3583_v1, %v3583_v1 }
 0x405   : > { %v8297_v13 = vpop.permute.xlu0 %3679 }
 0x406   : > { %3754 = vst.msk [vmem:[#allocation3 + $0xb0] sm:$0xff] %vm3731_vm12, %v8297_v13  ;;  %3822 = vrot.lane.b32.xlu1 %v3584_v26, %s8775_s26  ;;  %v4565_v5 = vpack.c.bf16 %v3584_v26, %v3584_v26  ;;  %4175 = vst.msk [vmem:[%s6024_s17 + $0xb0] sm:$0xff] (!%p4542_p8), %vm3731_vm12, %v8297_v13 }
 0x407   : > { %v8302_v7 = vpop.permute.xlu1 %3681 }
 0x408   : > { %4049 = vrot.lane.b32.xlu0 %v4566_v30, %s8775_s26  ;;  %3755 = vst.msk [vmem:[#allocation3 + $0xb8] sm:$0xff] %vm3731_vm12, %v8302_v7  ;;  %4176 = vst.msk [vmem:[%s6024_s17 + $0xb8] sm:$0xff] (!%p4542_p8), %vm3731_vm12, %v8302_v7 }
 0x409   : > { %v8307_v2 = vpop.permute.xlu0 %3675 }
 0x40a   : > { %3752 = vst.msk [vmem:[#allocation3 + $0xa0] sm:$0xff] %vm3731_vm12, %v8307_v2  ;;  %4051 = vrot.lane.b32.xlu1 %v4567_v11, %s8775_s26  ;;  %4173 = vst.msk [vmem:[%s6024_s17 + $0xa0] sm:$0xff] (!%p4542_p8), %vm3731_vm12, %v8307_v2 }
 0x40b   : > { %v8312_v37 = vpop.permute.xlu1 %3677 }
 0x40c   : > { %4045 = vrot.lane.b32.xlu0 %v4564_v49, %s8775_s26  ;;  %3753 = vst.msk [vmem:[#allocation3 + $0xa8] sm:$0xff] %vm3731_vm12, %v8312_v37  ;;  %4174 = vst.msk [vmem:[%s6024_s17 + $0xa8] sm:$0xff] (!%p4542_p8), %vm3731_vm12, %v8312_v37 }
 0x40d   : > { %v3512_v3 = vpop.permute.xlu0 %3511 }
 0x40e   : > { %v3589_v27 = vmul.f32 %v3512_v3, %v7848_v6  ;;  %4047 = vrot.lane.b32.xlu1 %v4565_v5, %s8775_s26 }
 0x40f   : > { %v3514_v32 = vpop.permute.xlu1 %3513 }
 0x410   : > { %3832 = vrot.lane.b32.xlu0 %v3589_v27, %s8775_s26  ;;  %v3590_v42 = vmul.f32 %v3514_v32, %v7854_v59  ;;  %v4570_v6 = vpack.c.bf16 %v3589_v27, %v3589_v27 }
 0x411   : > { %v3508_v36 = vpop.permute.xlu0 %3507 }
 0x412   : > { %v3587_v47 = vmul.f32 %v3508_v36, %v7862_v33  ;;  %3834 = vrot.lane.b32.xlu1 %v3590_v42, %s8775_s26  ;;  %v4571_v59 = vpack.c.bf16 %v3590_v42, %v3590_v42 }
 0x413   : > { %v3510_v53 = vpop.permute.xlu1 %3509 }
 0x414   : > { %3828 = vrot.lane.b32.xlu0 %v3587_v47, %s8775_s26  ;;  %v3588_v8 = vmul.f32 %v3510_v53, %v7870_v48  ;;  %v4568_v44 = vpack.c.bf16 %v3587_v47, %v3587_v47 }
 0x415   : > { %v8325_v28 = vpop.permute.xlu0 %3687 }
 0x416   : > { %3758 = vst.msk [vmem:[#allocation3 + $0xd0] sm:$0xff] %vm3731_vm12, %v8325_v28  ;;  %3830 = vrot.lane.b32.xlu1 %v3588_v8, %s8775_s26  ;;  %v4569_v15 = vpack.c.bf16 %v3588_v8, %v3588_v8  ;;  %4179 = vst.msk [vmem:[%s6024_s17 + $0xd0] sm:$0xff] (!%p4542_p8), %vm3731_vm12, %v8325_v28 }
 0x417   : > { %v8330_v38 = vpop.permute.xlu1 %3689 }
 0x418   : > { %4057 = vrot.lane.b32.xlu0 %v4570_v6, %s8775_s26  ;;  %3759 = vst.msk [vmem:[#allocation3 + $0xd8] sm:$0xff] %vm3731_vm12, %v8330_v38  ;;  %4180 = vst.msk [vmem:[%s6024_s17 + $0xd8] sm:$0xff] (!%p4542_p8), %vm3731_vm12, %v8330_v38 }
 0x419   : > { %v8335_v33 = vpop.permute.xlu0 %3683 }
 0x41a   : > { %3756 = vst.msk [vmem:[#allocation3 + $0xc0] sm:$0xff] %vm3731_vm12, %v8335_v33  ;;  %4059 = vrot.lane.b32.xlu1 %v4571_v59, %s8775_s26  ;;  %4177 = vst.msk [vmem:[%s6024_s17 + $0xc0] sm:$0xff] (!%p4542_p8), %vm3731_vm12, %v8335_v33 }
 0x41b   : > { %v8340_v48 = vpop.permute.xlu1 %3685 }
 0x41c   : > { %4053 = vrot.lane.b32.xlu0 %v4568_v44, %s8775_s26  ;;  %3757 = vst.msk [vmem:[#allocation3 + $0xc8] sm:$0xff] %vm3731_vm12, %v8340_v48  ;;  %4178 = vst.msk [vmem:[%s6024_s17 + $0xc8] sm:$0xff] (!%p4542_p8), %vm3731_vm12, %v8340_v48 }
 0x41d   : > { %v3520_v18 = vpop.permute.xlu0 %3519 }
 0x41e   : > { %v3593_v29 = vmul.f32 %v3520_v18, %v7876_v63  ;;  %4055 = vrot.lane.b32.xlu1 %v4569_v15, %s8775_s26 }
 0x41f   : > { %v3522_v45 = vpop.permute.xlu1 %3521 }
 0x420   : > { %3840 = vrot.lane.b32.xlu0 %v3593_v29, %s8775_s26  ;;  %v3594_v9 = vmul.f32 %v3522_v45, %v7884_v17  ;;  %v4574_v63 = vpack.c.bf16 %v3593_v29, %v3593_v29 }
 0x421   : > { %v3516_v25 = vpop.permute.xlu0 %3515 }
 0x422   : > { %v3591_v1 = vmul.f32 %v3516_v25, %v7892_v4  ;;  %3842 = vrot.lane.b32.xlu1 %v3594_v9, %s8775_s26  ;;  %v4575_v17 = vpack.c.bf16 %v3594_v9, %v3594_v9 }
 0x423   : > { %v3518_v56 = vpop.permute.xlu1 %3517 }
 0x424   : > { %3836 = vrot.lane.b32.xlu0 %v3591_v1, %s8775_s26  ;;  %v3592_v26 = vmul.f32 %v3518_v56, %v7900_v60  ;;  %v4572_v49 = vpack.c.bf16 %v3591_v1, %v3591_v1 }
 0x425   : > { %v8353_v30 = vpop.permute.xlu0 %3695 }
 0x426   : > { %3762 = vst.msk [vmem:[#allocation3 + $0xf0] sm:$0xff] %vm3731_vm12, %v8353_v30  ;;  %3838 = vrot.lane.b32.xlu1 %v3592_v26, %s8775_s26  ;;  %v4573_v5 = vpack.c.bf16 %v3592_v26, %v3592_v26  ;;  %4183 = vst.msk [vmem:[%s6024_s17 + $0xf0] sm:$0xff] (!%p4542_p8), %vm3731_vm12, %v8353_v30 }
 0x427   : > { %v8358_v11 = vpop.permute.xlu1 %3697 }
 0x428   : > { %4065 = vrot.lane.b32.xlu0 %v4574_v63, %s8775_s26  ;;  %3763 = vst.msk [vmem:[#allocation3 + $0xf8] sm:$0xff] %vm3731_vm12, %v8358_v11  ;;  %4184 = vst.msk [vmem:[%s6024_s17 + $0xf8] sm:$0xff] (!%p4542_p8), %vm3731_vm12, %v8358_v11 }
 0x429   : > { %v8363_v4 = vpop.permute.xlu0 %3691 }
 0x42a   : > { %3760 = vst.msk [vmem:[#allocation3 + $0xe0] sm:$0xff] %vm3731_vm12, %v8363_v4  ;;  %4067 = vrot.lane.b32.xlu1 %v4575_v17, %s8775_s26  ;;  %4181 = vst.msk [vmem:[%s6024_s17 + $0xe0] sm:$0xff] (!%p4542_p8), %vm3731_vm12, %v8363_v4 }
 0x42b   : > { %v8368_v60 = vpop.permute.xlu1 %3693 }
 0x42c   : > { %4061 = vrot.lane.b32.xlu0 %v4572_v49, %s8775_s26  ;;  %3761 = vst.msk [vmem:[#allocation3 + $0xe8] sm:$0xff] %vm3731_vm12, %v8368_v60  ;;  %4182 = vst.msk [vmem:[%s6024_s17 + $0xe8] sm:$0xff] (!%p4542_p8), %vm3731_vm12, %v8368_v60 }
 0x42d   : > { %v3528_v3 = vpop.permute.xlu0 %3527 }
 0x42e   : > { %v3597_v27 = vmul.f32 %v3528_v3, %v7908_v34  ;;  %4063 = vrot.lane.b32.xlu1 %v4573_v5, %s8775_s26 }
 0x42f   : > { %v3530_v32 = vpop.permute.xlu1 %3529 }
 0x430   : > { %3848 = vrot.lane.b32.xlu0 %v3597_v27, %s8775_s26  ;;  %v3598_v42 = vmul.f32 %v3530_v32, %v7914_v57  ;;  %v4578_v6 = vpack.c.bf16 %v3597_v27, %v3597_v27 }
 0x431   : > { %v3524_v36 = vpop.permute.xlu0 %3523 }
 0x432   : > { %v3595_v47 = vmul.f32 %v3524_v36, %v7920_v41  ;;  %3850 = vrot.lane.b32.xlu1 %v3598_v42, %s8775_s26  ;;  %v4579_v59 = vpack.c.bf16 %v3598_v42, %v3598_v42 }
 0x433   : > { %v3526_v53 = vpop.permute.xlu1 %3525 }
 0x434   : > { %3844 = vrot.lane.b32.xlu0 %v3595_v47, %s8775_s26  ;;  %v3596_v8 = vmul.f32 %v3526_v53, %v7930_v0  ;;  %v4576_v44 = vpack.c.bf16 %v3595_v47, %v3595_v47 }
 0x435   : > { %v3536_v34 = vpop.permute.xlu0 %3535 }
 0x436   : > { %3846 = vrot.lane.b32.xlu1 %v3596_v8, %s8775_s26  ;;  %v4577_v57 = vpack.c.bf16 %v3596_v8, %v3596_v8  ;;  %v3601_v41 = vmul.f32 %v3536_v34, %v7936_v50 }
 0x437   : > { %v3538_v15 = vpop.permute.xlu1 %3537 }
 0x438   : > { %4073 = vrot.lane.b32.xlu0 %v4578_v6, %s8775_s26  ;;  %v3602_v0 = vmul.f32 %v3538_v15, %v7944_v46  ;;  %v4582_v26 = vpack.c.bf16 %v3601_v41, %v3601_v41 }
 0x439   : > { %v3532_v18 = vpop.permute.xlu0 %3531 }
 0x43a   : > { %4075 = vrot.lane.b32.xlu1 %v4579_v59, %s8775_s26  ;;  %v3599_v45 = vmul.f32 %v3532_v18, %v7950_v24  ;;  %v4583_v63 = vpack.c.bf16 %v3602_v0, %v3602_v0 }
 0x43b   : > { %v3534_v29 = vpop.permute.xlu1 %3533 }
 0x43c   : > { %4069 = vrot.lane.b32.xlu0 %v4576_v44, %s8775_s26  ;;  %v3600_v50 = vmul.f32 %v3534_v29, %v7960_v12  ;;  %v4580_v1 = vpack.c.bf16 %v3599_v45, %v3599_v45 }
 0x43e   : > { %4071 = vrot.lane.b32.xlu1 %v4577_v57, %s8775_s26  ;;  %v4581_v46 = vpack.c.bf16 %v3600_v50, %v3600_v50 }
 0x440   : > { %3856 = vrot.lane.b32.xlu0 %v3601_v41, %s8775_s26 }
 0x442   : > { %v3801_v9 = vpop.permute.xlu0 %3800  ;;  %3858 = vrot.lane.b32.xlu1 %v3602_v0, %s8775_s26 }
 0x443   : > { %3895 = vst.msk [vmem:[#allocation2 + $0x48] sm:$0xff] %vm3731_vm12, %v3801_v9 }
 0x444   : > { %3852 = vrot.lane.b32.xlu0 %v3599_v45, %s8775_s26  ;;  %v3803_v25 = vpop.permute.xlu1 %3802 }
 0x445   : > { %3896 = vst.msk [vmem:[#allocation2 + $0x50] sm:$0xff] %vm3731_vm12, %v3803_v25 }
 0x446   : > { %v3797_v56 = vpop.permute.xlu0 %3796  ;;  %3854 = vrot.lane.b32.xlu1 %v3600_v50, %s8775_s26 }
 0x447   : > { %3893 = vst.msk [vmem:[#allocation2 + $0x28] sm:$0xff] %vm3731_vm12, %v3797_v56 }
 0x448   : > { %4077 = vrot.lane.b32.xlu0 %v4580_v1, %s8775_s26  ;;  %v3799_v24 = vpop.permute.xlu1 %3798 }
 0x449   : > { %3894 = vst.msk [vmem:[#allocation2 + $0x30] sm:$0xff] %vm3731_vm12, %v3799_v24 }
 0x44a   : > { %v4026_v12 = vpop.permute.xlu0 %4025  ;;  %4079 = vrot.lane.b32.xlu1 %v4581_v46, %s8775_s26 }
 0x44b   : > { %4120 = vst.msk [vmem:[%s6022_s14 + $0x8] sm:$0xf] %vm4117_vm13, %v4026_v12 }
 0x44c   : > { %4081 = vrot.lane.b32.xlu0 %v4582_v26, %s8775_s26  ;;  %v4028_v17 = vpop.permute.xlu1 %4027 }
 0x44d   : > { %4121 = vst.msk [vmem:[%s6022_s14 + $0xc] sm:$0xf] %vm4117_vm13, %v4028_v17 }
 0x44e   : > { %v4022_v49 = vpop.permute.xlu0 %4021  ;;  %4083 = vrot.lane.b32.xlu1 %v4583_v63, %s8775_s26 }
 0x44f   : > { %4118 = vst.msk [vmem:[%s6022_s14] sm:$0xf] %vm4117_vm13, %v4022_v49 }
 0x450   : > { %v4024_v5 = vpop.permute.xlu1 %4023 }
 0x451   : > { %4119 = vst.msk [vmem:[%s6022_s14 + $0x4] sm:$0xf] %vm4117_vm13, %v4024_v5 }
 0x452   : > { %v3809_v3 = vpop.permute.xlu0 %3808 }
 0x453   : > { %3899 = vst.msk [vmem:[#allocation2 + $0x88] sm:$0xff] %vm3731_vm12, %v3809_v3 }
 0x454   : > { %v3811_v27 = vpop.permute.xlu1 %3810 }
 0x455   : > { %3900 = vst.msk [vmem:[#allocation2 + $0x90] sm:$0xff] %vm3731_vm12, %v3811_v27 }
 0x456   : > { %v3805_v32 = vpop.permute.xlu0 %3804 }
 0x457   : > { %3897 = vst.msk [vmem:[#allocation2 + $0x68] sm:$0xff] %vm3731_vm12, %v3805_v32 }
 0x458   : > { %v3807_v42 = vpop.permute.xlu1 %3806 }
 0x459   : > { %3898 = vst.msk [vmem:[#allocation2 + $0x70] sm:$0xff] %vm3731_vm12, %v3807_v42 }
 0x45a   : > { %v4034_v36 = vpop.permute.xlu0 %4033 }
 0x45b   : > { %4124 = vst.msk [vmem:[%s6022_s14 + $0x18] sm:$0xf] %vm4117_vm13, %v4034_v36 }
 0x45c   : > { %v4036_v47 = vpop.permute.xlu1 %4035 }
 0x45d   : > { %4125 = vst.msk [vmem:[%s6022_s14 + $0x1c] sm:$0xf] %vm4117_vm13, %v4036_v47 }
 0x45e   : > { %v4030_v53 = vpop.permute.xlu0 %4029 }
 0x45f   : > { %4122 = vst.msk [vmem:[%s6022_s14 + $0x10] sm:$0xf] %vm4117_vm13, %v4030_v53 }
 0x460   : > { %v4032_v8 = vpop.permute.xlu1 %4031 }
 0x461   : > { %4123 = vst.msk [vmem:[%s6022_s14 + $0x14] sm:$0xf] %vm4117_vm13, %v4032_v8 }
 0x462   : > { %v3817_v6 = vpop.permute.xlu0 %3816 }
 0x463   : > { %3903 = vst.msk [vmem:[#allocation2 + $0xc8] sm:$0xff] %vm3731_vm12, %v3817_v6 }
 0x464   : > { %v3819_v34 = vpop.permute.xlu1 %3818 }
 0x465   : > { %3904 = vst.msk [vmem:[#allocation2 + $0xd0] sm:$0xff] %vm3731_vm12, %v3819_v34 }
 0x466   : > { %v3813_v59 = vpop.permute.xlu0 %3812 }
 0x467   : > { %3901 = vst.msk [vmem:[#allocation2 + $0xa8] sm:$0xff] %vm3731_vm12, %v3813_v59 }
 0x468   : > { %v3815_v44 = vpop.permute.xlu1 %3814 }
 0x469   : > { %3902 = vst.msk [vmem:[#allocation2 + $0xb0] sm:$0xff] %vm3731_vm12, %v3815_v44 }
 0x46a   : > { %v4042_v15 = vpop.permute.xlu0 %4041 }
 0x46b   : > { %4128 = vst.msk [vmem:[%s6022_s14 + $0x28] sm:$0xf] %vm4117_vm13, %v4042_v15 }
 0x46c   : > { %v4044_v57 = vpop.permute.xlu1 %4043 }
 0x46d   : > { %4129 = vst.msk [vmem:[%s6022_s14 + $0x2c] sm:$0xf] %vm4117_vm13, %v4044_v57 }
 0x46e   : > { %v4038_v41 = vpop.permute.xlu0 %4037 }
 0x46f   : > { %4126 = vst.msk [vmem:[%s6022_s14 + $0x20] sm:$0xf] %vm4117_vm13, %v4038_v41 }
 0x470   : > { %v4040_v18 = vpop.permute.xlu1 %4039 }
 0x471   : > { %4127 = vst.msk [vmem:[%s6022_s14 + $0x24] sm:$0xf] %vm4117_vm13, %v4040_v18 }
 0x472   : > { %v3825_v0 = vpop.permute.xlu0 %3824 }
 0x473   : > { %3907 = vst.msk [vmem:[#allocation2 + $0x108] sm:$0xff] %vm3731_vm12, %v3825_v0 }
 0x474   : > { %v3827_v29 = vpop.permute.xlu1 %3826 }
 0x475   : > { %3908 = vst.msk [vmem:[#allocation2 + $0x110] sm:$0xff] %vm3731_vm12, %v3827_v29 }
 0x476   : > { %v3821_v45 = vpop.permute.xlu0 %3820 }
 0x477   : > { %3905 = vst.msk [vmem:[#allocation2 + $0xe8] sm:$0xff] %vm3731_vm12, %v3821_v45 }
 0x478   : > { %v3823_v9 = vpop.permute.xlu1 %3822 }
 0x479   : > { %3906 = vst.msk [vmem:[#allocation2 + $0xf0] sm:$0xff] %vm3731_vm12, %v3823_v9 }
 0x47a   : > { %v4050_v50 = vpop.permute.xlu0 %4049 }
 0x47b   : > { %4132 = vst.msk [vmem:[%s6022_s14 + $0x38] sm:$0xf] %vm4117_vm13, %v4050_v50 }
 0x47c   : > { %v4052_v25 = vpop.permute.xlu1 %4051 }
 0x47d   : > { %4133 = vst.msk [vmem:[%s6022_s14 + $0x3c] sm:$0xf] %vm4117_vm13, %v4052_v25 }
 0x47e   : > { %v4046_v1 = vpop.permute.xlu0 %4045 }
 0x47f   : > { %4130 = vst.msk [vmem:[%s6022_s14 + $0x30] sm:$0xf] %vm4117_vm13, %v4046_v1 }
 0x480   : > { %v4048_v56 = vpop.permute.xlu1 %4047 }
 0x481   : > { %4131 = vst.msk [vmem:[%s6022_s14 + $0x34] sm:$0xf] %vm4117_vm13, %v4048_v56 }
 0x482   : > { %v3833_v46 = vpop.permute.xlu0 %3832 }
 0x483   : > { %3911 = vst.msk [vmem:[#allocation2 + $0x148] sm:$0xff] %vm3731_vm12, %v3833_v46 }
 0x484   : > { %v3835_v24 = vpop.permute.xlu1 %3834 }
 0x485   : > { %3912 = vst.msk [vmem:[#allocation2 + $0x150] sm:$0xff] %vm3731_vm12, %v3835_v24 }
 0x486   : > { %v3829_v26 = vpop.permute.xlu0 %3828 }
 0x487   : > { %3909 = vst.msk [vmem:[#allocation2 + $0x128] sm:$0xff] %vm3731_vm12, %v3829_v26 }
 0x488   : > { %v3831_v12 = vpop.permute.xlu1 %3830 }
 0x489   : > { %3910 = vst.msk [vmem:[#allocation2 + $0x130] sm:$0xff] %vm3731_vm12, %v3831_v12 }
 0x48a   : > { %v4058_v63 = vpop.permute.xlu0 %4057 }
 0x48b   : > { %4136 = vst.msk [vmem:[%s6022_s14 + $0x48] sm:$0xf] %vm4117_vm13, %v4058_v63 }
 0x48c   : > { %v4060_v17 = vpop.permute.xlu1 %4059 }
 0x48d   : > { %4137 = vst.msk [vmem:[%s6022_s14 + $0x4c] sm:$0xf] %vm4117_vm13, %v4060_v17 }
 0x48e   : > { %v4054_v49 = vpop.permute.xlu0 %4053 }
 0x48f   : > { %4134 = vst.msk [vmem:[%s6022_s14 + $0x40] sm:$0xf] %vm4117_vm13, %v4054_v49 }
 0x490   : > { %v4056_v5 = vpop.permute.xlu1 %4055 }
 0x491   : > { %4135 = vst.msk [vmem:[%s6022_s14 + $0x44] sm:$0xf] %vm4117_vm13, %v4056_v5 }
 0x492   : > { %v3841_v3 = vpop.permute.xlu0 %3840 }
 0x493   : > { %3915 = vst.msk [vmem:[#allocation2 + $0x188] sm:$0xff] %vm3731_vm12, %v3841_v3 }
 0x494   : > { %v3843_v27 = vpop.permute.xlu1 %3842 }
 0x495   : > { %3916 = vst.msk [vmem:[#allocation2 + $0x190] sm:$0xff] %vm3731_vm12, %v3843_v27 }
 0x496   : > { %v3837_v32 = vpop.permute.xlu0 %3836 }
 0x497   : > { %3913 = vst.msk [vmem:[#allocation2 + $0x168] sm:$0xff] %vm3731_vm12, %v3837_v32 }
 0x498   : > { %v3839_v42 = vpop.permute.xlu1 %3838 }
 0x499   : > { %3914 = vst.msk [vmem:[#allocation2 + $0x170] sm:$0xff] %vm3731_vm12, %v3839_v42 }
 0x49a   : > { %v4066_v36 = vpop.permute.xlu0 %4065 }
 0x49b   : > { %4140 = vst.msk [vmem:[%s6022_s14 + $0x58] sm:$0xf] %vm4117_vm13, %v4066_v36 }
 0x49c   : > { %v4068_v47 = vpop.permute.xlu1 %4067 }
 0x49d   : > { %4141 = vst.msk [vmem:[%s6022_s14 + $0x5c] sm:$0xf] %vm4117_vm13, %v4068_v47 }
 0x49e   : > { %v4062_v53 = vpop.permute.xlu0 %4061 }
 0x49f   : > { %4138 = vst.msk [vmem:[%s6022_s14 + $0x50] sm:$0xf] %vm4117_vm13, %v4062_v53 }
 0x4a0   : > { %v4064_v8 = vpop.permute.xlu1 %4063 }
 0x4a1   : > { %4139 = vst.msk [vmem:[%s6022_s14 + $0x54] sm:$0xf] %vm4117_vm13, %v4064_v8 }
 0x4a2   : > { %v3849_v6 = vpop.permute.xlu0 %3848 }
 0x4a3   : > { %3919 = vst.msk [vmem:[#allocation2 + $0x1c8] sm:$0xff] %vm3731_vm12, %v3849_v6 }
 0x4a4   : > { %v3851_v34 = vpop.permute.xlu1 %3850 }
 0x4a5   : > { %3920 = vst.msk [vmem:[#allocation2 + $0x1d0] sm:$0xff] %vm3731_vm12, %v3851_v34 }
 0x4a6   : > { %v3845_v59 = vpop.permute.xlu0 %3844 }
 0x4a7   : > { %3917 = vst.msk [vmem:[#allocation2 + $0x1a8] sm:$0xff] %vm3731_vm12, %v3845_v59 }
 0x4a8   : > { %v3847_v44 = vpop.permute.xlu1 %3846 }
 0x4a9   : > { %3918 = vst.msk [vmem:[#allocation2 + $0x1b0] sm:$0xff] %vm3731_vm12, %v3847_v44 }
 0x4aa   : > { %v4074_v15 = vpop.permute.xlu0 %4073 }
 0x4ab   : > { %4144 = vst.msk [vmem:[%s6022_s14 + $0x68] sm:$0xf] %vm4117_vm13, %v4074_v15 }
 0x4ac   : > { %v4076_v57 = vpop.permute.xlu1 %4075 }
 0x4ad   : > { %4145 = vst.msk [vmem:[%s6022_s14 + $0x6c] sm:$0xf] %vm4117_vm13, %v4076_v57 }
 0x4ae   : > { %v4070_v41 = vpop.permute.xlu0 %4069 }
 0x4af   : > { %4142 = vst.msk [vmem:[%s6022_s14 + $0x60] sm:$0xf] %vm4117_vm13, %v4070_v41 }
 0x4b0   : > { %v4072_v18 = vpop.permute.xlu1 %4071 }
 0x4b1   : > { %4143 = vst.msk [vmem:[%s6022_s14 + $0x64] sm:$0xf] %vm4117_vm13, %v4072_v18 }
 0x4b2   : > { %v3857_v0 = vpop.permute.xlu0 %3856 }
 0x4b3   : > { %3923 = vst.msk [vmem:[#allocation2 + $0x208] sm:$0xff] %vm3731_vm12, %v3857_v0 }
 0x4b4   : > { %v3859_v29 = vpop.permute.xlu1 %3858 }
 0x4b5   : > { %3924 = vst.msk [vmem:[#allocation2 + $0x210] sm:$0xff] %vm3731_vm12, %v3859_v29 }
 0x4b6   : > { %v3853_v45 = vpop.permute.xlu0 %3852 }
 0x4b7   : > { %3921 = vst.msk [vmem:[#allocation2 + $0x1e8] sm:$0xff] %vm3731_vm12, %v3853_v45 }
 0x4b8   : > { %v3855_v9 = vpop.permute.xlu1 %3854 }
 0x4b9   : > { %3922 = vst.msk [vmem:[#allocation2 + $0x1f0] sm:$0xff] %vm3731_vm12, %v3855_v9 }
 0x4ba   : > { %v4078_v50 = vpop.permute.xlu0 %4077 }
 0x4bb   : > { %4146 = vst.msk [vmem:[%s6022_s14 + $0x70] sm:$0xf] %vm4117_vm13, %v4078_v50  ;;  %4152 = sbr.rel (%p4542_p8) target bundleno = 1218 (0x4c2), region = 40 }
 0x4bc   : > { %v4080_v25 = vpop.permute.xlu1 %4079 }
 0x4bd   : > { %4147 = vst.msk [vmem:[%s6022_s14 + $0x74] sm:$0xf] %vm4117_vm13, %v4080_v25 }
 0x4be   : > { %v4082_v1 = vpop.permute.xlu0 %4081 }
 0x4bf   : > { %4148 = vst.msk [vmem:[%s6022_s14 + $0x78] sm:$0xf] %vm4117_vm13, %v4082_v1 }
 0x4c0   : > { %v4084_v56 = vpop.permute.xlu1 %4083 }
 0x4c1   : > { %4149 = vst.msk [vmem:[%s6022_s14 + $0x7c] sm:$0xf] %vm4117_vm13, %v4084_v56 }
 0x4c2 PF: > { %s4545_s6 = sshll.u32 %s5834_s21, 5  ;;  %s4546_s8 = sshll.u32 %s5838_s22, 8 }
 0x4c3   : > { %s4206_s9 = sshll.u32 %s6022_s14, 4  ;;  %s4203_s11 = sadd.s32 %s4546_s8, %s4545_s6  ;;  %s8594_s9 = int_to_ptr.vmem [resolvable:$true] %s4206_s9 }
 0x4c4   : > { %s4547_s12 = sshll.u32 %s4203_s11, 6  ;;  %s4584_s20 = sshll.u32 %s5838_s22, 12 }
 0x4c5   : > { %s8599_s29 = scalar_lea.hbm %s8711_s3, %s4547_s12  ;;  %s8604_s30 = scalar_lea.sflag [#allocation5], %s216_s5 }
 0x4c6   : > { %s5700_s26 = scalar_lea.vmem %s8594_s9, 2048  ;;  %s5861_s21 = smov [#allocation4]  }
 0x4c7   : > { %p5701_p9 = scmp.ne.s32.totalorder %s8594_s9, %s5700_s26  ;;  %s5704_s14 = sshll.u32 %s5861_s21, 4  ;;  %s5705_s14 = int_to_ptr.vmem [resolvable:$false] %s5704_s14 }
 0x4c8   : > { %s5706_s6 = scalar_lea.vmem %s5705_s14, 4096  ;;  %p5707_p0 = scmp.lt.s32.totalorder %s8594_s9, %s5705_s14 }
 0x4c9   : > { %p5702_p10 = pnand %p5701_p9, %p5962_p3  ;;  %p5708_p1 = scmp.lt.s32.totalorder %s5706_s6, %s5700_s26 }
 0x4cb   : > { %p5703_p11 = pneg %p5702_p10  ;;  %p5709_p4 = por %p5708_p1, %p5707_p0 }
 0x4cd   : > { %p5710_p2 = pnand %p5709_p4, %p5703_p11 }
 0x4cf   : > { %5713 = shalt.err (!%p5710_p2)
}
 0x4d0   : > { %s5714_s5 = scalar_lea.hbm %s8599_s29, 2048  ;;  %s5718_s12 = scalar_lea.hbm %s8711_s3, 32768 }
 0x4d1   : > { %p5715_p5 = scmp.ne.s32.totalorder %s8599_s29, %s5714_s5  ;;  %p5719_p9 = scmp.lt.u32.totalorder %s8599_s29, %s8711_s3 }
 0x4d2   : > { %p5720_p10 = scmp.lt.u32.totalorder %s5718_s12, %s5714_s5  ;;  %p5722_p0 = scmp.lt.u32.totalorder %s5714_s5, %s8599_s29 }
 0x4d3   : > { %p5716_p6 = pnand %p5715_p5, %p5962_p3 }
 0x4d4   : > { %p5721_p11 = por %p5720_p10, %p5719_p9 }
 0x4d5   : > { %p5717_p8 = pneg %p5716_p6 }
 0x4d6   : > { %p5723_p1 = por %p5722_p0, %p5721_p11 }
 0x4d8   : > { %p5724_p4 = pnand %p5723_p1, %p5717_p8 }
 0x4da   : > { %5727 = shalt.err (!%p5724_p4)
}
 0x4db   : > { %s8892_s26 = smov 64   ;;  %s8636_s6 = scalar_lea.hbm %s8712_s4, %s4584_s20 }
 0x4dc   : > { %4920 = dma.vmem_to_hbm [thread:$0]  (%p5962_p3), %s8594_s9, 2048, %s8599_s29, %s8604_s30, %s8892_s26, %s8892_s26, %s5853_s23  }
 0x4dd   : > { %s4222_s5 = sshll.u32 %s6024_s17, 4  ;;  %s8893_s7 = sand.u32 1, %s5814_s16   ;;  %s8639_s5 = int_to_ptr.vmem [resolvable:$true] %s4222_s5 }
 0x4de   : > { %s8643_s8 = scalar_lea.sflag [#allocation7], %s8893_s7  ;;  %s5728_s11 = scalar_lea.vmem %s8639_s5, 4096 }
 0x4df   : > { %p5729_p2 = scmp.ne.s32.totalorder %s8639_s5, %s5728_s11  ;;  %s5862_s22 = smov [#allocation6]  }
 0x4e0   : > { %s5732_s30 = sshll.u32 %s5862_s22, 4  ;;  %s5733_s30 = int_to_ptr.vmem [resolvable:$false] %s5732_s30 }
 0x4e1   : > { %p5730_p5 = pnand %p5729_p2, %p5989_p12  ;;  %s5734_s23 = scalar_lea.vmem %s5733_s30, 8192 }
 0x4e2   : > { %p5735_p6 = scmp.lt.s32.totalorder %s8639_s5, %s5733_s30  ;;  %p5736_p8 = scmp.lt.s32.totalorder %s5734_s23, %s5728_s11 }
 0x4e3   : > { %p5731_p3 = pneg %p5730_p5 }
 0x4e4   : > { %p5737_p9 = por %p5736_p8, %p5735_p6 }
 0x4e6   : > { %p5738_p10 = pnand %p5737_p9, %p5731_p3 }
 0x4e8   : > { %5741 = shalt.err (!%p5738_p10)
}
 0x4e9   : > { %s5742_s17 = scalar_lea.hbm %s8636_s6, 4096  ;;  %s5746_s29 = scalar_lea.hbm %s8712_s4, 8192 }
 0x4ea   : > { %p5743_p11 = scmp.ne.s32.totalorder %s8636_s6, %s5742_s17  ;;  %p5747_p4 = scmp.lt.u32.totalorder %s8636_s6, %s8712_s4 }
 0x4eb   : > { %p5748_p2 = scmp.lt.u32.totalorder %s5746_s29, %s5742_s17  ;;  %p5750_p3 = scmp.lt.u32.totalorder %s5742_s17, %s8636_s6 }
 0x4ec   : > { %p5744_p0 = pnand %p5743_p11, %p5989_p12 }
 0x4ed   : > { %p5749_p5 = por %p5748_p2, %p5747_p4 }
 0x4ee   : > { %p5745_p1 = pneg %p5744_p0 }
 0x4ef   : > { %p5751_p6 = por %p5750_p3, %p5749_p5 }
 0x4f1   : > { %p5752_p8 = pnand %p5751_p6, %p5745_p1 }
 0x4f3   : > { %5755 = shalt.err (!%p5752_p8)
}
 0x4f4   : > { %s5863_s28 = smov 128   ;;  %s8894_s26 = smov 8  }
 0x4f5   : > { %4921 = dma.vmem_to_hbm [thread:$0]  (%p5989_p12), %s8639_s5, 4096, %s8636_s6, %s8643_s8, %s5863_s28, %s5863_s28, %s8894_s26  }
 0x4f6 PF: > { %p4931_p9 = scmp.ge.s32.totalorder %s5850_s25, 2  ;;  %s4237_s21 = sand.u32 1, %s5822_s18  }
 0x4f7   : > { %s4238_s14 = scalar_lea.sflag [#allocation5], %s4237_s21 }
 0x4f8   : > { %p4925_p10 = pnand %p4931_p9, %p5977_p7 }
 0x4fa   : > { %5801 = dma.done.wait (!%p4925_p10), %s4238_s14, 2048  }
 0x4fb   : > { %5803 = vsyncadd (!%p4925_p10), %s4238_s14, 4294965248  ;;  %s4246_s7 = sand.u32 1, %s5810_s15   ;;  %p4928_p11 = pnand %p4931_p9, %p6001_p13 }
 0x4fc   : > { %s4247_s13 = scalar_lea.sflag [#allocation7], %s4246_s7 }
 0x4fd   : > { %5805 = dma.done.wait (!%p4928_p11), %s4247_s13, 4096  }
 0x4fe   : > { %5807 = vsyncadd (!%p4928_p11), %s4247_s13, 4294963200  ;;  %s21_s25 = sadd.s32 1, %s5850_s25   ;;  %s8895_s6 = sld [smem:[#allocation10_spill]] }
 0x4ff   : > { %p18_p12 = scmp.ge.s32.totalorder %s21_s25, 18   ;;  %s8896_s17 = sld [smem:[#allocation16_spill]] }
 0x500   : > { %s8897_s10 = sld [smem:[#allocation11_spill]]  ;;  %s8898_s20 = sld [smem:[#allocation17_spill]] }
 0x501   : > { %s8899_s21 = sld [smem:[#allocation12_spill]]  ;;  %s8900_s22 = sld [smem:[#allocation13_spill]] }
 0x502   : > { %s8901_s23 = sld [smem:[#allocation14_spill]]  ;;  %s8902_s24 = sld [smem:[#allocation15_spill]] }
 0x503   : > { %s8903_s15 = smov %s5814_s16  ;;  %s8905_s18 = smov %s5826_s19 }
 0x504   : > { %s8904_s16 = smov %s8895_s6  ;;  %20 = sbr.rel (!%p18_p12) target bundleno = 9 (0x9), region = 95 }
 0x506   : > { %s8906_s19 = smov %s8897_s10 }
 0x50b   :  { %4252 = vsyncpa [#allocation5], 1 }
 0x50c   :  { %4254 = vsyncpa [#allocation5 + $0x1], 1 }
 0x50d   :  { %4255 = vsyncpa [#allocation7], 1 }
 0x50e   :  { %4257 = vsyncpa [#allocation7 + $0x1], 1 }

</bundles_post_ra>
